<compile_context>
chip_gen: v7x
topology: tpu7x:2x2x1
jax: 0.10.0
libtpu: 0.0.40
codegen_flags: <defaults>
</compile_context>

<pallas_src>
import functools

import jax
import jax.numpy as jnp
from jax.experimental import pallas as pl
from jax.experimental.pallas import tpu as pltpu


def _spatial_attention_kernel(x_ref, w_ref, b_ref, out_ref, *, K, H, W, C):
    """One batch element per grid step (fully fused SpatialAttention).

    x_ref   : (1, C, H+K-1, W+K-1)  zero-padded input (VMEM)
    w_ref   : (2*K*K,)              conv weights (SMEM); first K*K taps act on
                                    the channel-max map, next K*K on the mean map
    b_ref   : (1,)                  conv bias (SMEM)
    out_ref : (1, C, H, W)          x * sigmoid(conv(...))
    """
    inv_c = 1.0 / C

    xp = x_ref[0]                                   # (C, Hp, Wp) float32

    # Channel-wise max / mean.  Zero spatial padding commutes with both
    # (max over all-zero channels = 0, mean = 0), so these planes are already
    # the zero-padded inputs of the 7x7 conv.
    mx = jnp.max(xp, axis=0)                        # (Hp, Wp)
    mn = jnp.sum(xp, axis=0) * inv_c                # (Hp, Wp)

    # 7x7 conv over the 2-channel (max, mean) map as 2*K*K scalar-times-plane
    # MACs on the VPU.  Weights are scalars read from SMEM, so no per-tap
    # vector broadcast is created.  Lane (kw) slices are hoisted out of the
    # inner kh loop to cut relayout work.
    acc = jnp.zeros((H, W), jnp.float32)
    for kw in range(K):
        mx_c = mx[:, kw:kw + W]                     # (Hp, W)
        mn_c = mn[:, kw:kw + W]                     # (Hp, W)
        for kh in range(K):
            w_max = w_ref[kh * K + kw]              # scalar from SMEM
            w_mean = w_ref[K * K + kh * K + kw]     # scalar from SMEM
            acc = acc + mx_c[kh:kh + H, :] * w_max
            acc = acc + mn_c[kh:kh + H, :] * w_mean

    z = acc + b_ref[0]
    att = 1.0 / (1.0 + jnp.exp(-z))                 # sigmoid (EUP exp + divide)

    p = (K - 1) // 2
    x_in = xp[:, p:p + H, p:p + W]                  # un-padded interior (C, H, W)
    out_ref[...] = (x_in * att[None, :, :])[None]   # (1, C, H, W)


def spatial_attention(x_nchw, conv_w, conv_b):
    """x_nchw: (N, C, H, W); conv_w: (1, 2, K, K); conv_b: (1,)."""
    N, C, H, W = x_nchw.shape
    K = conv_w.shape[-1]
    p = (K - 1) // 2
    Hp, Wp = H + 2 * p, W + 2 * p

    x = x_nchw.astype(jnp.float32)
    # Single tiny pad pass (no transposes); padding x directly is equivalent to
    # zero-padding the (max, mean) maps because channel max/mean of zeros is 0.
    x_pad = jnp.pad(x, ((0, 0), (0, 0), (p, p), (p, p)))
    w_flat = conv_w.reshape(-1).astype(jnp.float32)     # (2*K*K,) scalars -> SMEM
    b_flat = conv_b.reshape(-1).astype(jnp.float32)     # (1,)       scalar -> SMEM

    kernel = functools.partial(_spatial_attention_kernel, K=K, H=H, W=W, C=C)

    return pl.pallas_call(
        kernel,
        out_shape=jax.ShapeDtypeStruct((N, C, H, W), jnp.float32),
        grid_spec=pltpu.PrefetchScalarGridSpec(
            num_scalar_prefetch=0,
            grid=(N,),
            in_specs=[
                pl.BlockSpec((1, C, Hp, Wp), lambda n: (n, 0, 0, 0)),
                pl.BlockSpec(memory_space=pltpu.MemorySpace.SMEM),
                pl.BlockSpec(memory_space=pltpu.MemorySpace.SMEM),
            ],
            out_specs=pl.BlockSpec((1, C, H, W), lambda n: (n, 0, 0, 0)),
        ),
        compiler_params=pltpu.CompilerParams(
            dimension_semantics=("parallel",)),
    )(x_pad, w_flat, b_flat)


def _reference(x, conv_w, conv_b):
    """Pure-JAX reference matching the PyTorch SpatialAttention forward."""
    mx = jnp.max(x, axis=1, keepdims=True)
    mn = jnp.mean(x, axis=1, keepdims=True)
    cat = jnp.concatenate([mx, mn], axis=1)
    K = conv_w.shape[-1]
    p = (K - 1) // 2
    conv = jax.lax.conv_general_dilated(
        cat, conv_w, window_strides=(1, 1),
        padding=[(p, p), (p, p)],
        dimension_numbers=("NCHW", "OIHW", "NCHW"))
    att = jax.nn.sigmoid(conv + conv_b.reshape(1, 1, 1, 1))
    return x * att


if __name__ == "__main__":
    # Small shapes consistent with the module's forward (NCHW input).
    N, C, H, W = 2, 4, 16, 16
    K = 7

    key = jax.random.PRNGKey(0)
    kx, kw_, kb = jax.random.split(key, 3)

    x = jax.random.normal(kx, (N, C, H, W), dtype=jnp.float32)
    # nn.Conv2d(2, 1, kernel_size=7, padding=3) parameters.
    conv_w = jax.random.normal(kw_, (1, 2, K, K), dtype=jnp.float32) * 0.1
    conv_b = jax.random.normal(kb, (1,), dtype=jnp.float32) * 0.1

    out = spatial_attention(x, conv_w, conv_b)
    out = jax.block_until_ready(out)

    ref = _reference(x, conv_w, conv_b)
    assert out.shape == (N, C, H, W)
    assert jnp.allclose(out, ref, atol=1e-4, rtol=1e-4), "mismatch vs reference"

    print("KERNEL_OK")
</pallas_src>

<mosaic_0001>
module attributes {stable_mosaic.version = 11 : i64} {
  func.func @_spatial_attention_kernel(%arg0: i32, %arg1: memref<1x4x22x22xf32, #tpu.memory_space<vmem>>, %arg2: memref<98xf32, #tpu.memory_space<smem>>, %arg3: memref<1xf32, #tpu.memory_space<smem>>, %arg4: memref<1x4x16x16xf32, #tpu.memory_space<vmem>>) attributes {dimension_semantics = [#tpu.dimension_semantics<parallel>], iteration_bounds = array<i64: 2>, scalar_prefetch = 0 : i64, scratch_operands = 0 : i64, tpu.core_type = #tpu.core_type<tc>, window_params = [{transform_indices = @transform_0, window_bounds = array<i64: 1, 4, 22, 22>}, {transform_indices = @transform_1, window_bounds = array<i64: 98>}, {transform_indices = @transform_2, window_bounds = array<i64: 1>}, {transform_indices = @transform_3, window_bounds = array<i64: 1, 4, 16, 16>}]} {
    %c0 = arith.constant 0 : index
    %c0_0 = arith.constant 0 : index
    %c0_1 = arith.constant 0 : index
    %c0_2 = arith.constant 0 : index
    %0 = vector.load %arg1[%c0, %c0_0, %c0_1, %c0_2] : memref<1x4x22x22xf32, #tpu.memory_space<vmem>>, vector<1x4x22x22xf32>
    %1 = vector.shape_cast %0 : vector<1x4x22x22xf32> to vector<4x22x22xf32>
    %cst = arith.constant dense<0xFF800000> : vector<22x22xf32>
    %2 = vector.multi_reduction <maximumf>, %1, %cst [0] : vector<4x22x22xf32> to vector<22x22xf32>
    %cst_3 = arith.constant dense<0.000000e+00> : vector<22x22xf32>
    %3 = vector.multi_reduction <add>, %1, %cst_3 [0] : vector<4x22x22xf32> to vector<22x22xf32>
    %cst_4 = arith.constant 2.500000e-01 : f32
    %4 = vector.broadcast %cst_4 : f32 to vector<22x22xf32>
    %5 = arith.mulf %3, %4 : vector<22x22xf32>
    %cst_5 = arith.constant 0.000000e+00 : f32
    %6 = vector.broadcast %cst_5 : f32 to vector<16x16xf32>
    %7 = vector.extract_strided_slice %2 {offsets = [0, 0], sizes = [22, 16], strides = [1, 1]} : vector<22x22xf32> to vector<22x16xf32>
    %8 = vector.extract_strided_slice %5 {offsets = [0, 0], sizes = [22, 16], strides = [1, 1]} : vector<22x22xf32> to vector<22x16xf32>
    %c0_6 = arith.constant 0 : index
    %9 = memref.load %arg2[%c0_6] : memref<98xf32, #tpu.memory_space<smem>>
    %c49 = arith.constant 49 : index
    %10 = memref.load %arg2[%c49] : memref<98xf32, #tpu.memory_space<smem>>
    %11 = vector.extract_strided_slice %7 {offsets = [0, 0], sizes = [16, 16], strides = [1, 1]} : vector<22x16xf32> to vector<16x16xf32>
    %12 = vector.broadcast %9 : f32 to vector<16x16xf32>
    %13 = arith.mulf %11, %12 : vector<16x16xf32>
    %14 = arith.addf %6, %13 : vector<16x16xf32>
    %15 = vector.extract_strided_slice %8 {offsets = [0, 0], sizes = [16, 16], strides = [1, 1]} : vector<22x16xf32> to vector<16x16xf32>
    %16 = vector.broadcast %10 : f32 to vector<16x16xf32>
    %17 = arith.mulf %15, %16 : vector<16x16xf32>
    %18 = arith.addf %14, %17 : vector<16x16xf32>
    %c7 = arith.constant 7 : index
    %19 = memref.load %arg2[%c7] : memref<98xf32, #tpu.memory_space<smem>>
    %c56 = arith.constant 56 : index
    %20 = memref.load %arg2[%c56] : memref<98xf32, #tpu.memory_space<smem>>
    %21 = vector.extract_strided_slice %7 {offsets = [1, 0], sizes = [16, 16], strides = [1, 1]} : vector<22x16xf32> to vector<16x16xf32>
    %22 = vector.broadcast %19 : f32 to vector<16x16xf32>
    %23 = arith.mulf %21, %22 : vector<16x16xf32>
    %24 = arith.addf %18, %23 : vector<16x16xf32>
    %25 = vector.extract_strided_slice %8 {offsets = [1, 0], sizes = [16, 16], strides = [1, 1]} : vector<22x16xf32> to vector<16x16xf32>
    %26 = vector.broadcast %20 : f32 to vector<16x16xf32>
    %27 = arith.mulf %25, %26 : vector<16x16xf32>
    %28 = arith.addf %24, %27 : vector<16x16xf32>
    %c14 = arith.constant 14 : index
    %29 = memref.load %arg2[%c14] : memref<98xf32, #tpu.memory_space<smem>>
    %c63 = arith.constant 63 : index
    %30 = memref.load %arg2[%c63] : memref<98xf32, #tpu.memory_space<smem>>
    %31 = vector.extract_strided_slice %7 {offsets = [2, 0], sizes = [16, 16], strides = [1, 1]} : vector<22x16xf32> to vector<16x16xf32>
    %32 = vector.broadcast %29 : f32 to vector<16x16xf32>
    %33 = arith.mulf %31, %32 : vector<16x16xf32>
    %34 = arith.addf %28, %33 : vector<16x16xf32>
    %35 = vector.extract_strided_slice %8 {offsets = [2, 0], sizes = [16, 16], strides = [1, 1]} : vector<22x16xf32> to vector<16x16xf32>
    %36 = vector.broadcast %30 : f32 to vector<16x16xf32>
    %37 = arith.mulf %35, %36 : vector<16x16xf32>
    %38 = arith.addf %34, %37 : vector<16x16xf32>
    %c21 = arith.constant 21 : index
    %39 = memref.load %arg2[%c21] : memref<98xf32, #tpu.memory_space<smem>>
    %c70 = arith.constant 70 : index
    %40 = memref.load %arg2[%c70] : memref<98xf32, #tpu.memory_space<smem>>
    %41 = vector.extract_strided_slice %7 {offsets = [3, 0], sizes = [16, 16], strides = [1, 1]} : vector<22x16xf32> to vector<16x16xf32>
    %42 = vector.broadcast %39 : f32 to vector<16x16xf32>
    %43 = arith.mulf %41, %42 : vector<16x16xf32>
    %44 = arith.addf %38, %43 : vector<16x16xf32>
    %45 = vector.extract_strided_slice %8 {offsets = [3, 0], sizes = [16, 16], strides = [1, 1]} : vector<22x16xf32> to vector<16x16xf32>
    %46 = vector.broadcast %40 : f32 to vector<16x16xf32>
    %47 = arith.mulf %45, %46 : vector<16x16xf32>
    %48 = arith.addf %44, %47 : vector<16x16xf32>
    %c28 = arith.constant 28 : index
    %49 = memref.load %arg2[%c28] : memref<98xf32, #tpu.memory_space<smem>>
    %c77 = arith.constant 77 : index
    %50 = memref.load %arg2[%c77] : memref<98xf32, #tpu.memory_space<smem>>
    %51 = vector.extract_strided_slice %7 {offsets = [4, 0], sizes = [16, 16], strides = [1, 1]} : vector<22x16xf32> to vector<16x16xf32>
    %52 = vector.broadcast %49 : f32 to vector<16x16xf32>
    %53 = arith.mulf %51, %52 : vector<16x16xf32>
    %54 = arith.addf %48, %53 : vector<16x16xf32>
    %55 = vector.extract_strided_slice %8 {offsets = [4, 0], sizes = [16, 16], strides = [1, 1]} : vector<22x16xf32> to vector<16x16xf32>
    %56 = vector.broadcast %50 : f32 to vector<16x16xf32>
    %57 = arith.mulf %55, %56 : vector<16x16xf32>
    %58 = arith.addf %54, %57 : vector<16x16xf32>
    %c35 = arith.constant 35 : index
    %59 = memref.load %arg2[%c35] : memref<98xf32, #tpu.memory_space<smem>>
    %c84 = arith.constant 84 : index
    %60 = memref.load %arg2[%c84] : memref<98xf32, #tpu.memory_space<smem>>
    %61 = vector.extract_strided_slice %7 {offsets = [5, 0], sizes = [16, 16], strides = [1, 1]} : vector<22x16xf32> to vector<16x16xf32>
    %62 = vector.broadcast %59 : f32 to vector<16x16xf32>
    %63 = arith.mulf %61, %62 : vector<16x16xf32>
    %64 = arith.addf %58, %63 : vector<16x16xf32>
    %65 = vector.extract_strided_slice %8 {offsets = [5, 0], sizes = [16, 16], strides = [1, 1]} : vector<22x16xf32> to vector<16x16xf32>
    %66 = vector.broadcast %60 : f32 to vector<16x16xf32>
    %67 = arith.mulf %65, %66 : vector<16x16xf32>
    %68 = arith.addf %64, %67 : vector<16x16xf32>
    %c42 = arith.constant 42 : index
    %69 = memref.load %arg2[%c42] : memref<98xf32, #tpu.memory_space<smem>>
    %c91 = arith.constant 91 : index
    %70 = memref.load %arg2[%c91] : memref<98xf32, #tpu.memory_space<smem>>
    %71 = vector.extract_strided_slice %7 {offsets = [6, 0], sizes = [16, 16], strides = [1, 1]} : vector<22x16xf32> to vector<16x16xf32>
    %72 = vector.broadcast %69 : f32 to vector<16x16xf32>
    %73 = arith.mulf %71, %72 : vector<16x16xf32>
    %74 = arith.addf %68, %73 : vector<16x16xf32>
    %75 = vector.extract_strided_slice %8 {offsets = [6, 0], sizes = [16, 16], strides = [1, 1]} : vector<22x16xf32> to vector<16x16xf32>
    %76 = vector.broadcast %70 : f32 to vector<16x16xf32>
    %77 = arith.mulf %75, %76 : vector<16x16xf32>
    %78 = arith.addf %74, %77 : vector<16x16xf32>
    %79 = vector.extract_strided_slice %2 {offsets = [0, 1], sizes = [22, 16], strides = [1, 1]} : vector<22x22xf32> to vector<22x16xf32>
    %80 = vector.extract_strided_slice %5 {offsets = [0, 1], sizes = [22, 16], strides = [1, 1]} : vector<22x22xf32> to vector<22x16xf32>
    %c1 = arith.constant 1 : index
    %81 = memref.load %arg2[%c1] : memref<98xf32, #tpu.memory_space<smem>>
    %c50 = arith.constant 50 : index
    %82 = memref.load %arg2[%c50] : memref<98xf32, #tpu.memory_space<smem>>
    %83 = vector.extract_strided_slice %79 {offsets = [0, 0], sizes = [16, 16], strides = [1, 1]} : vector<22x16xf32> to vector<16x16xf32>
    %84 = vector.broadcast %81 : f32 to vector<16x16xf32>
    %85 = arith.mulf %83, %84 : vector<16x16xf32>
    %86 = arith.addf %78, %85 : vector<16x16xf32>
    %87 = vector.extract_strided_slice %80 {offsets = [0, 0], sizes = [16, 16], strides = [1, 1]} : vector<22x16xf32> to vector<16x16xf32>
    %88 = vector.broadcast %82 : f32 to vector<16x16xf32>
    %89 = arith.mulf %87, %88 : vector<16x16xf32>
    %90 = arith.addf %86, %89 : vector<16x16xf32>
    %c8 = arith.constant 8 : index
    %91 = memref.load %arg2[%c8] : memref<98xf32, #tpu.memory_space<smem>>
    %c57 = arith.constant 57 : index
    %92 = memref.load %arg2[%c57] : memref<98xf32, #tpu.memory_space<smem>>
    %93 = vector.extract_strided_slice %79 {offsets = [1, 0], sizes = [16, 16], strides = [1, 1]} : vector<22x16xf32> to vector<16x16xf32>
    %94 = vector.broadcast %91 : f32 to vector<16x16xf32>
    %95 = arith.mulf %93, %94 : vector<16x16xf32>
    %96 = arith.addf %90, %95 : vector<16x16xf32>
    %97 = vector.extract_strided_slice %80 {offsets = [1, 0], sizes = [16, 16], strides = [1, 1]} : vector<22x16xf32> to vector<16x16xf32>
    %98 = vector.broadcast %92 : f32 to vector<16x16xf32>
    %99 = arith.mulf %97, %98 : vector<16x16xf32>
    %100 = arith.addf %96, %99 : vector<16x16xf32>
    %c15 = arith.constant 15 : index
    %101 = memref.load %arg2[%c15] : memref<98xf32, #tpu.memory_space<smem>>
    %c64 = arith.constant 64 : index
    %102 = memref.load %arg2[%c64] : memref<98xf32, #tpu.memory_space<smem>>
    %103 = vector.extract_strided_slice %79 {offsets = [2, 0], sizes = [16, 16], strides = [1, 1]} : vector<22x16xf32> to vector<16x16xf32>
    %104 = vector.broadcast %101 : f32 to vector<16x16xf32>
    %105 = arith.mulf %103, %104 : vector<16x16xf32>
    %106 = arith.addf %100, %105 : vector<16x16xf32>
    %107 = vector.extract_strided_slice %80 {offsets = [2, 0], sizes = [16, 16], strides = [1, 1]} : vector<22x16xf32> to vector<16x16xf32>
    %108 = vector.broadcast %102 : f32 to vector<16x16xf32>
    %109 = arith.mulf %107, %108 : vector<16x16xf32>
    %110 = arith.addf %106, %109 : vector<16x16xf32>
    %c22 = arith.constant 22 : index
    %111 = memref.load %arg2[%c22] : memref<98xf32, #tpu.memory_space<smem>>
    %c71 = arith.constant 71 : index
    %112 = memref.load %arg2[%c71] : memref<98xf32, #tpu.memory_space<smem>>
    %113 = vector.extract_strided_slice %79 {offsets = [3, 0], sizes = [16, 16], strides = [1, 1]} : vector<22x16xf32> to vector<16x16xf32>
    %114 = vector.broadcast %111 : f32 to vector<16x16xf32>
    %115 = arith.mulf %113, %114 : vector<16x16xf32>
    %116 = arith.addf %110, %115 : vector<16x16xf32>
    %117 = vector.extract_strided_slice %80 {offsets = [3, 0], sizes = [16, 16], strides = [1, 1]} : vector<22x16xf32> to vector<16x16xf32>
    %118 = vector.broadcast %112 : f32 to vector<16x16xf32>
    %119 = arith.mulf %117, %118 : vector<16x16xf32>
    %120 = arith.addf %116, %119 : vector<16x16xf32>
    %c29 = arith.constant 29 : index
    %121 = memref.load %arg2[%c29] : memref<98xf32, #tpu.memory_space<smem>>
    %c78 = arith.constant 78 : index
    %122 = memref.load %arg2[%c78] : memref<98xf32, #tpu.memory_space<smem>>
    %123 = vector.extract_strided_slice %79 {offsets = [4, 0], sizes = [16, 16], strides = [1, 1]} : vector<22x16xf32> to vector<16x16xf32>
    %124 = vector.broadcast %121 : f32 to vector<16x16xf32>
    %125 = arith.mulf %123, %124 : vector<16x16xf32>
    %126 = arith.addf %120, %125 : vector<16x16xf32>
    %127 = vector.extract_strided_slice %80 {offsets = [4, 0], sizes = [16, 16], strides = [1, 1]} : vector<22x16xf32> to vector<16x16xf32>
    %128 = vector.broadcast %122 : f32 to vector<16x16xf32>
    %129 = arith.mulf %127, %128 : vector<16x16xf32>
    %130 = arith.addf %126, %129 : vector<16x16xf32>
    %c36 = arith.constant 36 : index
    %131 = memref.load %arg2[%c36] : memref<98xf32, #tpu.memory_space<smem>>
    %c85 = arith.constant 85 : index
    %132 = memref.load %arg2[%c85] : memref<98xf32, #tpu.memory_space<smem>>
    %133 = vector.extract_strided_slice %79 {offsets = [5, 0], sizes = [16, 16], strides = [1, 1]} : vector<22x16xf32> to vector<16x16xf32>
    %134 = vector.broadcast %131 : f32 to vector<16x16xf32>
    %135 = arith.mulf %133, %134 : vector<16x16xf32>
    %136 = arith.addf %130, %135 : vector<16x16xf32>
    %137 = vector.extract_strided_slice %80 {offsets = [5, 0], sizes = [16, 16], strides = [1, 1]} : vector<22x16xf32> to vector<16x16xf32>
    %138 = vector.broadcast %132 : f32 to vector<16x16xf32>
    %139 = arith.mulf %137, %138 : vector<16x16xf32>
    %140 = arith.addf %136, %139 : vector<16x16xf32>
    %c43 = arith.constant 43 : index
    %141 = memref.load %arg2[%c43] : memref<98xf32, #tpu.memory_space<smem>>
    %c92 = arith.constant 92 : index
    %142 = memref.load %arg2[%c92] : memref<98xf32, #tpu.memory_space<smem>>
    %143 = vector.extract_strided_slice %79 {offsets = [6, 0], sizes = [16, 16], strides = [1, 1]} : vector<22x16xf32> to vector<16x16xf32>
    %144 = vector.broadcast %141 : f32 to vector<16x16xf32>
    %145 = arith.mulf %143, %144 : vector<16x16xf32>
    %146 = arith.addf %140, %145 : vector<16x16xf32>
    %147 = vector.extract_strided_slice %80 {offsets = [6, 0], sizes = [16, 16], strides = [1, 1]} : vector<22x16xf32> to vector<16x16xf32>
    %148 = vector.broadcast %142 : f32 to vector<16x16xf32>
    %149 = arith.mulf %147, %148 : vector<16x16xf32>
    %150 = arith.addf %146, %149 : vector<16x16xf32>
    %151 = vector.extract_strided_slice %2 {offsets = [0, 2], sizes = [22, 16], strides = [1, 1]} : vector<22x22xf32> to vector<22x16xf32>
    %152 = vector.extract_strided_slice %5 {offsets = [0, 2], sizes = [22, 16], strides = [1, 1]} : vector<22x22xf32> to vector<22x16xf32>
    %c2 = arith.constant 2 : index
    %153 = memref.load %arg2[%c2] : memref<98xf32, #tpu.memory_space<smem>>
    %c51 = arith.constant 51 : index
    %154 = memref.load %arg2[%c51] : memref<98xf32, #tpu.memory_space<smem>>
    %155 = vector.extract_strided_slice %151 {offsets = [0, 0], sizes = [16, 16], strides = [1, 1]} : vector<22x16xf32> to vector<16x16xf32>
    %156 = vector.broadcast %153 : f32 to vector<16x16xf32>
    %157 = arith.mulf %155, %156 : vector<16x16xf32>
    %158 = arith.addf %150, %157 : vector<16x16xf32>
    %159 = vector.extract_strided_slice %152 {offsets = [0, 0], sizes = [16, 16], strides = [1, 1]} : vector<22x16xf32> to vector<16x16xf32>
    %160 = vector.broadcast %154 : f32 to vector<16x16xf32>
    %161 = arith.mulf %159, %160 : vector<16x16xf32>
    %162 = arith.addf %158, %161 : vector<16x16xf32>
    %c9 = arith.constant 9 : index
    %163 = memref.load %arg2[%c9] : memref<98xf32, #tpu.memory_space<smem>>
    %c58 = arith.constant 58 : index
    %164 = memref.load %arg2[%c58] : memref<98xf32, #tpu.memory_space<smem>>
    %165 = vector.extract_strided_slice %151 {offsets = [1, 0], sizes = [16, 16], strides = [1, 1]} : vector<22x16xf32> to vector<16x16xf32>
    %166 = vector.broadcast %163 : f32 to vector<16x16xf32>
    %167 = arith.mulf %165, %166 : vector<16x16xf32>
    %168 = arith.addf %162, %167 : vector<16x16xf32>
    %169 = vector.extract_strided_slice %152 {offsets = [1, 0], sizes = [16, 16], strides = [1, 1]} : vector<22x16xf32> to vector<16x16xf32>
    %170 = vector.broadcast %164 : f32 to vector<16x16xf32>
    %171 = arith.mulf %169, %170 : vector<16x16xf32>
    %172 = arith.addf %168, %171 : vector<16x16xf32>
    %c16 = arith.constant 16 : index
    %173 = memref.load %arg2[%c16] : memref<98xf32, #tpu.memory_space<smem>>
    %c65 = arith.constant 65 : index
    %174 = memref.load %arg2[%c65] : memref<98xf32, #tpu.memory_space<smem>>
    %175 = vector.extract_strided_slice %151 {offsets = [2, 0], sizes = [16, 16], strides = [1, 1]} : vector<22x16xf32> to vector<16x16xf32>
    %176 = vector.broadcast %173 : f32 to vector<16x16xf32>
    %177 = arith.mulf %175, %176 : vector<16x16xf32>
    %178 = arith.addf %172, %177 : vector<16x16xf32>
    %179 = vector.extract_strided_slice %152 {offsets = [2, 0], sizes = [16, 16], strides = [1, 1]} : vector<22x16xf32> to vector<16x16xf32>
    %180 = vector.broadcast %174 : f32 to vector<16x16xf32>
    %181 = arith.mulf %179, %180 : vector<16x16xf32>
    %182 = arith.addf %178, %181 : vector<16x16xf32>
    %c23 = arith.constant 23 : index
    %183 = memref.load %arg2[%c23] : memref<98xf32, #tpu.memory_space<smem>>
    %c72 = arith.constant 72 : index
    %184 = memref.load %arg2[%c72] : memref<98xf32, #tpu.memory_space<smem>>
    %185 = vector.extract_strided_slice %151 {offsets = [3, 0], sizes = [16, 16], strides = [1, 1]} : vector<22x16xf32> to vector<16x16xf32>
    %186 = vector.broadcast %183 : f32 to vector<16x16xf32>
    %187 = arith.mulf %185, %186 : vector<16x16xf32>
    %188 = arith.addf %182, %187 : vector<16x16xf32>
    %189 = vector.extract_strided_slice %152 {offsets = [3, 0], sizes = [16, 16], strides = [1, 1]} : vector<22x16xf32> to vector<16x16xf32>
    %190 = vector.broadcast %184 : f32 to vector<16x16xf32>
    %191 = arith.mulf %189, %190 : vector<16x16xf32>
    %192 = arith.addf %188, %191 : vector<16x16xf32>
    %c30 = arith.constant 30 : index
    %193 = memref.load %arg2[%c30] : memref<98xf32, #tpu.memory_space<smem>>
    %c79 = arith.constant 79 : index
    %194 = memref.load %arg2[%c79] : memref<98xf32, #tpu.memory_space<smem>>
    %195 = vector.extract_strided_slice %151 {offsets = [4, 0], sizes = [16, 16], strides = [1, 1]} : vector<22x16xf32> to vector<16x16xf32>
    %196 = vector.broadcast %193 : f32 to vector<16x16xf32>
    %197 = arith.mulf %195, %196 : vector<16x16xf32>
    %198 = arith.addf %192, %197 : vector<16x16xf32>
    %199 = vector.extract_strided_slice %152 {offsets = [4, 0], sizes = [16, 16], strides = [1, 1]} : vector<22x16xf32> to vector<16x16xf32>
    %200 = vector.broadcast %194 : f32 to vector<16x16xf32>
    %201 = arith.mulf %199, %200 : vector<16x16xf32>
    %202 = arith.addf %198, %201 : vector<16x16xf32>
    %c37 = arith.constant 37 : index
    %203 = memref.load %arg2[%c37] : memref<98xf32, #tpu.memory_space<smem>>
    %c86 = arith.constant 86 : index
    %204 = memref.load %arg2[%c86] : memref<98xf32, #tpu.memory_space<smem>>
    %205 = vector.extract_strided_slice %151 {offsets = [5, 0], sizes = [16, 16], strides = [1, 1]} : vector<22x16xf32> to vector<16x16xf32>
    %206 = vector.broadcast %203 : f32 to vector<16x16xf32>
    %207 = arith.mulf %205, %206 : vector<16x16xf32>
    %208 = arith.addf %202, %207 : vector<16x16xf32>
    %209 = vector.extract_strided_slice %152 {offsets = [5, 0], sizes = [16, 16], strides = [1, 1]} : vector<22x16xf32> to vector<16x16xf32>
    %210 = vector.broadcast %204 : f32 to vector<16x16xf32>
    %211 = arith.mulf %209, %210 : vector<16x16xf32>
    %212 = arith.addf %208, %211 : vector<16x16xf32>
    %c44 = arith.constant 44 : index
    %213 = memref.load %arg2[%c44] : memref<98xf32, #tpu.memory_space<smem>>
    %c93 = arith.constant 93 : index
    %214 = memref.load %arg2[%c93] : memref<98xf32, #tpu.memory_space<smem>>
    %215 = vector.extract_strided_slice %151 {offsets = [6, 0], sizes = [16, 16], strides = [1, 1]} : vector<22x16xf32> to vector<16x16xf32>
    %216 = vector.broadcast %213 : f32 to vector<16x16xf32>
    %217 = arith.mulf %215, %216 : vector<16x16xf32>
    %218 = arith.addf %212, %217 : vector<16x16xf32>
    %219 = vector.extract_strided_slice %152 {offsets = [6, 0], sizes = [16, 16], strides = [1, 1]} : vector<22x16xf32> to vector<16x16xf32>
    %220 = vector.broadcast %214 : f32 to vector<16x16xf32>
    %221 = arith.mulf %219, %220 : vector<16x16xf32>
    %222 = arith.addf %218, %221 : vector<16x16xf32>
    %223 = vector.extract_strided_slice %2 {offsets = [0, 3], sizes = [22, 16], strides = [1, 1]} : vector<22x22xf32> to vector<22x16xf32>
    %224 = vector.extract_strided_slice %5 {offsets = [0, 3], sizes = [22, 16], strides = [1, 1]} : vector<22x22xf32> to vector<22x16xf32>
    %c3 = arith.constant 3 : index
    %225 = memref.load %arg2[%c3] : memref<98xf32, #tpu.memory_space<smem>>
    %c52 = arith.constant 52 : index
    %226 = memref.load %arg2[%c52] : memref<98xf32, #tpu.memory_space<smem>>
    %227 = vector.extract_strided_slice %223 {offsets = [0, 0], sizes = [16, 16], strides = [1, 1]} : vector<22x16xf32> to vector<16x16xf32>
    %228 = vector.broadcast %225 : f32 to vector<16x16xf32>
    %229 = arith.mulf %227, %228 : vector<16x16xf32>
    %230 = arith.addf %222, %229 : vector<16x16xf32>
    %231 = vector.extract_strided_slice %224 {offsets = [0, 0], sizes = [16, 16], strides = [1, 1]} : vector<22x16xf32> to vector<16x16xf32>
    %232 = vector.broadcast %226 : f32 to vector<16x16xf32>
    %233 = arith.mulf %231, %232 : vector<16x16xf32>
    %234 = arith.addf %230, %233 : vector<16x16xf32>
    %c10 = arith.constant 10 : index
    %235 = memref.load %arg2[%c10] : memref<98xf32, #tpu.memory_space<smem>>
    %c59 = arith.constant 59 : index
    %236 = memref.load %arg2[%c59] : memref<98xf32, #tpu.memory_space<smem>>
    %237 = vector.extract_strided_slice %223 {offsets = [1, 0], sizes = [16, 16], strides = [1, 1]} : vector<22x16xf32> to vector<16x16xf32>
    %238 = vector.broadcast %235 : f32 to vector<16x16xf32>
    %239 = arith.mulf %237, %238 : vector<16x16xf32>
    %240 = arith.addf %234, %239 : vector<16x16xf32>
    %241 = vector.extract_strided_slice %224 {offsets = [1, 0], sizes = [16, 16], strides = [1, 1]} : vector<22x16xf32> to vector<16x16xf32>
    %242 = vector.broadcast %236 : f32 to vector<16x16xf32>
    %243 = arith.mulf %241, %242 : vector<16x16xf32>
    %244 = arith.addf %240, %243 : vector<16x16xf32>
    %c17 = arith.constant 17 : index
    %245 = memref.load %arg2[%c17] : memref<98xf32, #tpu.memory_space<smem>>
    %c66 = arith.constant 66 : index
    %246 = memref.load %arg2[%c66] : memref<98xf32, #tpu.memory_space<smem>>
    %247 = vector.extract_strided_slice %223 {offsets = [2, 0], sizes = [16, 16], strides = [1, 1]} : vector<22x16xf32> to vector<16x16xf32>
    %248 = vector.broadcast %245 : f32 to vector<16x16xf32>
    %249 = arith.mulf %247, %248 : vector<16x16xf32>
    %250 = arith.addf %244, %249 : vector<16x16xf32>
    %251 = vector.extract_strided_slice %224 {offsets = [2, 0], sizes = [16, 16], strides = [1, 1]} : vector<22x16xf32> to vector<16x16xf32>
    %252 = vector.broadcast %246 : f32 to vector<16x16xf32>
    %253 = arith.mulf %251, %252 : vector<16x16xf32>
    %254 = arith.addf %250, %253 : vector<16x16xf32>
    %c24 = arith.constant 24 : index
    %255 = memref.load %arg2[%c24] : memref<98xf32, #tpu.memory_space<smem>>
    %c73 = arith.constant 73 : index
    %256 = memref.load %arg2[%c73] : memref<98xf32, #tpu.memory_space<smem>>
    %257 = vector.extract_strided_slice %223 {offsets = [3, 0], sizes = [16, 16], strides = [1, 1]} : vector<22x16xf32> to vector<16x16xf32>
    %258 = vector.broadcast %255 : f32 to vector<16x16xf32>
    %259 = arith.mulf %257, %258 : vector<16x16xf32>
    %260 = arith.addf %254, %259 : vector<16x16xf32>
    %261 = vector.extract_strided_slice %224 {offsets = [3, 0], sizes = [16, 16], strides = [1, 1]} : vector<22x16xf32> to vector<16x16xf32>
    %262 = vector.broadcast %256 : f32 to vector<16x16xf32>
    %263 = arith.mulf %261, %262 : vector<16x16xf32>
    %264 = arith.addf %260, %263 : vector<16x16xf32>
    %c31 = arith.constant 31 : index
    %265 = memref.load %arg2[%c31] : memref<98xf32, #tpu.memory_space<smem>>
    %c80 = arith.constant 80 : index
    %266 = memref.load %arg2[%c80] : memref<98xf32, #tpu.memory_space<smem>>
    %267 = vector.extract_strided_slice %223 {offsets = [4, 0], sizes = [16, 16], strides = [1, 1]} : vector<22x16xf32> to vector<16x16xf32>
    %268 = vector.broadcast %265 : f32 to vector<16x16xf32>
    %269 = arith.mulf %267, %268 : vector<16x16xf32>
    %270 = arith.addf %264, %269 : vector<16x16xf32>
    %271 = vector.extract_strided_slice %224 {offsets = [4, 0], sizes = [16, 16], strides = [1, 1]} : vector<22x16xf32> to vector<16x16xf32>
    %272 = vector.broadcast %266 : f32 to vector<16x16xf32>
    %273 = arith.mulf %271, %272 : vector<16x16xf32>
    %274 = arith.addf %270, %273 : vector<16x16xf32>
    %c38 = arith.constant 38 : index
    %275 = memref.load %arg2[%c38] : memref<98xf32, #tpu.memory_space<smem>>
    %c87 = arith.constant 87 : index
    %276 = memref.load %arg2[%c87] : memref<98xf32, #tpu.memory_space<smem>>
    %277 = vector.extract_strided_slice %223 {offsets = [5, 0], sizes = [16, 16], strides = [1, 1]} : vector<22x16xf32> to vector<16x16xf32>
    %278 = vector.broadcast %275 : f32 to vector<16x16xf32>
    %279 = arith.mulf %277, %278 : vector<16x16xf32>
    %280 = arith.addf %274, %279 : vector<16x16xf32>
    %281 = vector.extract_strided_slice %224 {offsets = [5, 0], sizes = [16, 16], strides = [1, 1]} : vector<22x16xf32> to vector<16x16xf32>
    %282 = vector.broadcast %276 : f32 to vector<16x16xf32>
    %283 = arith.mulf %281, %282 : vector<16x16xf32>
    %284 = arith.addf %280, %283 : vector<16x16xf32>
    %c45 = arith.constant 45 : index
    %285 = memref.load %arg2[%c45] : memref<98xf32, #tpu.memory_space<smem>>
    %c94 = arith.constant 94 : index
    %286 = memref.load %arg2[%c94] : memref<98xf32, #tpu.memory_space<smem>>
    %287 = vector.extract_strided_slice %223 {offsets = [6, 0], sizes = [16, 16], strides = [1, 1]} : vector<22x16xf32> to vector<16x16xf32>
    %288 = vector.broadcast %285 : f32 to vector<16x16xf32>
    %289 = arith.mulf %287, %288 : vector<16x16xf32>
    %290 = arith.addf %284, %289 : vector<16x16xf32>
    %291 = vector.extract_strided_slice %224 {offsets = [6, 0], sizes = [16, 16], strides = [1, 1]} : vector<22x16xf32> to vector<16x16xf32>
    %292 = vector.broadcast %286 : f32 to vector<16x16xf32>
    %293 = arith.mulf %291, %292 : vector<16x16xf32>
    %294 = arith.addf %290, %293 : vector<16x16xf32>
    %295 = vector.extract_strided_slice %2 {offsets = [0, 4], sizes = [22, 16], strides = [1, 1]} : vector<22x22xf32> to vector<22x16xf32>
    %296 = vector.extract_strided_slice %5 {offsets = [0, 4], sizes = [22, 16], strides = [1, 1]} : vector<22x22xf32> to vector<22x16xf32>
    %c4 = arith.constant 4 : index
    %297 = memref.load %arg2[%c4] : memref<98xf32, #tpu.memory_space<smem>>
    %c53 = arith.constant 53 : index
    %298 = memref.load %arg2[%c53] : memref<98xf32, #tpu.memory_space<smem>>
    %299 = vector.extract_strided_slice %295 {offsets = [0, 0], sizes = [16, 16], strides = [1, 1]} : vector<22x16xf32> to vector<16x16xf32>
    %300 = vector.broadcast %297 : f32 to vector<16x16xf32>
    %301 = arith.mulf %299, %300 : vector<16x16xf32>
    %302 = arith.addf %294, %301 : vector<16x16xf32>
    %303 = vector.extract_strided_slice %296 {offsets = [0, 0], sizes = [16, 16], strides = [1, 1]} : vector<22x16xf32> to vector<16x16xf32>
    %304 = vector.broadcast %298 : f32 to vector<16x16xf32>
    %305 = arith.mulf %303, %304 : vector<16x16xf32>
    %306 = arith.addf %302, %305 : vector<16x16xf32>
    %c11 = arith.constant 11 : index
    %307 = memref.load %arg2[%c11] : memref<98xf32, #tpu.memory_space<smem>>
    %c60 = arith.constant 60 : index
    %308 = memref.load %arg2[%c60] : memref<98xf32, #tpu.memory_space<smem>>
    %309 = vector.extract_strided_slice %295 {offsets = [1, 0], sizes = [16, 16], strides = [1, 1]} : vector<22x16xf32> to vector<16x16xf32>
    %310 = vector.broadcast %307 : f32 to vector<16x16xf32>
    %311 = arith.mulf %309, %310 : vector<16x16xf32>
    %312 = arith.addf %306, %311 : vector<16x16xf32>
    %313 = vector.extract_strided_slice %296 {offsets = [1, 0], sizes = [16, 16], strides = [1, 1]} : vector<22x16xf32> to vector<16x16xf32>
    %314 = vector.broadcast %308 : f32 to vector<16x16xf32>
    %315 = arith.mulf %313, %314 : vector<16x16xf32>
    %316 = arith.addf %312, %315 : vector<16x16xf32>
    %c18 = arith.constant 18 : index
    %317 = memref.load %arg2[%c18] : memref<98xf32, #tpu.memory_space<smem>>
    %c67 = arith.constant 67 : index
    %318 = memref.load %arg2[%c67] : memref<98xf32, #tpu.memory_space<smem>>
    %319 = vector.extract_strided_slice %295 {offsets = [2, 0], sizes = [16, 16], strides = [1, 1]} : vector<22x16xf32> to vector<16x16xf32>
    %320 = vector.broadcast %317 : f32 to vector<16x16xf32>
    %321 = arith.mulf %319, %320 : vector<16x16xf32>
    %322 = arith.addf %316, %321 : vector<16x16xf32>
    %323 = vector.extract_strided_slice %296 {offsets = [2, 0], sizes = [16, 16], strides = [1, 1]} : vector<22x16xf32> to vector<16x16xf32>
    %324 = vector.broadcast %318 : f32 to vector<16x16xf32>
    %325 = arith.mulf %323, %324 : vector<16x16xf32>
    %326 = arith.addf %322, %325 : vector<16x16xf32>
    %c25 = arith.constant 25 : index
    %327 = memref.load %arg2[%c25] : memref<98xf32, #tpu.memory_space<smem>>
    %c74 = arith.constant 74 : index
    %328 = memref.load %arg2[%c74] : memref<98xf32, #tpu.memory_space<smem>>
    %329 = vector.extract_strided_slice %295 {offsets = [3, 0], sizes = [16, 16], strides = [1, 1]} : vector<22x16xf32> to vector<16x16xf32>
    %330 = vector.broadcast %327 : f32 to vector<16x16xf32>
    %331 = arith.mulf %329, %330 : vector<16x16xf32>
    %332 = arith.addf %326, %331 : vector<16x16xf32>
    %333 = vector.extract_strided_slice %296 {offsets = [3, 0], sizes = [16, 16], strides = [1, 1]} : vector<22x16xf32> to vector<16x16xf32>
    %334 = vector.broadcast %328 : f32 to vector<16x16xf32>
    %335 = arith.mulf %333, %334 : vector<16x16xf32>
    %336 = arith.addf %332, %335 : vector<16x16xf32>
    %c32 = arith.constant 32 : index
    %337 = memref.load %arg2[%c32] : memref<98xf32, #tpu.memory_space<smem>>
    %c81 = arith.constant 81 : index
    %338 = memref.load %arg2[%c81] : memref<98xf32, #tpu.memory_space<smem>>
    %339 = vector.extract_strided_slice %295 {offsets = [4, 0], sizes = [16, 16], strides = [1, 1]} : vector<22x16xf32> to vector<16x16xf32>
    %340 = vector.broadcast %337 : f32 to vector<16x16xf32>
    %341 = arith.mulf %339, %340 : vector<16x16xf32>
    %342 = arith.addf %336, %341 : vector<16x16xf32>
    %343 = vector.extract_strided_slice %296 {offsets = [4, 0], sizes = [16, 16], strides = [1, 1]} : vector<22x16xf32> to vector<16x16xf32>
    %344 = vector.broadcast %338 : f32 to vector<16x16xf32>
    %345 = arith.mulf %343, %344 : vector<16x16xf32>
    %346 = arith.addf %342, %345 : vector<16x16xf32>
    %c39 = arith.constant 39 : index
    %347 = memref.load %arg2[%c39] : memref<98xf32, #tpu.memory_space<smem>>
    %c88 = arith.constant 88 : index
    %348 = memref.load %arg2[%c88] : memref<98xf32, #tpu.memory_space<smem>>
    %349 = vector.extract_strided_slice %295 {offsets = [5, 0], sizes = [16, 16], strides = [1, 1]} : vector<22x16xf32> to vector<16x16xf32>
    %350 = vector.broadcast %347 : f32 to vector<16x16xf32>
    %351 = arith.mulf %349, %350 : vector<16x16xf32>
    %352 = arith.addf %346, %351 : vector<16x16xf32>
    %353 = vector.extract_strided_slice %296 {offsets = [5, 0], sizes = [16, 16], strides = [1, 1]} : vector<22x16xf32> to vector<16x16xf32>
    %354 = vector.broadcast %348 : f32 to vector<16x16xf32>
    %355 = arith.mulf %353, %354 : vector<16x16xf32>
    %356 = arith.addf %352, %355 : vector<16x16xf32>
    %c46 = arith.constant 46 : index
    %357 = memref.load %arg2[%c46] : memref<98xf32, #tpu.memory_space<smem>>
    %c95 = arith.constant 95 : index
    %358 = memref.load %arg2[%c95] : memref<98xf32, #tpu.memory_space<smem>>
    %359 = vector.extract_strided_slice %295 {offsets = [6, 0], sizes = [16, 16], strides = [1, 1]} : vector<22x16xf32> to vector<16x16xf32>
    %360 = vector.broadcast %357 : f32 to vector<16x16xf32>
    %361 = arith.mulf %359, %360 : vector<16x16xf32>
    %362 = arith.addf %356, %361 : vector<16x16xf32>
    %363 = vector.extract_strided_slice %296 {offsets = [6, 0], sizes = [16, 16], strides = [1, 1]} : vector<22x16xf32> to vector<16x16xf32>
    %364 = vector.broadcast %358 : f32 to vector<16x16xf32>
    %365 = arith.mulf %363, %364 : vector<16x16xf32>
    %366 = arith.addf %362, %365 : vector<16x16xf32>
    %367 = vector.extract_strided_slice %2 {offsets = [0, 5], sizes = [22, 16], strides = [1, 1]} : vector<22x22xf32> to vector<22x16xf32>
    %368 = vector.extract_strided_slice %5 {offsets = [0, 5], sizes = [22, 16], strides = [1, 1]} : vector<22x22xf32> to vector<22x16xf32>
    %c5 = arith.constant 5 : index
    %369 = memref.load %arg2[%c5] : memref<98xf32, #tpu.memory_space<smem>>
    %c54 = arith.constant 54 : index
    %370 = memref.load %arg2[%c54] : memref<98xf32, #tpu.memory_space<smem>>
    %371 = vector.extract_strided_slice %367 {offsets = [0, 0], sizes = [16, 16], strides = [1, 1]} : vector<22x16xf32> to vector<16x16xf32>
    %372 = vector.broadcast %369 : f32 to vector<16x16xf32>
    %373 = arith.mulf %371, %372 : vector<16x16xf32>
    %374 = arith.addf %366, %373 : vector<16x16xf32>
    %375 = vector.extract_strided_slice %368 {offsets = [0, 0], sizes = [16, 16], strides = [1, 1]} : vector<22x16xf32> to vector<16x16xf32>
    %376 = vector.broadcast %370 : f32 to vector<16x16xf32>
    %377 = arith.mulf %375, %376 : vector<16x16xf32>
    %378 = arith.addf %374, %377 : vector<16x16xf32>
    %c12 = arith.constant 12 : index
    %379 = memref.load %arg2[%c12] : memref<98xf32, #tpu.memory_space<smem>>
    %c61 = arith.constant 61 : index
    %380 = memref.load %arg2[%c61] : memref<98xf32, #tpu.memory_space<smem>>
    %381 = vector.extract_strided_slice %367 {offsets = [1, 0], sizes = [16, 16], strides = [1, 1]} : vector<22x16xf32> to vector<16x16xf32>
    %382 = vector.broadcast %379 : f32 to vector<16x16xf32>
    %383 = arith.mulf %381, %382 : vector<16x16xf32>
    %384 = arith.addf %378, %383 : vector<16x16xf32>
    %385 = vector.extract_strided_slice %368 {offsets = [1, 0], sizes = [16, 16], strides = [1, 1]} : vector<22x16xf32> to vector<16x16xf32>
    %386 = vector.broadcast %380 : f32 to vector<16x16xf32>
    %387 = arith.mulf %385, %386 : vector<16x16xf32>
    %388 = arith.addf %384, %387 : vector<16x16xf32>
    %c19 = arith.constant 19 : index
    %389 = memref.load %arg2[%c19] : memref<98xf32, #tpu.memory_space<smem>>
    %c68 = arith.constant 68 : index
    %390 = memref.load %arg2[%c68] : memref<98xf32, #tpu.memory_space<smem>>
    %391 = vector.extract_strided_slice %367 {offsets = [2, 0], sizes = [16, 16], strides = [1, 1]} : vector<22x16xf32> to vector<16x16xf32>
    %392 = vector.broadcast %389 : f32 to vector<16x16xf32>
    %393 = arith.mulf %391, %392 : vector<16x16xf32>
    %394 = arith.addf %388, %393 : vector<16x16xf32>
    %395 = vector.extract_strided_slice %368 {offsets = [2, 0], sizes = [16, 16], strides = [1, 1]} : vector<22x16xf32> to vector<16x16xf32>
    %396 = vector.broadcast %390 : f32 to vector<16x16xf32>
    %397 = arith.mulf %395, %396 : vector<16x16xf32>
    %398 = arith.addf %394, %397 : vector<16x16xf32>
    %c26 = arith.constant 26 : index
    %399 = memref.load %arg2[%c26] : memref<98xf32, #tpu.memory_space<smem>>
    %c75 = arith.constant 75 : index
    %400 = memref.load %arg2[%c75] : memref<98xf32, #tpu.memory_space<smem>>
    %401 = vector.extract_strided_slice %367 {offsets = [3, 0], sizes = [16, 16], strides = [1, 1]} : vector<22x16xf32> to vector<16x16xf32>
    %402 = vector.broadcast %399 : f32 to vector<16x16xf32>
    %403 = arith.mulf %401, %402 : vector<16x16xf32>
    %404 = arith.addf %398, %403 : vector<16x16xf32>
    %405 = vector.extract_strided_slice %368 {offsets = [3, 0], sizes = [16, 16], strides = [1, 1]} : vector<22x16xf32> to vector<16x16xf32>
    %406 = vector.broadcast %400 : f32 to vector<16x16xf32>
    %407 = arith.mulf %405, %406 : vector<16x16xf32>
    %408 = arith.addf %404, %407 : vector<16x16xf32>
    %c33 = arith.constant 33 : index
    %409 = memref.load %arg2[%c33] : memref<98xf32, #tpu.memory_space<smem>>
    %c82 = arith.constant 82 : index
    %410 = memref.load %arg2[%c82] : memref<98xf32, #tpu.memory_space<smem>>
    %411 = vector.extract_strided_slice %367 {offsets = [4, 0], sizes = [16, 16], strides = [1, 1]} : vector<22x16xf32> to vector<16x16xf32>
    %412 = vector.broadcast %409 : f32 to vector<16x16xf32>
    %413 = arith.mulf %411, %412 : vector<16x16xf32>
    %414 = arith.addf %408, %413 : vector<16x16xf32>
    %415 = vector.extract_strided_slice %368 {offsets = [4, 0], sizes = [16, 16], strides = [1, 1]} : vector<22x16xf32> to vector<16x16xf32>
    %416 = vector.broadcast %410 : f32 to vector<16x16xf32>
    %417 = arith.mulf %415, %416 : vector<16x16xf32>
    %418 = arith.addf %414, %417 : vector<16x16xf32>
    %c40 = arith.constant 40 : index
    %419 = memref.load %arg2[%c40] : memref<98xf32, #tpu.memory_space<smem>>
    %c89 = arith.constant 89 : index
    %420 = memref.load %arg2[%c89] : memref<98xf32, #tpu.memory_space<smem>>
    %421 = vector.extract_strided_slice %367 {offsets = [5, 0], sizes = [16, 16], strides = [1, 1]} : vector<22x16xf32> to vector<16x16xf32>
    %422 = vector.broadcast %419 : f32 to vector<16x16xf32>
    %423 = arith.mulf %421, %422 : vector<16x16xf32>
    %424 = arith.addf %418, %423 : vector<16x16xf32>
    %425 = vector.extract_strided_slice %368 {offsets = [5, 0], sizes = [16, 16], strides = [1, 1]} : vector<22x16xf32> to vector<16x16xf32>
    %426 = vector.broadcast %420 : f32 to vector<16x16xf32>
    %427 = arith.mulf %425, %426 : vector<16x16xf32>
    %428 = arith.addf %424, %427 : vector<16x16xf32>
    %c47 = arith.constant 47 : index
    %429 = memref.load %arg2[%c47] : memref<98xf32, #tpu.memory_space<smem>>
    %c96 = arith.constant 96 : index
    %430 = memref.load %arg2[%c96] : memref<98xf32, #tpu.memory_space<smem>>
    %431 = vector.extract_strided_slice %367 {offsets = [6, 0], sizes = [16, 16], strides = [1, 1]} : vector<22x16xf32> to vector<16x16xf32>
    %432 = vector.broadcast %429 : f32 to vector<16x16xf32>
    %433 = arith.mulf %431, %432 : vector<16x16xf32>
    %434 = arith.addf %428, %433 : vector<16x16xf32>
    %435 = vector.extract_strided_slice %368 {offsets = [6, 0], sizes = [16, 16], strides = [1, 1]} : vector<22x16xf32> to vector<16x16xf32>
    %436 = vector.broadcast %430 : f32 to vector<16x16xf32>
    %437 = arith.mulf %435, %436 : vector<16x16xf32>
    %438 = arith.addf %434, %437 : vector<16x16xf32>
    %439 = vector.extract_strided_slice %2 {offsets = [0, 6], sizes = [22, 16], strides = [1, 1]} : vector<22x22xf32> to vector<22x16xf32>
    %440 = vector.extract_strided_slice %5 {offsets = [0, 6], sizes = [22, 16], strides = [1, 1]} : vector<22x22xf32> to vector<22x16xf32>
    %c6 = arith.constant 6 : index
    %441 = memref.load %arg2[%c6] : memref<98xf32, #tpu.memory_space<smem>>
    %c55 = arith.constant 55 : index
    %442 = memref.load %arg2[%c55] : memref<98xf32, #tpu.memory_space<smem>>
    %443 = vector.extract_strided_slice %439 {offsets = [0, 0], sizes = [16, 16], strides = [1, 1]} : vector<22x16xf32> to vector<16x16xf32>
    %444 = vector.broadcast %441 : f32 to vector<16x16xf32>
    %445 = arith.mulf %443, %444 : vector<16x16xf32>
    %446 = arith.addf %438, %445 : vector<16x16xf32>
    %447 = vector.extract_strided_slice %440 {offsets = [0, 0], sizes = [16, 16], strides = [1, 1]} : vector<22x16xf32> to vector<16x16xf32>
    %448 = vector.broadcast %442 : f32 to vector<16x16xf32>
    %449 = arith.mulf %447, %448 : vector<16x16xf32>
    %450 = arith.addf %446, %449 : vector<16x16xf32>
    %c13 = arith.constant 13 : index
    %451 = memref.load %arg2[%c13] : memref<98xf32, #tpu.memory_space<smem>>
    %c62 = arith.constant 62 : index
    %452 = memref.load %arg2[%c62] : memref<98xf32, #tpu.memory_space<smem>>
    %453 = vector.extract_strided_slice %439 {offsets = [1, 0], sizes = [16, 16], strides = [1, 1]} : vector<22x16xf32> to vector<16x16xf32>
    %454 = vector.broadcast %451 : f32 to vector<16x16xf32>
    %455 = arith.mulf %453, %454 : vector<16x16xf32>
    %456 = arith.addf %450, %455 : vector<16x16xf32>
    %457 = vector.extract_strided_slice %440 {offsets = [1, 0], sizes = [16, 16], strides = [1, 1]} : vector<22x16xf32> to vector<16x16xf32>
    %458 = vector.broadcast %452 : f32 to vector<16x16xf32>
    %459 = arith.mulf %457, %458 : vector<16x16xf32>
    %460 = arith.addf %456, %459 : vector<16x16xf32>
    %c20 = arith.constant 20 : index
    %461 = memref.load %arg2[%c20] : memref<98xf32, #tpu.memory_space<smem>>
    %c69 = arith.constant 69 : index
    %462 = memref.load %arg2[%c69] : memref<98xf32, #tpu.memory_space<smem>>
    %463 = vector.extract_strided_slice %439 {offsets = [2, 0], sizes = [16, 16], strides = [1, 1]} : vector<22x16xf32> to vector<16x16xf32>
    %464 = vector.broadcast %461 : f32 to vector<16x16xf32>
    %465 = arith.mulf %463, %464 : vector<16x16xf32>
    %466 = arith.addf %460, %465 : vector<16x16xf32>
    %467 = vector.extract_strided_slice %440 {offsets = [2, 0], sizes = [16, 16], strides = [1, 1]} : vector<22x16xf32> to vector<16x16xf32>
    %468 = vector.broadcast %462 : f32 to vector<16x16xf32>
    %469 = arith.mulf %467, %468 : vector<16x16xf32>
    %470 = arith.addf %466, %469 : vector<16x16xf32>
    %c27 = arith.constant 27 : index
    %471 = memref.load %arg2[%c27] : memref<98xf32, #tpu.memory_space<smem>>
    %c76 = arith.constant 76 : index
    %472 = memref.load %arg2[%c76] : memref<98xf32, #tpu.memory_space<smem>>
    %473 = vector.extract_strided_slice %439 {offsets = [3, 0], sizes = [16, 16], strides = [1, 1]} : vector<22x16xf32> to vector<16x16xf32>
    %474 = vector.broadcast %471 : f32 to vector<16x16xf32>
    %475 = arith.mulf %473, %474 : vector<16x16xf32>
    %476 = arith.addf %470, %475 : vector<16x16xf32>
    %477 = vector.extract_strided_slice %440 {offsets = [3, 0], sizes = [16, 16], strides = [1, 1]} : vector<22x16xf32> to vector<16x16xf32>
    %478 = vector.broadcast %472 : f32 to vector<16x16xf32>
    %479 = arith.mulf %477, %478 : vector<16x16xf32>
    %480 = arith.addf %476, %479 : vector<16x16xf32>
    %c34 = arith.constant 34 : index
    %481 = memref.load %arg2[%c34] : memref<98xf32, #tpu.memory_space<smem>>
    %c83 = arith.constant 83 : index
    %482 = memref.load %arg2[%c83] : memref<98xf32, #tpu.memory_space<smem>>
    %483 = vector.extract_strided_slice %439 {offsets = [4, 0], sizes = [16, 16], strides = [1, 1]} : vector<22x16xf32> to vector<16x16xf32>
    %484 = vector.broadcast %481 : f32 to vector<16x16xf32>
    %485 = arith.mulf %483, %484 : vector<16x16xf32>
    %486 = arith.addf %480, %485 : vector<16x16xf32>
    %487 = vector.extract_strided_slice %440 {offsets = [4, 0], sizes = [16, 16], strides = [1, 1]} : vector<22x16xf32> to vector<16x16xf32>
    %488 = vector.broadcast %482 : f32 to vector<16x16xf32>
    %489 = arith.mulf %487, %488 : vector<16x16xf32>
    %490 = arith.addf %486, %489 : vector<16x16xf32>
    %c41 = arith.constant 41 : index
    %491 = memref.load %arg2[%c41] : memref<98xf32, #tpu.memory_space<smem>>
    %c90 = arith.constant 90 : index
    %492 = memref.load %arg2[%c90] : memref<98xf32, #tpu.memory_space<smem>>
    %493 = vector.extract_strided_slice %439 {offsets = [5, 0], sizes = [16, 16], strides = [1, 1]} : vector<22x16xf32> to vector<16x16xf32>
    %494 = vector.broadcast %491 : f32 to vector<16x16xf32>
    %495 = arith.mulf %493, %494 : vector<16x16xf32>
    %496 = arith.addf %490, %495 : vector<16x16xf32>
    %497 = vector.extract_strided_slice %440 {offsets = [5, 0], sizes = [16, 16], strides = [1, 1]} : vector<22x16xf32> to vector<16x16xf32>
    %498 = vector.broadcast %492 : f32 to vector<16x16xf32>
    %499 = arith.mulf %497, %498 : vector<16x16xf32>
    %500 = arith.addf %496, %499 : vector<16x16xf32>
    %c48 = arith.constant 48 : index
    %501 = memref.load %arg2[%c48] : memref<98xf32, #tpu.memory_space<smem>>
    %c97 = arith.constant 97 : index
    %502 = memref.load %arg2[%c97] : memref<98xf32, #tpu.memory_space<smem>>
    %503 = vector.extract_strided_slice %439 {offsets = [6, 0], sizes = [16, 16], strides = [1, 1]} : vector<22x16xf32> to vector<16x16xf32>
    %504 = vector.broadcast %501 : f32 to vector<16x16xf32>
    %505 = arith.mulf %503, %504 : vector<16x16xf32>
    %506 = arith.addf %500, %505 : vector<16x16xf32>
    %507 = vector.extract_strided_slice %440 {offsets = [6, 0], sizes = [16, 16], strides = [1, 1]} : vector<22x16xf32> to vector<16x16xf32>
    %508 = vector.broadcast %502 : f32 to vector<16x16xf32>
    %509 = arith.mulf %507, %508 : vector<16x16xf32>
    %510 = arith.addf %506, %509 : vector<16x16xf32>
    %c0_7 = arith.constant 0 : index
    %511 = memref.load %arg3[%c0_7] : memref<1xf32, #tpu.memory_space<smem>>
    %512 = vector.broadcast %511 : f32 to vector<16x16xf32>
    %513 = arith.addf %510, %512 : vector<16x16xf32>
    %cst_8 = arith.constant 0.000000e+00 : f32
    %514 = vector.broadcast %cst_8 : f32 to vector<16x16xf32>
    %515 = arith.subf %514, %513 : vector<16x16xf32>
    %516 = math.exp %515 : vector<16x16xf32>
    %cst_9 = arith.constant 1.000000e+00 : f32
    %517 = vector.broadcast %cst_9 : f32 to vector<16x16xf32>
    %518 = arith.addf %517, %516 : vector<16x16xf32>
    %cst_10 = arith.constant 1.000000e+00 : f32
    %519 = vector.broadcast %cst_10 : f32 to vector<16x16xf32>
    %520 = arith.divf %519, %518 : vector<16x16xf32>
    %521 = vector.extract_strided_slice %1 {offsets = [0, 3, 3], sizes = [4, 16, 16], strides = [1, 1, 1]} : vector<4x22x22xf32> to vector<4x16x16xf32>
    %522 = vector.shape_cast %520 : vector<16x16xf32> to vector<1x16x16xf32>
    %523 = vector.broadcast %522 : vector<1x16x16xf32> to vector<4x16x16xf32>
    %524 = arith.mulf %521, %523 : vector<4x16x16xf32>
    %525 = vector.shape_cast %524 : vector<4x16x16xf32> to vector<1x4x16x16xf32>
    %c0_11 = arith.constant 0 : index
    %c0_12 = arith.constant 0 : index
    %c0_13 = arith.constant 0 : index
    %c0_14 = arith.constant 0 : index
    %526 = vector.load %arg4[%c0_11, %c0_12, %c0_13, %c0_14] : memref<1x4x16x16xf32, #tpu.memory_space<vmem>>, vector<1x4x16x16xf32>
    tpu.vector_store %arg4[%c0_11, %c0_12, %c0_13, %c0_14], %525 {strides = array<i32>} : memref<1x4x16x16xf32, #tpu.memory_space<vmem>>, vector<1x4x16x16xf32>,
    return
  }
  func.func @transform_0(%arg0: i32) -> (i32, i32, i32, i32) {
    %c0_i32 = arith.constant 0 : i32
    %c0_i32_0 = arith.constant 0 : i32
    %c0_i32_1 = arith.constant 0 : i32
    %c0_i32_2 = arith.constant 0 : i32
    return %arg0, %c0_i32, %c0_i32_0, %c0_i32_1 : i32, i32, i32, i32
  }
  func.func @transform_1(%arg0: i32) -> i32 {
    %c0_i32 = arith.constant 0 : i32
    %c0_i32_0 = arith.constant 0 : i32
    return %c0_i32 : i32
  }
  func.func @transform_2(%arg0: i32) -> i32 {
    %c0_i32 = arith.constant 0 : i32
    %c0_i32_0 = arith.constant 0 : i32
    return %c0_i32 : i32
  }
  func.func @transform_3(%arg0: i32) -> (i32, i32, i32, i32) {
    %c0_i32 = arith.constant 0 : i32
    %c0_i32_0 = arith.constant 0 : i32
    %c0_i32_1 = arith.constant 0 : i32
    %c0_i32_2 = arith.constant 0 : i32
    return %arg0, %c0_i32, %c0_i32_0, %c0_i32_1 : i32, i32, i32, i32
  }
}

</mosaic_0001>

<bundles_post_ra>
// kernel: tpu_custom_call.1
= control target key start
LH: loop header
LB: loop body
LE: loop exit
PB: predicated region body
PF: predicated region fallthrough
CT: control target
= control target key end

     0   :  { %s4120_s0 = inlined_call_operand.vmem [shape: f32[2,4,22,22], index: 0, kind: input, shape index: {}]   ;;  %s4121_s1 = inlined_call_operand.vmem [shape: f32[98], index: 1, kind: input, shape index: {}]   ;;  %s4122_s2 = inlined_call_operand.<no memory space> [shape: f32[1], index: 2, kind: input, shape index: {}]   ;;  %s4123_s3 = inlined_call_operand.hbm [shape: f32[2,4,16,16], index: 3, kind: output, shape index: {}]  }
   0x1   :  { %8 = sst [smem:[#allocation2]] %s4122_s2 }
   0x2   :  { %9 = vsyncpa [#allocation5], 0 }
   0x3   :  { %10 = vsyncpa [#allocation4], 0 }
   0x4   :  { %12 = vsyncpa [#allocation4 + $0x1], 0  ;;  %s2646_s14 = smov 0   ;;  %s2648_s15 = smov 0  }
   0x5   :  { %s2650_s16 = smov 0   ;;  %s2652_s17 = smov 0  }
   0x6 LB: > { %s2667_s2 = sadd.s32 4294967295, %s2610_s17   ;;  %s2338_s18 = sadd.s32 4294967294, %s2610_s17   ;;  %s2610_s17 = sphi %s2652_s17, %s4165_s17   ;;  %s2606_s16 = sphi %s2650_s16, %s4164_s16   ;;  %s2602_s15 = sphi %s2648_s15, %s4163_s15   ;;  %s2598_s14 = sphi %s2646_s14, %s4162_s14  }
   0x7   : > { %s2671_s19 = sadd.s32 1, %s2610_s17   ;;  %s93_s20 = sadd.s32 1, %s2606_s16 }
   0x8   : > { %s90_s21 = ssub.s32 %s2610_s17, %s2671_s19  ;;  %p103_p0 = scmp.ne.s32.totalorder %s2606_s16, %s2602_s15 }
   0x9   : > { %p91_p1 = scmp.eq.s32.totalorder %s90_s21, 0  ;;  %p104_p2 = scmp.eq.s32.totalorder %s2667_s2, 1 }
   0xa   : > { %p109_p3 = scmp.ne.s32.totalorder %s2602_s15, %s2598_s14  ;;  %p110_p4 = scmp.eq.s32.totalorder %s2338_s18, 1 }
   0xb   : > { %s2682_s22 = scalar_select %p91_p1, %s2606_s16, %s93_s20  }
   0xc   : > { %p2684_p5 = por %p104_p2, %p103_p0  ;;  %p2688_p6 = por %p110_p4, %p109_p3 }
   0xd   : > { %p2339_p7 = scmp.ge.s32.totalorder %s2610_s17, 1  ;;  %p117_p8 = scmp.lt.s32.totalorder %s2610_s17, 3 }
   0xe   : > { %p2464_p9 = scmp.eq.s32.totalorder %s2667_s2, 0  ;;  %s130_s28 = sshll.u32 %s4121_s1, 4  ;;  %s131_s28 = int_to_ptr.vmem [resolvable:$true] %s130_s28 }
   0xf   : > { %p2695_p10 = pnand %p2339_p7, %p117_p8  ;;  %s2529_s29 = scalar_lea.vmem %s131_s28, 16 }
  0x10   : > { %p2530_p13 = scmp.ne.s32.totalorder %s131_s28, %s2529_s29  ;;  %p2537_p3 = scmp.lt.s32.totalorder %s131_s28, %s131_s28 }
  0x11   : > { %p2456_p11 = pneg %p2695_p10  ;;  %p2538_p4 = scmp.lt.s32.totalorder %s2529_s29, %s2529_s29 }
  0x13   : > { %p2457_p12 = pnand %p2464_p9, %p2456_p11  ;;  %p2539_p7 = por %p2538_p4, %p2537_p3 }
  0x15   : > { %p2531_p0 = pneg %p2457_p12 }
  0x17   : > { %p2532_p1 = pnand %p2531_p0, %p2530_p13 }
  0x19   : > { %p2533_p2 = pneg %p2532_p1 }
  0x1b   : > { %p2540_p8 = pnand %p2539_p7, %p2533_p2 }
  0x1d   : > { %2543 = shalt.err (!%p2540_p8)
}
  0x1e   : > { %s2612_s30 = smov [#allocation3]   ;;  %154 = sbr.rel (%p2695_p10) target bundleno = 807 (0x327), region = 32 }
  0x1f   : > { %2459 = dma.vmem_to_smem (!%p2457_p12), %s131_s28, 16, %s2612_s30, [#allocation5]  }
  0x25   : > { %2589 = dma.done.wait (%p2464_p9), [#allocation5], 16  }
  0x26   : > { %2591 = vsyncadd (%p2464_p9), [#allocation5], 4294967280 }
  0x27   : > { %160 = sfence }
  0x28   : > { %p179_p11 = scmp.lt.s32.totalorder %s2667_s2, 1  ;;  %s2713_s4 = sld [smem:[#allocation3 + $0x1]]  ;;  %vm196_vm0 = vcmask 179200   ;;  %vm211_vm1 = vcmask 177152   ;;  %vm264_vm2 = vcmask 1046528   ;;  %vm299_vm3 = vcmask 1045504  }
  0x29   : > { %s2361_s5 = sld [smem:[#allocation3 + $0x8]]  ;;  %s2716_s8 = sld [smem:[#allocation3 + $0xf]]  ;;  %vm334_vm4 = vcmask 1044480   ;;  %vm369_vm5 = vcmask 1043456   ;;  %vm404_vm6 = vcmask 1042432   ;;  %vm439_vm7 = vcmask 1041408  }
  0x2a   : > { %s180_s6 = scalar_select %p179_p11, %s2667_s2, 1  ;;  %vm2235_vm8 = vcmask 130051   ;;  %vm2239_vm9 = vcmask 124928   ;;  %vm2237_vm10 = vcmask 130048  }
  0x2b   : > { %s2754_s12 = sld [smem:[#allocation3 + $0x32]]  ;;  %s2760_s13 = sld [smem:[#allocation3 + $0x39]] }
  0x2c   : > { %s2449_s7 = smul.u32 96, %s180_s6  ;;  %s2769_s18 = sld [smem:[#allocation3 + $0x40]] }
  0x2d   : > { %s2613_s20 = smov 127   ;;  %s2778_s21 = sld [smem:[#allocation3 + $0x16]] }
  0x2e   : > { %s2721_s11 = scalar_lea.vmem %s4120_s0, %s2449_s7  ;;  %v467_v3 = vstv %s2713_s4  ;;  %s2787_s25 = sld [smem:[#allocation3 + $0x47]] }
  0x2f   : > { %v184_v0 = vld [vmem:[%s2721_s11] sm:$0xff]  ;;  %v185_v1 = vld [vmem:[%s2721_s11 + $0x8] sm:$0xff]  ;;  %v187_v2 = vld [vmem:[%s2721_s11 + $0x18] sm:$0xff]  ;;  %v495_v10 = vstv %s2361_s5  ;;  %s2367_s26 = sld [smem:[#allocation3 + $0x1d]]  ;;  %s2368_s27 = sld [smem:[#allocation3 + $0x4e]] }
  0x30   : > { %v188_v4 = vld [vmem:[%s2721_s11 + $0x20] sm:$0xff]  ;;  %v190_v5 = vld [vmem:[%s2721_s11 + $0x30] sm:$0xff]  ;;  %v191_v6 = vld [vmem:[%s2721_s11 + $0x38] sm:$0xff]  ;;  %v197_v7 = vsel %vm196_vm0, %v184_v0, -inf  ;;  %v198_v8 = vsel %vm196_vm0, %v187_v2, -inf  ;;  %v204_v9 = vsel %vm196_vm0, %v185_v1, -inf  ;;  %v537_v32 = vstv %s2716_s8 }
  0x31   : > { %v193_v11 = vld [vmem:[%s2721_s11 + $0x48] sm:$0xff]  ;;  %v194_v12 = vld [vmem:[%s2721_s11 + $0x50] sm:$0xff]  ;;  %v199_v13 = vsel %vm196_vm0, %v190_v5, -inf  ;;  %v205_v14 = vsel %vm196_vm0, %v188_v4, -inf  ;;  %v206_v15 = vsel %vm196_vm0, %v191_v6, -inf  ;;  %v219_v16 = vsel %vm196_vm0, %v184_v0, 0.0 }
  0x32   : > { %v200_v17 = vmax.f32 %v197_v7, %v199_v13  ;;  %v201_v18 = vsel %vm196_vm0, %v193_v11, -inf  ;;  %v207_v19 = vmax.f32 %v204_v9, %v206_v15  ;;  %v208_v20 = vsel %vm196_vm0, %v194_v12, -inf  ;;  %v186_v21 = vld [vmem:[%s2721_s11 + $0x10] sm:$0x3f]  ;;  %v189_v22 = vld [vmem:[%s2721_s11 + $0x28] sm:$0x3f] }
  0x33   : > { %v202_v23 = vmax.f32 %v198_v8, %v201_v18  ;;  %v209_v24 = vmax.f32 %v205_v14, %v208_v20  ;;  %v220_v25 = vsel %vm196_vm0, %v187_v2, 0.0  ;;  %v192_v26 = vld [vmem:[%s2721_s11 + $0x40] sm:$0x3f]  ;;  %v2746_v27 = vld [vmem:[%s2721_s11 + $0x58] sm:$0x3f]  ;;  %v212_v28 = vsel %vm211_vm1, %v186_v21, -inf }
  0x34   : > { %v213_v29 = vsel %vm211_vm1, %v189_v22, -inf  ;;  %v214_v30 = vsel %vm211_vm1, %v192_v26, -inf  ;;  %v216_v31 = vsel %vm211_vm1, %v2746_v27, -inf  ;;  %v221_v37 = vadd.f32 %v220_v25, %v219_v16  ;;  %s2369_s28 = sld [smem:[#allocation3 + $0x24]]  ;;  %s2370_s29 = sld [smem:[#allocation3 + $0x55]] }
  0x35   : > { %v2756_v33 = vmax.f32 %v200_v17, %v202_v23  ;;  %v2758_v34 = vmax.f32 %v207_v19, %v209_v24  ;;  %v215_v35 = vmax.f32 %v212_v28, %v214_v30  ;;  %v217_v36 = vmax.f32 %v213_v29, %v216_v31  ;;  %s2371_s30 = sld [smem:[#allocation3 + $0x2b]]  ;;  %s2372_s4 = sld [smem:[#allocation3 + $0x5c]] }
  0x36   : > { %v222_v38 = vsel %vm196_vm0, %v190_v5, 0.0  ;;  %v224_v39 = vsel %vm196_vm0, %v193_v11, 0.0  ;;  %v226_v51 = vsel %vm196_vm0, %v185_v1, 0.0  ;;  %v227_v57 = vsel %vm196_vm0, %v188_v4, 0.0  ;;  %s2869_s5 = sld [smem:[#allocation3 + $0x2]]  ;;  %s2375_s6 = sld [smem:[#allocation3 + $0x9]] }
  0x37   : > { %v468_v40 = vmul.f32 %v467_v3, %v2756_v33  ;;  %v469_v41 = vmul.f32 %v467_v3, %v2758_v34  ;;  %v2766_v42 = vmax.f32 %v215_v35, %v217_v36  ;;  %v497_v43 = vmul.f32 %v495_v10, %v2758_v34  ;;  %s2876_s7 = sld [smem:[#allocation3 + $0x33]]  ;;  %s2376_s8 = sld [smem:[#allocation3 + $0x3a]] }
  0x38   : > { %v539_v44 = vmul.f32 %v537_v32, %v2758_v34  ;;  %v496_v45 = vmul.f32 %v495_v10, %v2756_v33  ;;  %v223_v46 = vadd.f32 %v222_v38, %v221_v37  ;;  %v538_v47 = vmul.f32 %v537_v32, %v2756_v33  ;;  %s2377_s9 = sld [smem:[#allocation3 + $0x10]]  ;;  %s2378_s10 = sld [smem:[#allocation3 + $0x41]] }
  0x39   : > { %472 = vrot.lane.b32.xlu0 %v468_v40, %s2613_s20  ;;  %v498_v48 = vmul.f32 %v495_v10, %v2766_v42  ;;  %v503_v49 = vrot.slane %v497_v43, 1  ;;  %v540_v50 = vmul.f32 %v537_v32, %v2766_v42  ;;  %v229_v58 = vsel %vm196_vm0, %v191_v6, 0.0 }
  0x3a   : > { %v545_v52 = vrot.slane %v539_v44, 2  ;;  %v502_v53 = vrot.slane %v496_v45, 1  ;;  %v225_v54 = vadd.f32 %v224_v39, %v223_v46  ;;  %v480_v59 = vstv %s2754_s12  ;;  %s2614_s12 = smov 126  }
  0x3b   : > { %v505_v55 = vrot.slane %v498_v48, 1  ;;  %v547_v56 = vrot.slane %v540_v50, 2  ;;  %v228_v60 = vadd.f32 %v227_v57, %v226_v51  ;;  %v544_v62 = vrot.slane %v538_v47, 2 }
  0x3c   : > { %v231_v63 = vsel %vm196_vm0, %v194_v12, 0.0  ;;  %v515_v0 = vstv %s2760_s13  ;;  %v504_v1 = vsel %vm264_vm2, %v502_v53, %v503_v49  ;;  %v2791_v2 = vmul.f32 0.25, %v225_v54  ;;  %s2379_s13 = sld [smem:[#allocation3 + $0x17]] }
  0x3d   : > { %v506_v61 = vsel %vm264_vm2, %v503_v49, %v505_v55  ;;  %474 = vrot.lane.b32.xlu0 %v469_v41, %s2613_s20  ;;  %v230_v3 = vadd.f32 %v229_v58, %v228_v60  ;;  %v233_v4 = vsel %vm211_vm1, %v186_v21, 0.0  ;;  %v548_v5 = vsel %vm299_vm3, %v545_v52, %v547_v56 }
  0x3e   : > { %509 = vrot.lane.b32.xlu1 %v506_v61, %s2613_s20  ;;  %v234_v6 = vsel %vm211_vm1, %v189_v22, 0.0  ;;  %v236_v7 = vsel %vm211_vm1, %v192_v26, 0.0  ;;  %v557_v8 = vstv %s2769_s18  ;;  %v516_v10 = vmul.f32 %v515_v0, %v2791_v2  ;;  %s2380_s18 = sld [smem:[#allocation3 + $0x48]] }
  0x3f   : > { %v232_v9 = vadd.f32 %v231_v63, %v230_v3  ;;  %v235_v11 = vadd.f32 %v234_v6, %v233_v4  ;;  %v546_v12 = vsel %vm299_vm3, %v544_v62, %v545_v52  ;;  %v238_v13 = vsel %vm211_vm1, %v2746_v27, 0.0 }
  0x40   : > { %v558_v14 = vmul.f32 %v557_v8, %v2791_v2  ;;  %v481_v15 = vmul.f32 %v480_v59, %v2791_v2  ;;  %v579_v18 = vstv %s2778_s21  ;;  %v522_v20 = vrot.slane %v516_v10, 1  ;;  %s2382_s21 = sld [smem:[#allocation3 + $0x4f]] }
  0x41   : > { %507 = vrot.lane.b32.xlu0 %v504_v1, %s2613_s20  ;;  %v2806_v16 = vmul.f32 0.25, %v232_v9  ;;  %v237_v17 = vadd.f32 %v236_v7, %v235_v11  ;;  %v580_v24 = vmul.f32 %v579_v18, %v2756_v33  ;;  %v581_v25 = vmul.f32 %v579_v18, %v2758_v34 }
  0x42   : > { %551 = vrot.lane.b32.xlu1 %v548_v5, %s2613_s20  ;;  %v564_v23 = vrot.slane %v558_v14, 2  ;;  %v599_v26 = vstv %s2787_s25  ;;  %v621_v38 = vstv %s2367_s26  ;;  %v582_v45 = vmul.f32 %v579_v18, %v2766_v42  ;;  %s2383_s25 = sld [smem:[#allocation3 + $0x25]]  ;;  %s2384_s26 = sld [smem:[#allocation3 + $0x56]] }
  0x43   : > { %v517_v19 = vmul.f32 %v515_v0, %v2806_v16  ;;  %v239_v21 = vadd.f32 %v238_v13, %v237_v17  ;;  %v559_v22 = vmul.f32 %v557_v8, %v2806_v16  ;;  %v482_v27 = vmul.f32 %v480_v59, %v2806_v16 }
  0x44   : > { %v586_v36 = vrot.slane %v580_v24, 3  ;;  %v600_v37 = vmul.f32 %v599_v26, %v2791_v2  ;;  %v587_v41 = vrot.slane %v581_v25, 3  ;;  %v601_v43 = vmul.f32 %v599_v26, %v2806_v16 }
  0x45   : > { %549 = vrot.lane.b32.xlu0 %v546_v12, %s2613_s20  ;;  %v523_v28 = vrot.slane %v517_v19, 1  ;;  %v2817_v29 = vmul.f32 0.25, %v239_v21  ;;  %v565_v30 = vrot.slane %v559_v22, 2  ;;  %v622_v48 = vmul.f32 %v621_v38, %v2756_v33 }
  0x46   : > { %485 = vrot.lane.b32.xlu1 %v481_v15, %s2613_s20  ;;  %v606_v47 = vrot.slane %v600_v37, 3  ;;  %v588_v49 = vsel %vm334_vm4, %v586_v36, %v587_v41  ;;  %v607_v50 = vrot.slane %v601_v43, 3  ;;  %v623_v51 = vmul.f32 %v621_v38, %v2758_v34 }
  0x47   : > { %v524_v31 = vsel %vm264_vm2, %v522_v20, %v523_v28  ;;  %v518_v32 = vmul.f32 %v515_v0, %v2817_v29  ;;  %v560_v35 = vmul.f32 %v557_v8, %v2817_v29  ;;  %v566_v40 = vsel %vm299_vm3, %v564_v23, %v565_v30 }
  0x48   : > { %v641_v52 = vstv %s2368_s27  ;;  %v589_v54 = vrot.slane %v582_v45, 3  ;;  %v602_v55 = vmul.f32 %v599_v26, %v2817_v29  ;;  %v608_v58 = vsel %vm334_vm4, %v606_v47, %v607_v50  ;;  %s2385_s27 = sld [smem:[#allocation3 + $0x2c]] }
  0x49   : > { %527 = vrot.lane.b32.xlu0 %v524_v31, %s2613_s20  ;;  %v525_v39 = vrot.slane %v518_v32, 1  ;;  %v567_v44 = vrot.slane %v560_v35, 2  ;;  %v642_v56 = vmul.f32 %v641_v52, %v2791_v2  ;;  %v643_v57 = vmul.f32 %v641_v52, %v2806_v16 }
  0x4a   : > { %487 = vrot.lane.b32.xlu1 %v482_v27, %s2613_s20  ;;  %v628_v59 = vrot.slane %v622_v48, 4  ;;  %v629_v60 = vrot.slane %v623_v51, 4  ;;  %v590_v61 = vsel %vm334_vm4, %v587_v41, %v589_v54  ;;  %v609_v62 = vrot.slane %v602_v55, 3 }
  0x4b   : > { %v526_v46 = vsel %vm264_vm2, %v523_v28, %v525_v39  ;;  %v568_v53 = vsel %vm299_vm3, %v565_v30, %v567_v44  ;;  %v624_v63 = vmul.f32 %v621_v38, %v2766_v42  ;;  %v663_v0 = vstv %s2369_s28  ;;  %s2386_s28 = sld [smem:[#allocation3 + $0x5d]] }
  0x4c   : > { %v648_v1 = vrot.slane %v642_v56, 4  ;;  %v649_v3 = vrot.slane %v643_v57, 4  ;;  %v630_v4 = vsel %vm369_vm5, %v628_v59, %v629_v60  ;;  %v664_v5 = vmul.f32 %v663_v0, %v2756_v33 }
  0x4d   : > { %569 = vrot.lane.b32.xlu0 %v566_v40, %s2613_s20  ;;  %v665_v6 = vmul.f32 %v663_v0, %v2758_v34  ;;  %v610_v7 = vsel %vm334_vm4, %v607_v50, %v609_v62  ;;  %v631_v8 = vrot.slane %v624_v63, 4  ;;  %v644_v9 = vmul.f32 %v641_v52, %v2817_v29 }
  0x4e   : > { %529 = vrot.lane.b32.xlu1 %v526_v46, %s2613_s20  ;;  %v683_v10 = vstv %s2370_s29  ;;  %v650_v11 = vsel %vm369_vm5, %v648_v1, %v649_v3  ;;  %v705_v12 = vstv %s2371_s30  ;;  %v670_v13 = vrot.slane %v664_v5, 5  ;;  %s2967_s29 = sld [smem:[#allocation3 + $0x3]]  ;;  %s2389_s30 = sld [smem:[#allocation3 + $0xa]] }
  0x4f   : > { %v671_v14 = vrot.slane %v665_v6, 5  ;;  %v684_v15 = vmul.f32 %v683_v10, %v2791_v2  ;;  %v685_v17 = vmul.f32 %v683_v10, %v2806_v16  ;;  %v632_v18 = vsel %vm369_vm5, %v629_v60, %v631_v8 }
  0x50   : > { %v651_v19 = vrot.slane %v644_v9, 4  ;;  %v666_v20 = vmul.f32 %v663_v0, %v2766_v42  ;;  %v706_v21 = vmul.f32 %v705_v12, %v2756_v33  ;;  %v707_v25 = vmul.f32 %v705_v12, %v2758_v34 }
  0x51   : > { %591 = vrot.lane.b32.xlu0 %v588_v49, %s2613_s20  ;;  %v672_v22 = vsel %vm404_vm6, %v670_v13, %v671_v14  ;;  %v690_v23 = vrot.slane %v684_v15, 5  ;;  %v691_v24 = vrot.slane %v685_v17, 5  ;;  %v686_v28 = vmul.f32 %v683_v10, %v2817_v29 }
  0x52   : > { %571 = vrot.lane.b32.xlu1 %v568_v53, %s2613_s20  ;;  %v652_v26 = vsel %vm369_vm5, %v649_v3, %v651_v19  ;;  %v673_v27 = vrot.slane %v666_v20, 5  ;;  %v725_v30 = vstv %s2372_s4  ;;  %v712_v31 = vrot.slane %v706_v21, 6  ;;  %s2974_s4 = sld [smem:[#allocation3 + $0x34]] }
  0x53   : > { %v692_v32 = vsel %vm404_vm6, %v690_v23, %v691_v24  ;;  %v713_v35 = vrot.slane %v707_v25, 6  ;;  %v726_v36 = vmul.f32 %v725_v30, %v2791_v2  ;;  %v727_v37 = vmul.f32 %v725_v30, %v2806_v16 }
  0x54   : > { %v674_v38 = vsel %vm404_vm6, %v671_v14, %v673_v27  ;;  %v693_v39 = vrot.slane %v686_v28, 5  ;;  %v708_v40 = vmul.f32 %v705_v12, %v2766_v42  ;;  %v728_v47 = vmul.f32 %v725_v30, %v2817_v29 }
  0x55   : > { %611 = vrot.lane.b32.xlu0 %v608_v58, %s2613_s20  ;;  %v714_v41 = vsel %vm439_vm7, %v712_v31, %v713_v35  ;;  %v732_v43 = vrot.slane %v726_v36, 6  ;;  %v733_v44 = vrot.slane %v727_v37, 6  ;;  %v747_v49 = vstv %s2869_s5  ;;  %s2390_s5 = sld [smem:[#allocation3 + $0x3b]] }
  0x56   : > { %593 = vrot.lane.b32.xlu1 %v590_v61, %s2613_s20  ;;  %v694_v45 = vsel %vm404_vm6, %v691_v24, %v693_v39  ;;  %v715_v46 = vrot.slane %v708_v40, 6  ;;  %v735_v51 = vrot.slane %v728_v47, 6  ;;  %v775_v52 = vstv %s2375_s6  ;;  %s2982_s6 = sld [smem:[#allocation3]] }
  0x57   : > { %v734_v48 = vsel %vm439_vm7, %v732_v43, %v733_v44  ;;  %v748_v53 = vmul.f32 %v747_v49, %v2756_v33  ;;  %v760_v54 = vstv %s2876_s7  ;;  %v776_v55 = vmul.f32 %v775_v52, %v2756_v33  ;;  %s2985_s7 = sld [smem:[#allocation3 + $0x31]] }
  0x58   : > { %v716_v50 = vsel %vm439_vm7, %v713_v35, %v715_v46  ;;  %v777_v56 = vmul.f32 %v775_v52, %v2758_v34  ;;  %v736_v57 = vsel %vm439_vm7, %v733_v44, %v735_v51  ;;  %v795_v58 = vstv %s2376_s8  ;;  %s2391_s8 = sld [smem:[#allocation3 + $0x11]] }
  0x59   : > { %633 = vrot.lane.b32.xlu0 %v630_v4, %s2613_s20  ;;  %v749_v59 = vmul.f32 %v747_v49, %v2758_v34  ;;  %v761_v60 = vmul.f32 %v760_v54, %v2791_v2  ;;  %v817_v61 = vstv %s2377_s9  ;;  %v782_v62 = vrot.slane %v776_v55, 1  ;;  %s2347_s9 = sld [smem:[#allocation3 + $0x7]] }
  0x5a   : > { %613 = vrot.lane.b32.xlu1 %v610_v7, %s2613_s20  ;;  %v783_v63 = vrot.slane %v777_v56, 1  ;;  %v796_v0 = vmul.f32 %v795_v58, %v2791_v2  ;;  %v797_v1 = vmul.f32 %v795_v58, %v2806_v16  ;;  %v778_v3 = vmul.f32 %v775_v52, %v2766_v42 }
  0x5b   : > { %v762_v4 = vmul.f32 %v760_v54, %v2806_v16  ;;  %v818_v5 = vmul.f32 %v817_v61, %v2756_v33  ;;  %v819_v6 = vmul.f32 %v817_v61, %v2758_v34  ;;  %v837_v10 = vstv %s2378_s10  ;;  %s2348_s10 = sld [smem:[#allocation3 + $0x38]] }
  0x5c   : > { %v784_v7 = vsel %vm264_vm2, %v782_v62, %v783_v63  ;;  %v802_v8 = vrot.slane %v796_v0, 1  ;;  %v803_v9 = vrot.slane %v797_v1, 1  ;;  %v798_v12 = vmul.f32 %v795_v58, %v2817_v29 }
  0x5d   : > { %653 = vrot.lane.b32.xlu0 %v650_v11, %s2613_s20  ;;  %v785_v11 = vrot.slane %v778_v3, 1  ;;  %v824_v13 = vrot.slane %v818_v5, 2  ;;  %v825_v14 = vrot.slane %v819_v6, 2  ;;  %v838_v15 = vmul.f32 %v837_v10, %v2791_v2 }
  0x5e   : > { %635 = vrot.lane.b32.xlu1 %v632_v18, %s2613_s20  ;;  %v804_v17 = vsel %vm264_vm2, %v802_v8, %v803_v9  ;;  %v839_v18 = vmul.f32 %v837_v10, %v2806_v16  ;;  %v805_v20 = vrot.slane %v798_v12, 1  ;;  %v820_v21 = vmul.f32 %v817_v61, %v2766_v42 }
  0x5f   : > { %v786_v19 = vsel %vm264_vm2, %v783_v63, %v785_v11  ;;  %v826_v23 = vsel %vm299_vm3, %v824_v13, %v825_v14  ;;  %v844_v24 = vrot.slane %v838_v15, 2  ;;  %v879_v28 = vstv %s2380_s18  ;;  %s2392_s18 = sld [smem:[#allocation3 + $0x42]] }
  0x60   : > { %v845_v25 = vrot.slane %v839_v18, 2  ;;  %v806_v30 = vsel %vm264_vm2, %v803_v9, %v805_v20  ;;  %v827_v31 = vrot.slane %v820_v21, 2  ;;  %v880_v35 = vmul.f32 %v879_v28, %v2791_v2 }
  0x61   : > { %675 = vrot.lane.b32.xlu0 %v672_v22, %s2613_s20  ;;  %v859_v22 = vstv %s2379_s13  ;;  %v881_v36 = vmul.f32 %v879_v28, %v2806_v16  ;;  %v963_v8 = vstv %s2384_s26  ;;  %v985_v18 = vstv %s2385_s27  ;;  %s2349_s13 = sld [smem:[#allocation3 + $0xe]]  ;;  %s3024_s27 = sld [smem:[#allocation3 + $0x49]] }
  0x62   : > { %655 = vrot.lane.b32.xlu1 %v652_v26, %s2613_s20  ;;  %v860_v26 = vmul.f32 %v859_v22, %v2756_v33  ;;  %v861_v27 = vmul.f32 %v859_v22, %v2758_v34  ;;  %v846_v37 = vsel %vm299_vm3, %v844_v24, %v845_v25  ;;  %v828_v40 = vsel %vm299_vm3, %v825_v14, %v827_v31  ;;  %s3017_s26 = sld [smem:[#allocation3 + $0x46]] }
  0x63   : > { %v862_v43 = vmul.f32 %v859_v22, %v2766_v42  ;;  %v887_v46 = vrot.slane %v881_v36, 3  ;;  %v964_v12 = vmul.f32 %v963_v8, %v2791_v2  ;;  %v965_v13 = vmul.f32 %v963_v8, %v2806_v16 }
  0x64   : > { %v867_v39 = vrot.slane %v861_v27, 3  ;;  %v1005_v20 = vstv %s2386_s28  ;;  %v987_v24 = vmul.f32 %v985_v18, %v2758_v34  ;;  %v966_v27 = vmul.f32 %v963_v8, %v2817_v29  ;;  %s3077_s28 = sld [smem:[#allocation3 + $0x1f]] }
  0x65   : > { %695 = vrot.lane.b32.xlu0 %v692_v32, %s2613_s20  ;;  %v840_v32 = vmul.f32 %v837_v10, %v2817_v29  ;;  %v869_v52 = vrot.slane %v862_v43, 3  ;;  %v970_v21 = vrot.slane %v964_v12, 5  ;;  %v971_v22 = vrot.slane %v965_v13, 5 }
  0x66   : > { %677 = vrot.lane.b32.xlu1 %v674_v38, %s2613_s20  ;;  %v866_v38 = vrot.slane %v860_v26, 3 }
  0x68   : > { %v868_v47 = vsel %vm334_vm4, %v866_v38, %v867_v39  ;;  %v988_v38 = vmul.f32 %v985_v18, %v2766_v42 }
  0x69   : > { %717 = vrot.lane.b32.xlu0 %v714_v41, %s2613_s20  ;;  %v847_v41 = vrot.slane %v840_v32, 2  ;;  %v993_v32 = vrot.slane %v987_v24, 6 }
  0x6a   : > { %697 = vrot.lane.b32.xlu1 %v694_v45, %s2613_s20  ;;  %v886_v45 = vrot.slane %v880_v35, 3  ;;  %v1007_v35 = vmul.f32 %v1005_v20, %v2806_v16 }
  0x6b   : > { %v848_v51 = vsel %vm299_vm3, %v845_v25, %v847_v41 }
  0x6c   : > { %v888_v54 = vsel %vm334_vm4, %v886_v45, %v887_v46  ;;  %v1013_v41 = vrot.slane %v1007_v35, 6  ;;  %v1008_v45 = vmul.f32 %v1005_v20, %v2817_v29 }
  0x6d   : > { %737 = vrot.lane.b32.xlu0 %v734_v48, %s2613_s20 }
  0x6e   : > { %719 = vrot.lane.b32.xlu1 %v716_v50, %s2613_s20  ;;  %v921_v50 = vstv %s2382_s21  ;;  %s2615_s21 = smov 125  }
  0x6f   : > { %v922_v55 = vmul.f32 %v921_v50, %v2791_v2  ;;  %v923_v58 = vmul.f32 %v921_v50, %v2806_v16 }
  0x71   : > { %752 = vrot.lane.b32.xlu0 %v748_v53, %s2614_s12  ;;  %v882_v53 = vmul.f32 %v879_v28, %v2817_v29  ;;  %v928_v3 = vrot.slane %v922_v55, 4  ;;  %v1006_v28 = vmul.f32 %v1005_v20, %v2791_v2 }
  0x72   : > { %739 = vrot.lane.b32.xlu1 %v736_v57, %s2613_s20  ;;  %s2381_s20 = sld [smem:[#allocation3 + $0x1e]] }
  0x73   : > { %v889_v61 = vrot.slane %v882_v53, 3 }
  0x75   : > { %765 = vrot.lane.b32.xlu0 %v761_v60, %s2614_s12  ;;  %v870_v60 = vsel %vm334_vm4, %v867_v39, %v869_v52  ;;  %v890_v5 = vsel %vm334_vm4, %v887_v46, %v889_v61 }
  0x76   : > { %754 = vrot.lane.b32.xlu1 %v749_v59, %s2614_s12  ;;  %v943_v59 = vstv %s2383_s25  ;;  %s3007_s25 = sld [smem:[#allocation3 + $0x18]] }
  0x77   : > { %v944_v63 = vmul.f32 %v943_v59, %v2756_v33  ;;  %v945_v0 = vmul.f32 %v943_v59, %v2758_v34 }
  0x78   : > { %v901_v44 = vstv %s2381_s20  ;;  %s2994_s20 = sld [smem:[#allocation3 + $0x3f]] }
  0x79   : > { %787 = vrot.lane.b32.xlu0 %v784_v7, %s2614_s12  ;;  %v902_v48 = vmul.f32 %v901_v44, %v2756_v33  ;;  %v903_v49 = vmul.f32 %v901_v44, %v2758_v34  ;;  %v904_v62 = vmul.f32 %v901_v44, %v2766_v42  ;;  %v924_v7 = vmul.f32 %v921_v50, %v2817_v29 }
  0x7a   : > { %767 = vrot.lane.b32.xlu1 %v762_v4, %s2614_s12  ;;  %v929_v4 = vrot.slane %v923_v58, 4  ;;  %v950_v9 = vrot.slane %v944_v63, 5  ;;  %v951_v10 = vrot.slane %v945_v0, 5  ;;  %v995_v44 = vrot.slane %v988_v38, 6 }
  0x7b   : > { %v908_v56 = vrot.slane %v902_v48, 4  ;;  %v909_v57 = vrot.slane %v903_v49, 4  ;;  %v911_v6 = vrot.slane %v904_v62, 4  ;;  %v931_v15 = vrot.slane %v924_v7, 4 }
  0x7c   : > { %v930_v11 = vsel %vm369_vm5, %v928_v3, %v929_v4  ;;  %v1055_v48 = vstv %s2389_s30  ;;  %v996_v49 = vsel %vm439_vm7, %v993_v32, %v995_v44  ;;  %v1015_v50 = vrot.slane %v1008_v45, 6  ;;  %s3093_s30 = sld [smem:[#allocation3 + $0x4d]] }
  0x7d   : > { %807 = vrot.lane.b32.xlu0 %v804_v17, %s2614_s12  ;;  %v910_v1 = vsel %vm369_vm5, %v908_v56, %v909_v57  ;;  %v912_v14 = vsel %vm369_vm5, %v909_v57, %v911_v6  ;;  %v946_v17 = vmul.f32 %v943_v59, %v2766_v42  ;;  %v932_v25 = vsel %vm369_vm5, %v929_v4, %v931_v15 }
  0x7e   : > { %789 = vrot.lane.b32.xlu1 %v786_v19, %s2614_s12  ;;  %v952_v19 = vsel %vm404_vm6, %v950_v9, %v951_v10  ;;  %v1056_v52 = vmul.f32 %v1055_v48, %v2756_v33  ;;  %v1057_v53 = vmul.f32 %v1055_v48, %v2758_v34  ;;  %v1016_v55 = vsel %vm439_vm7, %v1013_v41, %v1015_v50 }
  0x7f   : > { %v953_v26 = vrot.slane %v946_v17, 5  ;;  %v1075_v56 = vstv %s2390_s5  ;;  %v1058_v0 = vmul.f32 %v1055_v48, %v2766_v42  ;;  %v245_v3 = vstv %s2982_s6  ;;  %s3143_s5 = sld [smem:[#allocation3 + $0x26]] }
  0x80   : > { %v1062_v58 = vrot.slane %v1056_v52, 1  ;;  %v1063_v59 = vrot.slane %v1057_v53, 1  ;;  %v1076_v61 = vmul.f32 %v1075_v56, %v2791_v2  ;;  %v3002_v62 = vmul.f32 %v1075_v56, %v2806_v16  ;;  %s3254_s6 = sld [smem:[#allocation3 + $0x5e]] }
  0x81   : > { %829 = vrot.lane.b32.xlu0 %v826_v23, %s2614_s12  ;;  %v986_v23 = vmul.f32 %v985_v18, %v2756_v33  ;;  %v954_v36 = vsel %vm404_vm6, %v951_v10, %v953_v26  ;;  %v250_v4 = vstv %s2985_s7  ;;  %v3013_v6 = vstv %s2348_s10  ;;  %s3185_s10 = sld [smem:[#allocation3 + $0x57]]  ;;  %s3310_s7 = sld [smem:[#allocation3 + $0x2a]] }
  0x82   : > { %809 = vrot.lane.b32.xlu1 %v806_v30, %s2614_s12  ;;  %v972_v30 = vsel %vm404_vm6, %v970_v21, %v971_v22  ;;  %v3019_v7 = vstv %s2349_s13  ;;  %v1064_v9 = vsel %vm264_vm2, %v1062_v58, %v1063_v59  ;;  %v1117_v10 = vstv %s2392_s18  ;;  %s3214_s13 = sld [smem:[#allocation3 + $0x2d]]  ;;  %s3327_s18 = sld [smem:[#allocation3 + $0x4]] }
  0x83   : > { %v992_v31 = vrot.slane %v986_v23, 6  ;;  %v1083_v12 = vrot.slane %v3002_v62, 1  ;;  %v1065_v17 = vrot.slane %v1058_v0, 1  ;;  %v1078_v18 = vmul.f32 %v1075_v56, %v2817_v29 }
  0x84   : > { %v3045_v21 = vstv %s2994_s20  ;;  %v275_v24 = vmul.f32 %v3013_v6, %v2791_v2  ;;  %v3062_v26 = vmul.f32 %v3019_v7, %v2758_v34  ;;  %v3089_v44 = vstv %s3017_s26  ;;  %s3337_s20 = sld [smem:[#allocation3 + $0xb]] }
  0x85   : > { %849 = vrot.lane.b32.xlu0 %v846_v37, %s2614_s12  ;;  %v973_v37 = vrot.slane %v966_v27, 5  ;;  %v994_v39 = vsel %vm439_vm7, %v992_v31, %v993_v32  ;;  %v1118_v27 = vmul.f32 %v1117_v10, %v2791_v2  ;;  %v3070_v32 = vmul.f32 %v1117_v10, %v2806_v16  ;;  %s3366_s26 = sld [smem:[#allocation3 + $0x5b]] }
  0x86   : > { %831 = vrot.lane.b32.xlu1 %v828_v40, %s2614_s12  ;;  %v1012_v40 = vrot.slane %v1006_v28, 6  ;;  %v1120_v58 = vmul.f32 %v1117_v10, %v2817_v29 }
  0x87   : > { %v974_v43 = vsel %vm404_vm6, %v971_v22, %v973_v37  ;;  %v3050_v22 = vmul.f32 %v245_v3, %v2756_v33  ;;  %v1085_v37 = vrot.slane %v1078_v18, 1  ;;  %v1124_v48 = vrot.slane %v1118_v27, 2 }
  0x88   : > { %v1014_v46 = vsel %vm439_vm7, %v1012_v40, %v1013_v41  ;;  %v310_v40 = vmul.f32 %v3045_v21, %v2791_v2  ;;  %v3083_v41 = vmul.f32 %v3045_v21, %v2806_v16 }
  0x89   : > { %871 = vrot.lane.b32.xlu0 %v868_v47, %s2614_s12  ;;  %v1027_v47 = vstv %s2967_s29  ;;  %s3091_s29 = sld [smem:[#allocation3 + $0x1c]]  ;;  %v1086_v56 = vsel %vm264_vm2, %v1083_v12, %v1085_v37 }
  0x8a   : > { %851 = vrot.lane.b32.xlu1 %v848_v51, %s2614_s12  ;;  %v1028_v51 = vmul.f32 %v1027_v47, %v2756_v33 }
  0x8d   : > { %891 = vrot.lane.b32.xlu0 %v888_v54, %s2614_s12  ;;  %v1040_v54 = vstv %s2974_s4  ;;  %s3107_s4 = sld [smem:[#allocation3 + $0x50]] }
  0x8e   : > { %873 = vrot.lane.b32.xlu1 %v870_v60, %s2614_s12  ;;  %v1041_v57 = vmul.f32 %v1040_v54, %v2791_v2  ;;  %v1029_v60 = vmul.f32 %v1027_v47, %v2758_v34  ;;  %v1042_v8 = vmul.f32 %v1040_v54, %v2806_v16 }
  0x91   : > { %913 = vrot.lane.b32.xlu0 %v910_v1, %s2614_s12  ;;  %v1097_v1 = vstv %s2391_s8  ;;  %s3169_s8 = sld [smem:[#allocation3 + $0x23]] }
  0x92   : > { %893 = vrot.lane.b32.xlu1 %v890_v5, %s2614_s12  ;;  %v3011_v5 = vstv %s2347_s9  ;;  %v1098_v13 = vmul.f32 %v1097_v1, %v2756_v33  ;;  %v1100_v38 = vmul.f32 %v1097_v1, %v2766_v42  ;;  %s3171_s9 = sld [smem:[#allocation3 + $0x54]] }
  0x93   : > { %v3042_v20 = vmul.f32 %v3011_v5, %v2758_v34  ;;  %v258_v37 = vmul.f32 %v3011_v5, %v2756_v33 }
  0x95   : > { %933 = vrot.lane.b32.xlu0 %v930_v11, %s2614_s12  ;;  %v1082_v11 = vrot.slane %v1076_v61, 1  ;;  %v4126_v54 = vrot.slane %v3042_v20, 1  ;;  %v4124_v61 = vrot.slane %v3083_v41, 2 }
  0x96   : > { %915 = vrot.lane.b32.xlu1 %v912_v14, %s2614_s12  ;;  %v3030_v14 = vmul.f32 %v1097_v1, %v2758_v34  ;;  %v3124_v1 = vmul.f32 %v3089_v44, %v2791_v2 }
  0x97   : > { %v1084_v28 = vsel %vm264_vm2, %v1082_v11, %v1083_v12 }
  0x98   : > { %v1105_v31 = vrot.slane %v3030_v14, 2 }
  0x99   : > { %955 = vrot.lane.b32.xlu0 %v952_v19, %s2614_s12  ;;  %v3038_v19 = vmul.f32 %v250_v4, %v2791_v2 }
  0x9a   : > { %935 = vrot.lane.b32.xlu1 %v932_v25, %s2614_s12  ;;  %v3058_v25 = vmul.f32 %v3013_v6, %v2806_v16 }
  0x9c   : > { %v4125_v47 = vrot.slane %v3058_v25, 1 }
  0x9d   : > { %975 = vrot.lane.b32.xlu0 %v972_v30, %s2614_s12  ;;  %v1104_v30 = vrot.slane %v1098_v13, 2 }
  0x9e   : > { %957 = vrot.lane.b32.xlu1 %v954_v36, %s2614_s12  ;;  %v1066_v36 = vsel %vm264_vm2, %v1063_v59, %v1065_v17 }
  0x9f   : > { %v1106_v50 = vsel %vm299_vm3, %v1104_v30, %v1105_v31 }
  0xa1   : > { %997 = vrot.lane.b32.xlu0 %v994_v39, %s2614_s12  ;;  %v1139_v39 = vstv %s3007_s25  ;;  %s3361_s25 = sld [smem:[#allocation3 + $0x35]] }
  0xa2   : > { %977 = vrot.lane.b32.xlu1 %v974_v43, %s2614_s12  ;;  %v1140_v52 = vmul.f32 %v1139_v39, %v2756_v33  ;;  %v3105_v53 = vmul.f32 %v1139_v39, %v2758_v34  ;;  %v1142_v27 = vmul.f32 %v1139_v39, %v2766_v42  ;;  %v277_v39 = vmul.f32 %v3013_v6, %v2817_v29 }
  0xa4   : > { %v1146_v13 = vrot.slane %v1140_v52, 3  ;;  %v1147_v14 = vrot.slane %v3105_v53, 3  ;;  %v1201_v53 = vstv %s3107_s4  ;;  %s3482_s4 = sld [smem:[#allocation3 + $0x4a]] }
  0xa5   : > { %1017 = vrot.lane.b32.xlu0 %v1014_v46, %s2614_s12  ;;  %v281_v46 = vrot.slane %v275_v24, 1  ;;  %v1127_v24 = vrot.slane %v1120_v58, 2 }
  0xa6   : > { %999 = vrot.lane.b32.xlu1 %v996_v49, %s2614_s12  ;;  %v1159_v49 = vstv %s3024_s27  ;;  %s3398_s27 = sld [smem:[#allocation3 + $0x12]] }
  0xa7   : > { %v3133_v10 = vmul.f32 %v1159_v49, %v2806_v16  ;;  %v3138_v11 = vsel %vm264_vm2, %v281_v46, %v4125_v47 }
  0xa9   : > { %1032 = vrot.lane.b32.xlu0 %v1028_v51, %s2615_s21  ;;  %v1125_v51 = vrot.slane %v3070_v32, 2  ;;  %v3152_v32 = vstv %s3091_s29  ;;  %v1167_v46 = vrot.slane %v3133_v10, 3  ;;  %s2616_s29 = smov 124  }
  0xaa   : > { %1019 = vrot.lane.b32.xlu1 %v1016_v55, %s2614_s12  ;;  %s3015_s12 = sld [smem:[#allocation3 + $0x15]]  ;;  %v3189_v10 = vmul.f32 %v3152_v32, %v2758_v34 }
  0xab   : > { %v3004_v63 = vpop.permute.xlu0 %472  ;;  %v1126_v12 = vsel %vm299_vm3, %v1124_v48, %v1125_v51  ;;  %v1148_v48 = vsel %vm334_vm4, %v1146_v13, %v1147_v14  ;;  %v1128_v58 = vsel %vm299_vm3, %v1125_v51, %v1127_v24  ;;  %v260_v24 = vmul.f32 %v3011_v5, %v2766_v42 }
  0xac   : > { %v293_v5 = vmul.f32 %v3019_v7, %v2756_v33 }
  0xad   : > { %1045 = vrot.lane.b32.xlu0 %v1041_v57, %s2615_s21  ;;  %v1107_v57 = vrot.slane %v1100_v38, 2 }
  0xae   : > { %1034 = vrot.lane.b32.xlu1 %v1029_v60, %s2615_s21  ;;  %v316_v60 = vrot.slane %v310_v40, 2 }
  0xaf   : > { %v3032_v15 = vpop.permute.xlu0 %474  ;;  %v1108_v18 = vsel %vm299_vm3, %v1105_v31, %v1107_v57 }
  0xb0   : > { %v3052_v23 = vpop.permute.xlu1 %509  ;;  %v3086_v43 = vstv %s3015_s12  ;;  %v3164_v31 = vsel %vm299_vm3, %v316_v60, %v4124_v61  ;;  %v1149_v60 = vrot.slane %v1142_v27, 3  ;;  %v1202_v27 = vmul.f32 %v1201_v53, %v2791_v2  ;;  %s3363_s12 = sld [smem:[#allocation3 + $0x3c]] }
  0xb1   : > { %1067 = vrot.lane.b32.xlu0 %v1064_v9, %s2615_s21  ;;  %v3118_v62 = vmul.f32 %v3086_v43, %v2758_v34  ;;  %v1160_v9 = vmul.f32 %v1159_v49, %v2791_v2  ;;  %v3208_v61 = vmul.f32 %v1201_v53, %v2806_v16 }
  0xb2   : > { %1047 = vrot.lane.b32.xlu1 %v1042_v8, %s2615_s21  ;;  %v3128_v8 = vmul.f32 %v3089_v44, %v2806_v16 }
  0xb3   : > { %v3072_v35 = vpop.permute.xlu0 %507  ;;  %v1166_v40 = vrot.slane %v1160_v9, 3  ;;  %v1162_v9 = vmul.f32 %v1159_v49, %v2817_v29  ;;  %v253_v49 = vadd.f32 %v3038_v19, %v3050_v22  ;;  %v1223_v19 = vstv %s3143_s5  ;;  %s3515_s5 = sld [smem:[#allocation3 + $0x20]] }
  0xb4   : > { %v3095_v45 = vpop.permute.xlu1 %551  ;;  %v3247_v6 = vmul.f32 %v1223_v19, %v2758_v34 }
  0xb5   : > { %4131 = vst [vmem:[#allocation9_spill] sm:$0xff] %v3095_v45  ;;  %1087 = vrot.lane.b32.xlu0 %v1084_v28, %s2615_s21  ;;  %v1181_v28 = vstv %s3077_s28  ;;  %v1169_v59 = vrot.slane %v1162_v9, 3  ;;  %v1224_v9 = vmul.f32 %v1223_v19, %v2756_v33  ;;  %v4136_v45 = vrot.slane %v3042_v20, 1  ;;  %s3424_s28 = sld [smem:[#allocation3 + $0x43]] }
  0xb6   : > { %1069 = vrot.lane.b32.xlu1 %v1066_v36, %s2615_s21  ;;  %v3155_v36 = vstv %s3093_s30  ;;  %v3177_v52 = vmul.f32 %v1181_v28, %v2758_v34  ;;  %v4137_v20 = vrot.slane %v3128_v8, 3  ;;  %s3452_s30 = sld [smem:[#allocation3 + $0x19]] }
  0xb7   : > { %v3110_v55 = vpop.permute.xlu0 %549  ;;  %v3197_v13 = vmul.f32 %v3155_v36, %v2806_v16 }
  0xb8   : > { %v3120_v0 = vpop.permute.xlu1 %485  ;;  %v1189_v47 = vrot.slane %v3177_v52, 4  ;;  %v252_v52 = vmul.f32 %v250_v4, %v2806_v16 }
  0xb9   : > { %1109 = vrot.lane.b32.xlu0 %v1106_v50, %s2615_s21  ;;  %v1182_v50 = vmul.f32 %v1181_v28, %v2756_v33 }
  0xba   : > { %1089 = vrot.lane.b32.xlu1 %v1086_v56, %s2615_s21 }
  0xbb   : > { %v3145_v17 = vpop.permute.xlu0 %527  ;;  %v1188_v30 = vrot.slane %v1182_v50, 4  ;;  %v247_v50 = vmul.f32 %v245_v3, %v2758_v34  ;;  %v3242_v3 = vstv %s3171_s9  ;;  %s3548_s9 = sld [smem:[#allocation3 + $0x27]] }
  0xbc   : > { %v3159_v38 = vpop.permute.xlu1 %487 }
  0xbd   : > { %1129 = vrot.lane.b32.xlu0 %v1126_v12, %s2615_s21  ;;  %v3193_v12 = vmul.f32 %v3155_v36, %v2791_v2  ;;  %v1190_v4 = vsel %vm369_vm5, %v1188_v30, %v1189_v47  ;;  %v295_v30 = vmul.f32 %v3019_v7, %v2766_v42 }
  0xbe   : > { %1111 = vrot.lane.b32.xlu1 %v1108_v18, %s2615_s21  ;;  %v265_v18 = vrot.slane %v258_v37, 1  ;;  %v1168_v37 = vsel %vm334_vm4, %v1166_v40, %v1167_v46 }
  0xbf   : > { %v3181_v57 = vpop.permute.xlu0 %569 }
  0xc0   : > { %4132 = vst [vmem:[#allocation10_spill] sm:$0xff] %v3181_v57  ;;  %v3199_v51 = vpop.permute.xlu1 %529  ;;  %v267_v40 = vsel %vm264_vm2, %v265_v18, %v4126_v54  ;;  %v3239_v18 = vstv %s3169_s8  ;;  %v254_v57 = vadd.f32 %v252_v52, %v247_v50  ;;  %s3535_s8 = sld [smem:[#allocation3 + $0x51]] }
  0xc1   : > { %1151 = vrot.lane.b32.xlu0 %v1148_v48, %s2615_s21  ;;  %v1150_v48 = vsel %vm334_vm4, %v1147_v14, %v1149_v60  ;;  %v268_v14 = vrot.slane %v260_v24, 1  ;;  %v1209_v60 = vrot.slane %v3208_v61, 4  ;;  %v1170_v24 = vsel %vm334_vm4, %v1167_v46, %v1169_v59 }
  0xc2   : > { %1131 = vrot.lane.b32.xlu1 %v1128_v58, %s2615_s21  ;;  %v1184_v58 = vmul.f32 %v1181_v28, %v2766_v42  ;;  %v1208_v28 = vrot.slane %v1202_v27, 4  ;;  %v1204_v61 = vmul.f32 %v1201_v53, %v2817_v29  ;;  %v284_v59 = vrot.slane %v277_v39, 1 }
  0xc3   : > { %v3218_v22 = vpop.permute.xlu0 %591  ;;  %v1230_v53 = vrot.slane %v1224_v9, 5  ;;  %v4139_v9 = vrot.slane %v3062_v26, 2  ;;  %v3331_v26 = vmul.f32 %v3239_v18, %v2758_v34 }
  0xc4   : > { %4133 = vst [vmem:[#allocation11_spill] sm:$0xff] %v3218_v22  ;;  %v3233_v56 = vpop.permute.xlu1 %571  ;;  %v1191_v27 = vrot.slane %v1184_v58, 4  ;;  %v300_v22 = vrot.slane %v293_v5, 2  ;;  %v1210_v46 = vsel %vm369_vm5, %v1208_v28, %v1209_v60  ;;  %v1265_v58 = vstv %s3214_s13  ;;  %s3588_s13 = sld [smem:[#allocation3 + $0x2e]] }
  0xc5   : > { %4134 = vst [vmem:[#allocation12_spill] sm:$0xff] %v3233_v56  ;;  %1171 = vrot.lane.b32.xlu0 %v1168_v37, %s2615_s21  ;;  %v1243_v37 = vstv %s3185_s10  ;;  %v272_v56 = vadd.f32 %v267_v40, %v253_v49  ;;  %v1231_v49 = vrot.slane %v3247_v6, 5  ;;  %v1211_v52 = vrot.slane %v1204_v61, 4  ;;  %s3569_s10 = sld [smem:[#allocation3 + $0x58]] }
  0xc6   : > { %1153 = vrot.lane.b32.xlu1 %v1150_v48, %s2615_s21  ;;  %v1244_v5 = vmul.f32 %v1243_v37, %v2791_v2  ;;  %v3269_v7 = vmul.f32 %v1243_v37, %v2806_v16  ;;  %v1192_v50 = vsel %vm369_vm5, %v1189_v47, %v1191_v27  ;;  %v328_v6 = vmul.f32 %v3086_v43, %v2756_v33 }
  0xc7   : > { %v3249_v54 = vpop.permute.xlu0 %611  ;;  %v288_v28 = vadd.f32 %v3138_v11, %v272_v56  ;;  %v4140_v47 = vrot.slane %v3058_v25, 1  ;;  %v303_v27 = vrot.slane %v295_v30, 2  ;;  %v1266_v11 = vmul.f32 %v1265_v58, %v2756_v33 }
  0xc8   : > { %4135 = vst [vmem:[#allocation13_spill] sm:$0xff] %v3249_v54  ;;  %v3258_v48 = vpop.permute.xlu1 %593  ;;  %v269_v54 = vsel %vm264_vm2, %v4136_v45, %v268_v14  ;;  %v4138_v45 = vrot.slane %v3124_v1, 3  ;;  %v1226_v14 = vmul.f32 %v1223_v19, %v2766_v42  ;;  %v312_v1 = vmul.f32 %v3045_v21, %v2817_v29 }
  0xc9   : > { %1193 = vrot.lane.b32.xlu0 %v1190_v4, %s2615_s21  ;;  %v302_v4 = vsel %vm299_vm3, %v300_v22, %v4139_v9  ;;  %v285_v19 = vsel %vm264_vm2, %v4140_v47, %v284_v59  ;;  %v1232_v56 = vsel %vm404_vm6, %v1230_v53, %v1231_v49  ;;  %v1250_v22 = vrot.slane %v1244_v5, 5 }
  0xca   : > { %1173 = vrot.lane.b32.xlu1 %v1170_v24, %s2615_s21  ;;  %v3277_v39 = vsel %vm334_vm4, %v4138_v45, %v4137_v20  ;;  %v273_v20 = vadd.f32 %v269_v54, %v254_v57  ;;  %v1251_v21 = vrot.slane %v3269_v7, 5  ;;  %v3302_v61 = vmul.f32 %v1265_v58, %v2758_v34 }
  0xcb   : > { %v3279_v40 = vpop.permute.xlu0 %633  ;;  %v1212_v25 = vsel %vm369_vm5, %v1209_v60, %v1211_v52  ;;  %v1233_v57 = vrot.slane %v1226_v14, 5  ;;  %v1246_v30 = vmul.f32 %v1243_v37, %v2817_v29  ;;  %v1285_v59 = vstv %s3254_s6  ;;  %s2414_s6 = sld [smem:[#allocation3 + $0x5f]] }
  0xcc   : > { %v3291_v24 = vpop.permute.xlu1 %613  ;;  %v307_v45 = vadd.f32 %v302_v4, %v288_v28  ;;  %v335_v53 = vrot.slane %v328_v6, 3  ;;  %v330_v5 = vmul.f32 %v3086_v43, %v2766_v42  ;;  %v304_v60 = vsel %vm299_vm3, %v4139_v9, %v303_v27 }
  0xcd   : > { %1213 = vrot.lane.b32.xlu0 %v1210_v46, %s2615_s21  ;;  %v4127_v46 = vrot.slane %v3189_v10, 4  ;;  %v319_v52 = vrot.slane %v312_v1, 2  ;;  %v1272_v37 = vrot.slane %v1266_v11, 6  ;;  %v1252_v14 = vsel %vm404_vm6, %v1250_v22, %v1251_v21 }
  0xce   : > { %1195 = vrot.lane.b32.xlu1 %v1192_v50, %s2615_s21  ;;  %v289_v50 = vadd.f32 %v285_v19, %v273_v20  ;;  %v1273_v28 = vrot.slane %v3302_v61, 6  ;;  %v1286_v4 = vmul.f32 %v1285_v59, %v2791_v2  ;;  %v3325_v43 = vmul.f32 %v1285_v59, %v2806_v16 }
  0xcf   : > { %v3304_v54 = vpop.permute.xlu0 %653  ;;  %v1234_v1 = vsel %vm404_vm6, %v1231_v49, %v1233_v57  ;;  %v1253_v20 = vrot.slane %v1246_v30, 5  ;;  %v1268_v47 = vmul.f32 %v1265_v58, %v2766_v42  ;;  %v386_v19 = vrot.slane %v3193_v12, 4 }
  0xd0   : > { %v3314_v7 = vpop.permute.xlu1 %635  ;;  %v3342_v27 = vmul.f32 %v3242_v3, %v2791_v2  ;;  %v323_v11 = vadd.f32 %v3164_v31, %v307_v45  ;;  %v4141_v49 = vrot.slane %v3118_v62, 3  ;;  %v308_v58 = vadd.f32 %v304_v60, %v289_v50 }
  0xd1   : > { %1235 = vrot.lane.b32.xlu0 %v1232_v56, %s2615_s21  ;;  %v363_v56 = vmul.f32 %v3152_v32, %v2756_v33  ;;  %v347_v12 = vmul.f32 %v3089_v44, %v2817_v29  ;;  %v4142_v57 = vrot.slane %v3083_v41, 2  ;;  %v1274_v30 = vsel %vm439_vm7, %v1272_v37, %v1273_v28 }
  0xd2   : > { %1215 = vrot.lane.b32.xlu1 %v1212_v25, %s2615_s21  ;;  %v337_v61 = vsel %vm334_vm4, %v335_v53, %v4141_v49  ;;  %v338_v25 = vrot.slane %v330_v5, 3  ;;  %v1292_v45 = vrot.slane %v1286_v4, 6  ;;  %v1293_v9 = vrot.slane %v3325_v43, 6 }
  0xd3   : > { %v3333_v6 = vpop.permute.xlu0 %675  ;;  %v320_v31 = vsel %vm299_vm3, %v4142_v57, %v319_v52  ;;  %v387_v44 = vrot.slane %v3197_v13, 4  ;;  %v1254_v41 = vsel %vm404_vm6, %v1251_v21, %v1253_v20  ;;  %v1275_v5 = vrot.slane %v1268_v47, 6 }
  0xd4   : > { %v3347_v22 = vpop.permute.xlu1 %655  ;;  %v1288_v50 = vmul.f32 %v1285_v59, %v2817_v29  ;;  %v3374_v60 = vmul.f32 %v3242_v3, %v2806_v16  ;;  %v3377_v52 = vstv %s3310_s7  ;;  %v342_v37 = vadd.f32 %v337_v61, %v323_v11  ;;  %s3640_s7 = sld [smem:[#allocation3 + $0x5]] }
  0xd5   : > { %1255 = vrot.lane.b32.xlu0 %v1252_v14, %s2615_s21  ;;  %v370_v14 = vrot.slane %v363_v56, 4  ;;  %v354_v49 = vrot.slane %v347_v12, 3  ;;  %v365_v21 = vmul.f32 %v3152_v32, %v2766_v42  ;;  %v4143_v20 = vrot.slane %v3118_v62, 3 }
  0xd6   : > { %1237 = vrot.lane.b32.xlu1 %v1234_v1, %s2615_s21  ;;  %v324_v1 = vadd.f32 %v320_v31, %v308_v58  ;;  %v1294_v11 = vsel %vm439_vm7, %v1292_v45, %v1293_v9  ;;  %v1307_v56 = vstv %s3327_s18  ;;  %v398_v61 = vmul.f32 %v3239_v18, %v2756_v33  ;;  %s2417_s18 = sld [smem:[#allocation3 + $0xc]] }
  0xd7   : > { %v3368_v53 = vpop.permute.xlu0 %695  ;;  %v339_v47 = vsel %vm334_vm4, %v4143_v20, %v338_v25  ;;  %v1276_v32 = vsel %vm439_vm7, %v1273_v28, %v1275_v5  ;;  %v1295_v12 = vrot.slane %v1288_v50, 6  ;;  %v1335_v57 = vstv %s3337_s20  ;;  %s3653_s20 = sld [smem:[#allocation3 + $0x36]] }
  0xd8   : > { %v3379_v4 = vpop.permute.xlu1 %677  ;;  %v3402_v62 = vmul.f32 %v3377_v52, %v2758_v34  ;;  %v358_v25 = vadd.f32 %v3277_v39, %v342_v37  ;;  %v372_v31 = vsel %vm369_vm5, %v370_v14, %v4127_v46  ;;  %v343_v45 = vadd.f32 %v339_v47, %v324_v1 }
  0xd9   : > { %1277 = vrot.lane.b32.xlu0 %v1274_v30, %s2615_s21  ;;  %v382_v30 = vmul.f32 %v3155_v36, %v2817_v29  ;;  %v373_v50 = vrot.slane %v365_v21, 4  ;;  %v1308_v39 = vmul.f32 %v1307_v56, %v2756_v33  ;;  %v1320_v37 = vstv %s3361_s25  ;;  %s2418_s25 = sld [smem:[#allocation3 + $0x3d]] }
  0xda   : > { %1257 = vrot.lane.b32.xlu1 %v1254_v41, %s2615_s21  ;;  %v4144_v41 = vrot.slane %v3128_v8, 3  ;;  %v1336_v14 = vmul.f32 %v1335_v57, %v2756_v33  ;;  %v3421_v20 = vmul.f32 %v1335_v57, %v2758_v34  ;;  %v1355_v36 = vstv %s3363_s12  ;;  %s3665_s12 = sld [smem:[#allocation3 + $0x13]] }
  0xdb   : > { %v3394_v58 = vpop.permute.xlu0 %717  ;;  %v388_v8 = vsel %vm369_vm5, %v386_v19, %v387_v44  ;;  %v3430_v1 = vstv %s3366_s26  ;;  %v1296_v47 = vsel %vm439_vm7, %v1293_v9, %v1295_v12  ;;  %v400_v59 = vmul.f32 %v3239_v18, %v2766_v42  ;;  %s3681_s26 = sld [smem:[#allocation3 + $0x44]] }
  0xdc   : > { %v3410_v28 = vpop.permute.xlu1 %697  ;;  %v355_v5 = vsel %vm334_vm4, %v4144_v41, %v354_v49  ;;  %v405_v49 = vrot.slane %v398_v61, 5  ;;  %v389_v41 = vrot.slane %v382_v30, 4  ;;  %v1321_v19 = vmul.f32 %v1320_v37, %v2791_v2 }
  0xdd   : > { %1297 = vrot.lane.b32.xlu0 %v1294_v11, %s2615_s21  ;;  %v359_v46 = vadd.f32 %v355_v5, %v343_v45  ;;  %v1356_v61 = vmul.f32 %v1355_v36, %v2791_v2  ;;  %v3444_v9 = vmul.f32 %v1355_v36, %v2806_v16  ;;  %v4146_v12 = vrot.slane %v3189_v10, 4 }
  0xde   : > { %1279 = vrot.lane.b32.xlu1 %v1276_v32, %s2615_s21  ;;  %v377_v32 = vadd.f32 %v372_v31, %v358_v25  ;;  %v1309_v18 = vmul.f32 %v1307_v56, %v2758_v34  ;;  %v1342_v31 = vrot.slane %v1336_v14, 1  ;;  %v1343_v30 = vrot.slane %v3421_v20, 1 }
  0xdf   : > { %v3432_v21 = vpop.permute.xlu0 %737  ;;  %v374_v25 = vsel %vm369_vm5, %v4146_v12, %v373_v50  ;;  %v3456_v45 = vmul.f32 %v3430_v1, %v2791_v2  ;;  %v4147_v5 = vrot.slane %v3331_v26, 5  ;;  %v1338_v50 = vmul.f32 %v1335_v57, %v2766_v42 }
  0xe0   : > { %v3438_v43 = vpop.permute.xlu1 %719  ;;  %v393_v56 = vadd.f32 %v388_v8, %v377_v32  ;;  %v390_v14 = vsel %vm369_vm5, %v387_v44, %v389_v41  ;;  %v408_v20 = vrot.slane %v400_v59, 5  ;;  %v417_v12 = vmul.f32 %v3242_v3, %v2817_v29 }
  0xe1   : > { %4145 = vst [vmem:[#allocation14_spill] sm:$0xff] %v3438_v43  ;;  %1312 = vrot.lane.b32.xlu0 %v1308_v39, %s2616_s29  ;;  %v407_v39 = vsel %vm404_vm6, %v405_v49, %v4147_v5  ;;  %v378_v43 = vadd.f32 %v374_v25, %v359_v46  ;;  %v1322_v49 = vmul.f32 %v1320_v37, %v2806_v16  ;;  %v1362_v5 = vrot.slane %v1356_v61, 1 }
  0xe2   : > { %1299 = vrot.lane.b32.xlu1 %v1296_v47, %s2615_s21  ;;  %v1377_v47 = vstv %s3398_s27  ;;  %v1363_v57 = vrot.slane %v3444_v9, 1  ;;  %v1344_v13 = vsel %vm264_vm2, %v1342_v31, %v1343_v30  ;;  %v1397_v3 = vstv %s3424_s28  ;;  %s2617_s27 = smov 123   ;;  %s3707_s28 = sld [smem:[#allocation3 + $0x1a]] }
  0xe3   : > { %v3461_v10 = vpop.permute.xlu0 %752  ;;  %v1378_v44 = vmul.f32 %v1377_v47, %v2756_v33  ;;  %v3479_v59 = vmul.f32 %v1377_v47, %v2758_v34  ;;  %v441_v46 = vrot.slane %v3402_v62, 6  ;;  %v433_v37 = vmul.f32 %v3377_v52, %v2756_v33 }
  0xe4   : > { %v3470_v11 = vpop.permute.xlu1 %739  ;;  %v1345_v32 = vrot.slane %v1338_v50, 1  ;;  %v1358_v41 = vmul.f32 %v1355_v36, %v2817_v29  ;;  %v4151_v61 = vrot.slane %v3342_v27, 5  ;;  %v4152_v25 = vrot.slane %v3331_v26, 5 }
  0xe5   : > { %4148 = vst [vmem:[#allocation15_spill] sm:$0xff] %v3470_v11  ;;  %1325 = vrot.lane.b32.xlu0 %v1321_v19, %s2616_s29  ;;  %v4150_v19 = vrot.slane %v3374_v60, 5  ;;  %v424_v62 = vrot.slane %v417_v12, 5  ;;  %v435_v31 = vmul.f32 %v3377_v52, %v2766_v42  ;;  %v412_v50 = vadd.f32 %v407_v39, %v393_v56 }
  0xe6   : > { %1314 = vrot.lane.b32.xlu1 %v1309_v18, %s2616_s29  ;;  %v409_v18 = vsel %vm404_vm6, %v4152_v25, %v408_v20  ;;  %v1364_v36 = vsel %vm264_vm2, %v1362_v5, %v1363_v57  ;;  %v1398_v27 = vmul.f32 %v1397_v3, %v2791_v2  ;;  %v1385_v26 = vrot.slane %v3479_v59, 2 }
  0xe7   : > { %v3487_v8 = vpop.permute.xlu0 %765  ;;  %v423_v9 = vsel %vm404_vm6, %v4151_v61, %v4150_v19  ;;  %v1384_v19 = vrot.slane %v1378_v44, 2  ;;  %v3508_v20 = vmul.f32 %v1397_v3, %v2806_v16  ;;  %v1419_v12 = vstv %s3452_s30  ;;  %s3737_s30 = sld [smem:[#allocation3 + $0x21]] }
  0xe8   : > { %4149 = vst [vmem:[#allocation16_spill] sm:$0xff] %v3487_v8  ;;  %v3500_v11 = vpop.permute.xlu1 %754  ;;  %v394_v8 = vadd.f32 %v390_v14, %v378_v43  ;;  %v440_v52 = vrot.slane %v433_v37, 6  ;;  %v1346_v43 = vsel %vm264_vm2, %v1343_v30, %v1345_v32  ;;  %v1365_v39 = vrot.slane %v1358_v41, 1 }
  0xe9   : > { %1347 = vrot.lane.b32.xlu0 %v1344_v13, %s2616_s29  ;;  %v1380_v56 = vmul.f32 %v1377_v47, %v2766_v42  ;;  %v451_v14 = vmul.f32 %v3430_v1, %v2806_v16  ;;  %v443_v13 = vrot.slane %v435_v31, 6  ;;  %v452_v44 = vmul.f32 %v3430_v1, %v2817_v29 }
  0xea   : > { %1327 = vrot.lane.b32.xlu1 %v1322_v49, %s2616_s29  ;;  %v4153_v49 = vrot.slane %v3374_v60, 5  ;;  %v428_v30 = vadd.f32 %v423_v9, %v412_v50  ;;  %v413_v37 = vadd.f32 %v409_v18, %v394_v8  ;;  %v1420_v47 = vmul.f32 %v1419_v12, %v2756_v33 }
  0xeb   : > { %v3511_v61 = vpop.permute.xlu0 %787  ;;  %v3529_v32 = vmul.f32 %v1419_v12, %v2758_v34  ;;  %v1386_v60 = vsel %vm299_vm3, %v1384_v19, %v1385_v26  ;;  %v1404_v41 = vrot.slane %v1398_v27, 2  ;;  %v1405_v25 = vrot.slane %v3508_v20, 2 }
  0xec   : > { %v425_v5 = vsel %vm404_vm6, %v4153_v49, %v424_v62  ;;  %v3524_v59 = vpop.permute.xlu1 %767  ;;  %v1439_v62 = vstv %s3482_s4  ;;  %v442_v1 = vsel %vm439_vm7, %v440_v52, %v441_v46  ;;  %v1366_v9 = vsel %vm264_vm2, %v1363_v57, %v1365_v39  ;;  %s3764_s4 = sld [smem:[#allocation3 + $0x52]] }
  0xed   : > { %1367 = vrot.lane.b32.xlu0 %v1364_v36, %s2616_s29  ;;  %v1387_v18 = vrot.slane %v1380_v56, 2  ;;  %v1400_v31 = vmul.f32 %v1397_v3, %v2817_v29  ;;  %v456_v50 = vrot.slane %v3456_v45, 6  ;;  %v457_v36 = vrot.slane %v451_v14, 6 }
  0xee   : > { %1349 = vrot.lane.b32.xlu1 %v1346_v43, %s2616_s29  ;;  %v459_v43 = vrot.slane %v452_v44, 6  ;;  %v429_v27 = vadd.f32 %v425_v5, %v413_v37  ;;  %v1426_v20 = vrot.slane %v1420_v47, 3  ;;  %v1427_v52 = vrot.slane %v3529_v32, 3 }
  0xef   : > { %v3538_v8 = vpop.permute.xlu0 %807  ;;  %v1440_v49 = vmul.f32 %v1439_v62, %v2791_v2  ;;  %v447_v57 = vadd.f32 %v442_v1, %v428_v30  ;;  %v444_v3 = vsel %vm439_vm7, %v441_v46, %v443_v13  ;;  %v1406_v45 = vsel %vm299_vm3, %v1404_v41, %v1405_v25 }
  0xf0   : > { %v3543_v19 = vpop.permute.xlu1 %789  ;;  %v1441_v39 = vmul.f32 %v1439_v62, %v2806_v16  ;;  %v1388_v14 = vsel %vm299_vm3, %v1385_v26, %v1387_v18  ;;  %v1407_v5 = vrot.slane %v1400_v31, 2  ;;  %v1422_v44 = vmul.f32 %v1419_v12, %v2766_v42 }
  0xf1   : > { %1389 = vrot.lane.b32.xlu0 %v1386_v60, %s2616_s29  ;;  %v1461_v37 = vstv %s3515_s5  ;;  %v458_v47 = vsel %vm439_vm7, %v456_v50, %v457_v36  ;;  %v448_v46 = vadd.f32 %v444_v3, %v429_v27  ;;  %v460_v13 = vsel %vm439_vm7, %v457_v36, %v459_v43  ;;  %s3776_s5 = sld [smem:[#allocation3 + $0x28]] }
  0xf2   : > { %1369 = vrot.lane.b32.xlu1 %v1366_v9, %s2616_s29  ;;  %v1428_v32 = vsel %vm334_vm4, %v1426_v20, %v1427_v52  ;;  %v1446_v60 = vrot.slane %v1440_v49, 3  ;;  %v1447_v26 = vrot.slane %v1441_v39, 3  ;;  %v1462_v41 = vmul.f32 %v1461_v37, %v2756_v33 }
  0xf3   : > { %v3554_v56 = vpop.permute.xlu0 %829  ;;  %v1463_v12 = vmul.f32 %v1461_v37, %v2758_v34  ;;  %v1481_v1 = vstv %s3535_s8  ;;  %v463_v9 = vadd.f32 %v458_v47, %v447_v57  ;;  %v1408_v31 = vsel %vm299_vm3, %v1405_v25, %v1407_v5  ;;  %s3793_s8 = sld [smem:[#allocation3 + $0x59]] }
  0xf4   : > { %v3560_v30 = vpop.permute.xlu1 %809  ;;  %v1429_v50 = vrot.slane %v1422_v44, 3  ;;  %v1442_v36 = vmul.f32 %v1439_v62, %v2817_v29  ;;  %v464_v27 = vadd.f32 %v460_v13, %v448_v46  ;;  %v1482_v20 = vmul.f32 %v1481_v1, %v2791_v2 }
  0xf5   : > { %1409 = vrot.lane.b32.xlu0 %v1406_v45, %s2616_s29  ;;  %v1503_v49 = vstv %s3548_s9  ;;  %v1448_v3 = vsel %vm334_vm4, %v1446_v60, %v1447_v26  ;;  %v1468_v57 = vrot.slane %v1462_v41, 4  ;;  %v1469_v45 = vrot.slane %v1463_v12, 4  ;;  %s3821_s9 = sld [smem:[#allocation3 + $0x2f]] }
  0xf6   : > { %1391 = vrot.lane.b32.xlu1 %v1388_v14, %s2616_s29  ;;  %v1483_v39 = vmul.f32 %v1481_v1, %v2806_v16  ;;  %v478_v25 = vadd.f32 %v3004_v63, %v463_v9  ;;  %v1430_v14 = vsel %vm334_vm4, %v1427_v52, %v1429_v50  ;;  %v1449_v5 = vrot.slane %v1442_v36, 3 }
  0xf7   : > { %v3571_v18 = vpop.permute.xlu0 %849  ;;  %v1464_v44 = vmul.f32 %v1461_v37, %v2766_v42  ;;  %v479_v46 = vadd.f32 %v3032_v15, %v464_v27  ;;  %v1504_v63 = vmul.f32 %v1503_v49, %v2756_v33  ;;  %v1470_v52 = vsel %vm369_vm5, %v1468_v57, %v1469_v45 }
  0xf8   : > { %v3575_v43 = vpop.permute.xlu1 %831  ;;  %v491_v13 = vadd.f32 %v3120_v0, %v478_v25  ;;  %v1489_v60 = vrot.slane %v1483_v39, 4  ;;  %v1505_v37 = vmul.f32 %v1503_v49, %v2758_v34  ;;  %v1523_v41 = vstv %s3569_s10  ;;  %s3834_s10 = sld [smem:[#allocation3 + $0x60]] }
  0xf9   : > { %1431 = vrot.lane.b32.xlu0 %v1428_v32, %s2616_s29  ;;  %v1488_v32 = vrot.slane %v1482_v20, 4  ;;  %v1450_v9 = vsel %vm334_vm4, %v1447_v26, %v1449_v5  ;;  %v1471_v15 = vrot.slane %v1464_v44, 4  ;;  %v1484_v0 = vmul.f32 %v1481_v1, %v2817_v29 }
  0xfa   : > { %1411 = vrot.lane.b32.xlu1 %v1408_v31, %s2616_s29  ;;  %v492_v31 = vadd.f32 %v3159_v38, %v479_v46  ;;  %v513_v36 = vadd.f32 %v3072_v35, %v491_v13  ;;  %v1524_v27 = vmul.f32 %v1523_v41, %v2791_v2  ;;  %v1525_v20 = vmul.f32 %v1523_v41, %v2806_v16 }
  0xfb   : > { %v3584_v62 = vpop.permute.xlu0 %871  ;;  %v1490_v26 = vsel %vm369_vm5, %v1488_v32, %v1489_v60  ;;  %v1511_v1 = vrot.slane %v1505_v37, 5  ;;  %v1472_v38 = vsel %vm369_vm5, %v1469_v45, %v1471_v15  ;;  %v1491_v39 = vrot.slane %v1484_v0, 4 }
  0xfc   : > { %v3590_v47 = vpop.permute.xlu1 %851  ;;  %v1506_v25 = vmul.f32 %v1503_v49, %v2766_v42  ;;  %v1545_v35 = vstv %s3588_s13  ;;  %v533_v44 = vadd.f32 %v3145_v17, %v513_v36  ;;  %v1530_v46 = vrot.slane %v1524_v27, 5  ;;  %s3879_s13 = sld [smem:[#allocation3 + $0x6]] }
  0xfd   : > { %1451 = vrot.lane.b32.xlu0 %v1448_v3, %s2616_s29  ;;  %v1510_v3 = vrot.slane %v1504_v63, 5  ;;  %v1531_v13 = vrot.slane %v1525_v20, 5  ;;  %v1546_v45 = vmul.f32 %v1545_v35, %v2756_v33  ;;  %v1547_v63 = vmul.f32 %v1545_v35, %v2758_v34 }
  0xfe   : > { %1433 = vrot.lane.b32.xlu1 %v1430_v14, %s2616_s29  ;;  %v514_v14 = vadd.f32 %v3052_v23, %v492_v31  ;;  %v1492_v23 = vsel %vm369_vm5, %v1489_v60, %v1491_v39  ;;  %v1526_v37 = vmul.f32 %v1523_v41, %v2817_v29  ;;  %v1565_v17 = vstv %s2414_s6  ;;  %s2431_s6 = sld [smem:[#allocation3 + $0xd]] }
  0xff   : > { %v3600_v12 = vpop.permute.xlu0 %891  ;;  %v1512_v32 = vsel %vm404_vm6, %v1510_v3, %v1511_v1  ;;  %v555_v0 = vadd.f32 %v3110_v55, %v533_v44  ;;  %v1532_v31 = vsel %vm404_vm6, %v1530_v46, %v1531_v13  ;;  %v1552_v36 = vrot.slane %v1546_v45, 6  ;;  %v4154_v3 = vld [vmem:[#allocation9_spill] sm:$0xff] }
 0x100   : > { %v3605_v50 = vpop.permute.xlu1 %873  ;;  %v1553_v27 = vrot.slane %v1547_v63, 6  ;;  %v1566_v60 = vmul.f32 %v1565_v17, %v2791_v2  ;;  %v1567_v20 = vmul.f32 %v1565_v17, %v2806_v16  ;;  %v1548_v55 = vmul.f32 %v1545_v35, %v2766_v42 }
 0x101   : > { %1473 = vrot.lane.b32.xlu0 %v1470_v52, %s2616_s29  ;;  %v1513_v52 = vrot.slane %v1506_v25, 5  ;;  %v4155_v25 = vld [vmem:[#allocation10_spill] sm:$0xff] }
 0x102   : > { %1453 = vrot.lane.b32.xlu1 %v1450_v9, %s2616_s29  ;;  %v534_v9 = vadd.f32 %v3199_v51, %v514_v14  ;;  %v575_v14 = vadd.f32 %v4155_v25, %v555_v0  ;;  %v1554_v44 = vsel %vm439_vm7, %v1552_v36, %v1553_v27  ;;  %v1572_v46 = vrot.slane %v1566_v60, 6 }
 0x103   : > { %v3613_v57 = vpop.permute.xlu0 %913  ;;  %v1514_v51 = vsel %vm404_vm6, %v1511_v1, %v1513_v52  ;;  %v4156_v1 = vld [vmem:[#allocation11_spill] sm:$0xff]  ;;  %v1568_v52 = vmul.f32 %v1565_v17, %v2817_v29 }
 0x104   : > { %v3619_v5 = vpop.permute.xlu1 %893  ;;  %v597_v35 = vadd.f32 %v4156_v1, %v575_v14 }
 0x105   : > { %1493 = vrot.lane.b32.xlu0 %v1490_v26, %s2616_s29  ;;  %v1533_v26 = vrot.slane %v1526_v37, 5  ;;  %v4157_v37 = vld [vmem:[#allocation12_spill] sm:$0xff] }
 0x106   : > { %1475 = vrot.lane.b32.xlu1 %v1472_v38, %s2616_s29  ;;  %v556_v38 = vadd.f32 %v4154_v3, %v534_v9  ;;  %v1615_v3 = vstv %s2417_s18  ;;  %s3892_s18 = sld [smem:[#allocation3 + $0x37]] }
 0x107   : > { %v3627_v49 = vpop.permute.xlu0 %933  ;;  %v1534_v63 = vsel %vm404_vm6, %v1531_v13, %v1533_v26 }
 0x108   : > { %v3632_v15 = vpop.permute.xlu1 %915  ;;  %v576_v9 = vadd.f32 %v4157_v37, %v556_v38 }
 0x109   : > { %1515 = vrot.lane.b32.xlu0 %v1512_v32, %s2616_s29  ;;  %v1573_v32 = vrot.slane %v1567_v20, 6  ;;  %v1587_v20 = vstv %s3640_s7  ;;  %s3887_s7 = sld [smem:[#allocation3 + $0x3e]] }
 0x10a   : > { %1495 = vrot.lane.b32.xlu1 %v1492_v23, %s2616_s29  ;;  %v1555_v23 = vrot.slane %v1548_v55, 6  ;;  %v598_v60 = vadd.f32 %v3258_v48, %v576_v9  ;;  %v1575_v55 = vrot.slane %v1568_v52, 6  ;;  %v1588_v14 = vmul.f32 %v1587_v20, %v2756_v33 }
 0x10b   : > { %v3642_v41 = vpop.permute.xlu0 %955  ;;  %v1574_v13 = vsel %vm439_vm7, %v1572_v46, %v1573_v32  ;;  %v1657_v9 = vstv %s3665_s12  ;;  %s2618_s12 = smov 122  }
 0x10c   : > { %v3647_v39 = vpop.permute.xlu1 %935  ;;  %v1556_v26 = vsel %vm439_vm7, %v1553_v27, %v1555_v23  ;;  %v618_v38 = vadd.f32 %v3291_v24, %v598_v60  ;;  %v1600_v27 = vstv %s3653_s20  ;;  %v1617_v24 = vmul.f32 %v1615_v3, %v2758_v34  ;;  %s3904_s20 = sld [smem:[#allocation3 + $0x14]] }
 0x10d   : > { %1535 = vrot.lane.b32.xlu0 %v1532_v31, %s2616_s29  ;;  %v4158_v31 = vld [vmem:[#allocation13_spill] sm:$0xff]  ;;  %v1601_v37 = vmul.f32 %v1600_v27, %v2791_v2 }
 0x10e   : > { %1517 = vrot.lane.b32.xlu1 %v1514_v51, %s2616_s29  ;;  %v617_v36 = vadd.f32 %v4158_v31, %v597_v35  ;;  %v1635_v35 = vstv %s2418_s25  ;;  %v1623_v31 = vrot.slane %v1617_v24, 1  ;;  %s3918_s25 = sld [smem:[#allocation3 + $0x45]] }
 0x10f   : > { %v3656_v45 = vpop.permute.xlu0 %975  ;;  %v1638_v24 = vmul.f32 %v1635_v35, %v2817_v29 }
 0x110   : > { %v3661_v0 = vpop.permute.xlu1 %957  ;;  %v639_v17 = vadd.f32 %v3279_v40, %v617_v36  ;;  %v640_v40 = vadd.f32 %v3314_v7, %v618_v38  ;;  %v1589_v7 = vmul.f32 %v1587_v20, %v2758_v34  ;;  %v1637_v36 = vmul.f32 %v1635_v35, %v2806_v16 }
 0x111   : > { %1557 = vrot.lane.b32.xlu0 %v1554_v44, %s2616_s29  ;;  %v1616_v44 = vmul.f32 %v1615_v3, %v2756_v33  ;;  %v3717_v38 = vmul.f32 %v1657_v9, %v2758_v34 }
 0x112   : > { %1537 = vrot.lane.b32.xlu1 %v1534_v63, %s2616_s29  ;;  %v659_v48 = vadd.f32 %v3304_v54, %v639_v17  ;;  %v1576_v54 = vsel %vm439_vm7, %v1573_v32, %v1575_v55  ;;  %v660_v63 = vadd.f32 %v3347_v22, %v640_v40  ;;  %v1636_v22 = vmul.f32 %v1635_v35, %v2791_v2 }
 0x113   : > { %v3672_v51 = vpop.permute.xlu0 %997  ;;  %v1622_v32 = vrot.slane %v1616_v44, 1  ;;  %v1602_v17 = vmul.f32 %v1600_v27, %v2806_v16  ;;  %v1643_v40 = vrot.slane %v1637_v36, 1  ;;  %v4159_v27 = vld [vmem:[#allocation14_spill] sm:$0xff] }
 0x114   : > { %v3676_v25 = vpop.permute.xlu1 %977  ;;  %v681_v46 = vadd.f32 %v3333_v6, %v659_v48  ;;  %v1618_v6 = vmul.f32 %v1615_v3, %v2766_v42  ;;  %v682_v60 = vadd.f32 %v3379_v4, %v660_v63  ;;  %v1677_v4 = vstv %s3681_s26  ;;  %v4160_v63 = vld [vmem:[#allocation15_spill] sm:$0xff]  ;;  %s3927_s26 = sld [smem:[#allocation3 + $0x1b]] }
 0x115   : > { %1577 = vrot.lane.b32.xlu0 %v1574_v13, %s2616_s29 }
 0x116   : > { %1559 = vrot.lane.b32.xlu1 %v1556_v26, %s2616_s29  ;;  %v701_v52 = vadd.f32 %v3368_v53, %v681_v46  ;;  %v1658_v26 = vmul.f32 %v1657_v9, %v2756_v33  ;;  %v702_v55 = vadd.f32 %v3410_v28, %v682_v60  ;;  %v1625_v3 = vrot.slane %v1618_v6, 1 }
 0x117   : > { %v3689_v1 = vpop.permute.xlu0 %1017  ;;  %v1679_v6 = vmul.f32 %v1677_v4, %v2806_v16 }
 0x118   : > { %v3693_v23 = vpop.permute.xlu1 %999  ;;  %v723_v13 = vadd.f32 %v3394_v58, %v701_v52  ;;  %v1624_v58 = vsel %vm264_vm2, %v1622_v32, %v1623_v31  ;;  %v724_v44 = vadd.f32 %v4159_v27, %v702_v55  ;;  %v1665_v52 = vrot.slane %v3717_v38, 2  ;;  %v4161_v32 = vld [vmem:[#allocation16_spill] sm:$0xff] }
 0x119   : > { %1592 = vrot.lane.b32.xlu0 %v1588_v14, %s2617_s27  ;;  %v1642_v14 = vrot.slane %v1636_v22, 1  ;;  %v1699_v55 = vstv %s3707_s28  ;;  %s3946_s28 = sld [smem:[#allocation3 + $0x22]] }
 0x11a   : > { %1579 = vrot.lane.b32.xlu1 %v1576_v54, %s2616_s29  ;;  %v743_v48 = vadd.f32 %v3432_v21, %v723_v13  ;;  %s3723_s29 = sld [smem:[#allocation3 + $0x4b]]  ;;  %v1664_v21 = vrot.slane %v1658_v26, 2  ;;  %v1645_v13 = vrot.slane %v1638_v24, 1  ;;  %v1660_v26 = vmul.f32 %v1657_v9, %v2766_v42 }
 0x11b   : > { %v3705_v53 = vpop.permute.xlu0 %1032  ;;  %v1644_v22 = vsel %vm264_vm2, %v1642_v14, %v1643_v40  ;;  %v1700_v9 = vmul.f32 %v1699_v55, %v2756_v33 }
 0x11c   : > { %v3710_v20 = vpop.permute.xlu1 %1019  ;;  %v758_v46 = vadd.f32 %v3461_v10, %v743_v48  ;;  %v1626_v10 = vsel %vm264_vm2, %v1623_v31, %v1625_v3  ;;  %v1666_v31 = vsel %vm299_vm3, %v1664_v21, %v1665_v52  ;;  %v1685_v3 = vrot.slane %v1679_v6, 2 }
 0x11d   : > { %1605 = vrot.lane.b32.xlu0 %v1601_v37, %s2617_s27  ;;  %v1678_v37 = vmul.f32 %v1677_v4, %v2791_v2  ;;  %v1667_v24 = vrot.slane %v1660_v26, 2  ;;  %v1706_v6 = vrot.slane %v1700_v9, 3 }
 0x11e   : > { %1594 = vrot.lane.b32.xlu1 %v1589_v7, %s2617_s27  ;;  %v744_v7 = vadd.f32 %v4160_v63, %v724_v44  ;;  %v771_v35 = vadd.f32 %v4161_v32, %v758_v46 }
 0x11f   : > { %v3726_v28 = vpop.permute.xlu0 %1045 }
 0x120   : > { %v3730_v54 = vpop.permute.xlu1 %1034  ;;  %v759_v36 = vadd.f32 %v3500_v11, %v744_v7  ;;  %v793_v38 = vadd.f32 %v3511_v61, %v771_v35  ;;  %v1684_v11 = vrot.slane %v1678_v37, 2  ;;  %v1701_v61 = vmul.f32 %v1699_v55, %v2758_v34 }
 0x121   : > { %1627 = vrot.lane.b32.xlu0 %v1624_v58, %s2617_s27  ;;  %v1680_v58 = vmul.f32 %v1677_v4, %v2817_v29  ;;  %v1719_v27 = vstv %s3723_s29  ;;  %v1741_v37 = vstv %s3737_s30  ;;  %s3955_s29 = sld [smem:[#allocation3 + $0x53]]  ;;  %s3968_s30 = sld [smem:[#allocation3 + $0x29]] }
 0x122   : > { %1607 = vrot.lane.b32.xlu1 %v1602_v17, %s2617_s27  ;;  %v772_v17 = vadd.f32 %v3524_v59, %v759_v36  ;;  %v813_v14 = vadd.f32 %v3538_v8, %v793_v38  ;;  %v1646_v59 = vsel %vm264_vm2, %v1643_v40, %v1645_v13  ;;  %v1720_v7 = vmul.f32 %v1719_v27, %v2791_v2 }
 0x123   : > { %v3744_v60 = vpop.permute.xlu0 %1067  ;;  %v1687_v21 = vrot.slane %v1680_v58, 2  ;;  %v1707_v32 = vrot.slane %v1701_v61, 3  ;;  %v1743_v58 = vmul.f32 %v1741_v37, %v2758_v34 }
 0x124   : > { %v3749_v48 = vpop.permute.xlu1 %1047  ;;  %v794_v4 = vadd.f32 %v3543_v19, %v772_v17  ;;  %v835_v46 = vadd.f32 %v3554_v56, %v813_v14  ;;  %v3773_v19 = vmul.f32 %v1719_v27, %v2806_v16  ;;  %v1686_v56 = vsel %vm299_vm3, %v1684_v11, %v1685_v3 }
 0x125   : > { %1647 = vrot.lane.b32.xlu0 %v1644_v22, %s2617_s27  ;;  %v1702_v22 = vmul.f32 %v1699_v55, %v2766_v42  ;;  %v1726_v38 = vrot.slane %v1720_v7, 3  ;;  %v1708_v55 = vsel %vm334_vm4, %v1706_v6, %v1707_v32  ;;  %v1722_v11 = vmul.f32 %v1719_v27, %v2817_v29 }
 0x126   : > { %1629 = vrot.lane.b32.xlu1 %v1626_v10, %s2617_s27  ;;  %v814_v63 = vadd.f32 %v3560_v30, %v794_v4  ;;  %v855_v40 = vadd.f32 %v3571_v18, %v835_v46  ;;  %v1668_v10 = vsel %vm299_vm3, %v1665_v52, %v1667_v24  ;;  %v1742_v18 = vmul.f32 %v1741_v37, %v2756_v33 }
 0x127   : > { %v3761_v44 = vpop.permute.xlu0 %1087  ;;  %v1761_v14 = vstv %s3764_s4  ;;  %v1749_v27 = vrot.slane %v1743_v58, 4  ;;  %v1729_v7 = vrot.slane %v1722_v11, 3  ;;  %v1803_v6 = vstv %s3793_s8  ;;  %s3978_s4 = sld [smem:[#allocation3 + $0x5a]]  ;;  %s2442_s8 = sld [smem:[#allocation3 + $0x61]] }
 0x128   : > { %v3767_v8 = vpop.permute.xlu1 %1069  ;;  %v836_v30 = vadd.f32 %v3575_v43, %v814_v63  ;;  %v877_v36 = vadd.f32 %v3584_v62, %v855_v40  ;;  %v1727_v43 = vrot.slane %v3773_v19, 3  ;;  %v1688_v62 = vsel %vm299_vm3, %v1685_v3, %v1687_v21 }
 0x129   : > { %1669 = vrot.lane.b32.xlu0 %v1666_v31, %s2617_s27  ;;  %v1709_v31 = vrot.slane %v1702_v22, 3  ;;  %v1748_v61 = vrot.slane %v1742_v18, 4  ;;  %v1763_v46 = vmul.f32 %v1761_v14, %v2806_v16  ;;  %v1764_v18 = vmul.f32 %v1761_v14, %v2817_v29 }
 0x12a   : > { %1649 = vrot.lane.b32.xlu1 %v1646_v59, %s2617_s27  ;;  %v856_v26 = vadd.f32 %v3590_v47, %v836_v30  ;;  %v897_v52 = vadd.f32 %v3600_v12, %v877_v36  ;;  %v1728_v3 = vsel %vm334_vm4, %v1726_v38, %v1727_v43  ;;  %v1744_v59 = vmul.f32 %v1741_v37, %v2766_v42 }
 0x12b   : > { %v3782_v35 = vpop.permute.xlu0 %1109  ;;  %v1710_v63 = vsel %vm334_vm4, %v1707_v32, %v1709_v31  ;;  %v1750_v32 = vsel %vm369_vm5, %v1748_v61, %v1749_v27 }
 0x12c   : > { %v3787_v13 = vpop.permute.xlu1 %1089  ;;  %v878_v47 = vadd.f32 %v3605_v50, %v856_v26  ;;  %v919_v9 = vadd.f32 %v3613_v57, %v897_v52  ;;  %v1783_v50 = vstv %s3776_s5  ;;  %v1762_v57 = vmul.f32 %v1761_v14, %v2791_v2  ;;  %s3983_s5 = sld [smem:[#allocation3 + $0x30]] }
 0x12d   : > { %1689 = vrot.lane.b32.xlu0 %v1686_v56, %s2617_s27  ;;  %v1784_v37 = vmul.f32 %v1783_v50, %v2756_v33  ;;  %v1751_v56 = vrot.slane %v1744_v59, 4  ;;  %v1786_v11 = vmul.f32 %v1783_v50, %v2766_v42  ;;  %v1825_v14 = vstv %s3821_s9  ;;  %s2145_s9 = sld [smem:[#allocation2]] }
 0x12e   : > { %1671 = vrot.lane.b32.xlu1 %v1668_v10, %s2617_s27  ;;  %v898_v4 = vadd.f32 %v3619_v5, %v878_v47  ;;  %v939_v24 = vadd.f32 %v3627_v49, %v919_v9  ;;  %v1768_v10 = vrot.slane %v1762_v57, 4 }
 0x12f   : > { %v3801_v17 = vpop.permute.xlu0 %1129  ;;  %v1790_v38 = vrot.slane %v1784_v37, 5 }
 0x130   : > { %v3806_v12 = vpop.permute.xlu1 %1111  ;;  %v920_v21 = vadd.f32 %v3632_v15, %v898_v4  ;;  %v961_v19 = vadd.f32 %v3642_v41, %v939_v24  ;;  %v1785_v15 = vmul.f32 %v1783_v50, %v2758_v34  ;;  %v1769_v41 = vrot.slane %v1763_v46, 4 }
 0x131   : > { %1711 = vrot.lane.b32.xlu0 %v1708_v55, %s2617_s27  ;;  %v1804_v55 = vmul.f32 %v1803_v6, %v2791_v2  ;;  %v1826_v24 = vmul.f32 %v1825_v14, %v2756_v33  ;;  %v1827_v50 = vmul.f32 %v1825_v14, %v2758_v34  ;;  %v1793_v46 = vrot.slane %v1786_v11, 5 }
 0x132   : > { %1691 = vrot.lane.b32.xlu1 %v1688_v62, %s2617_s27  ;;  %v940_v40 = vadd.f32 %v3647_v39, %v920_v21  ;;  %v981_v30 = vadd.f32 %v3656_v45, %v961_v19  ;;  %v1730_v39 = vsel %vm334_vm4, %v1727_v43, %v1729_v7  ;;  %v1791_v62 = vrot.slane %v1785_v15, 5 }
 0x133   : > { %v3818_v5 = vpop.permute.xlu0 %1151  ;;  %v1752_v43 = vsel %vm369_vm5, %v1749_v27, %v1751_v56  ;;  %v1845_v27 = vstv %s3834_s10  ;;  %v1806_v21 = vmul.f32 %v1803_v6, %v2817_v29  ;;  %v1833_v56 = vrot.slane %v1827_v50, 6  ;;  %s2619_s10 = smov 3  }
 0x134   : > { %v3824_v49 = vpop.permute.xlu1 %1131  ;;  %v962_v22 = vadd.f32 %v3661_v0, %v940_v40  ;;  %v1003_v26 = vadd.f32 %v3672_v51, %v981_v30  ;;  %v1805_v0 = vmul.f32 %v1803_v6, %v2806_v16  ;;  %v1770_v51 = vsel %vm369_vm5, %v1768_v10, %v1769_v41 }
 0x135   : > { %1731 = vrot.lane.b32.xlu0 %v1728_v3, %s2617_s27  ;;  %v1792_v4 = vsel %vm404_vm6, %v1790_v38, %v1791_v62  ;;  %v1810_v3 = vrot.slane %v1804_v55, 5  ;;  %v1846_v37 = vmul.f32 %v1845_v27, %v2791_v2  ;;  %v1847_v15 = vmul.f32 %v1845_v27, %v2806_v16 }
 0x136   : > { %1713 = vrot.lane.b32.xlu1 %v1710_v63, %s2617_s27  ;;  %v982_v52 = vadd.f32 %v3676_v25, %v962_v22  ;;  %v1023_v58 = vadd.f32 %v3689_v1, %v1003_v26  ;;  %v1771_v25 = vrot.slane %v1764_v18, 4  ;;  %v1811_v59 = vrot.slane %v1805_v0, 5 }
 0x137   : > { %v3837_v36 = vpop.permute.xlu0 %1171  ;;  %v1813_v30 = vrot.slane %v1806_v21, 5  ;;  %v1853_v18 = vrot.slane %v1847_v15, 6 }
 0x138   : > { %v3842_v45 = vpop.permute.xlu1 %1153  ;;  %v1004_v47 = vadd.f32 %v3693_v23, %v982_v52  ;;  %v1038_v9 = vadd.f32 %v3705_v53, %v1023_v58  ;;  %v1812_v19 = vsel %vm404_vm6, %v1810_v3, %v1811_v59  ;;  %v1848_v52 = vmul.f32 %v1845_v27, %v2817_v29 }
 0x139   : > { %1753 = vrot.lane.b32.xlu0 %v1750_v32, %s2617_s27  ;;  %v1828_v32 = vmul.f32 %v1825_v14, %v2766_v42  ;;  %v1867_v58 = vstv %s3879_s13  ;;  %s176_s13 = sand.u32 1, %s2602_s15  }
 0x13a   : > { %1733 = vrot.lane.b32.xlu1 %v1730_v39, %s2617_s27  ;;  %v1024_v1 = vadd.f32 %v3710_v20, %v1004_v47  ;;  %v1051_v23 = vadd.f32 %v3726_v28, %v1038_v9  ;;  %v1772_v20 = vsel %vm369_vm5, %v1769_v41, %v1771_v25  ;;  %v1852_v39 = vrot.slane %v1846_v37, 6 }
 0x13b   : > { %v3853_v31 = vpop.permute.xlu0 %1193  ;;  %v1835_v38 = vrot.slane %v1828_v32, 6  ;;  %v1855_v47 = vrot.slane %v1848_v52, 6  ;;  %v1868_v14 = vmul.f32 %v1867_v58, %v2756_v33  ;;  %v1915_v9 = vstv %s3887_s7 }
 0x13c   : > { %v3858_v61 = vpop.permute.xlu1 %1173  ;;  %v1039_v53 = vadd.f32 %v3730_v54, %v1024_v1  ;;  %v1073_v63 = vadd.f32 %v3744_v60, %v1051_v23  ;;  %v1832_v54 = vrot.slane %v1826_v24, 6  ;;  %v1916_v50 = vmul.f32 %v1915_v9, %v2791_v2 }
 0x13d   : > { %1773 = vrot.lane.b32.xlu0 %v1770_v51, %s2617_s27 }
 0x13e   : > { %1755 = vrot.lane.b32.xlu1 %v1752_v43, %s2617_s27  ;;  %v1052_v28 = vadd.f32 %v3749_v48, %v1039_v53  ;;  %v1093_v40 = vadd.f32 %v3761_v44, %v1073_v63  ;;  %v1794_v48 = vsel %vm404_vm6, %v1791_v62, %v1793_v46  ;;  %v1869_v53 = vmul.f32 %v1867_v58, %v2758_v34 }
 0x13f   : > { %v1214_v57 = vpop.permute.xlu0 %1213 }
 0x140   : > { %v1196_v7 = vpop.permute.xlu1 %1195  ;;  %v1074_v60 = vadd.f32 %v3767_v8, %v1052_v28  ;;  %v1115_v10 = vadd.f32 %v3782_v35, %v1093_v40  ;;  %v1834_v8 = vsel %vm439_vm7, %v1832_v54, %v1833_v56 }
 0x141   : > { %1795 = vrot.lane.b32.xlu0 %v1792_v4, %s2617_s27  ;;  %v1880_v4 = vstv %s3892_s18 }
 0x142   : > { %1775 = vrot.lane.b32.xlu1 %v1772_v20, %s2617_s27  ;;  %v1094_v41 = vadd.f32 %v3787_v13, %v1074_v60  ;;  %v1135_v22 = vadd.f32 %v3801_v17, %v1115_v10  ;;  %v1814_v13 = vsel %vm404_vm6, %v1811_v59, %v1813_v30  ;;  %v1917_v20 = vmul.f32 %v1915_v9, %v2806_v16 }
 0x143   : > { %v1236_v6 = vpop.permute.xlu0 %1235  ;;  %v1882_v32 = vmul.f32 %v1880_v4, %v2806_v16 }
 0x144   : > { %v1216_v44 = vpop.permute.xlu1 %1215  ;;  %v1116_v35 = vadd.f32 %v3806_v12, %v1094_v41  ;;  %v1157_v62 = vadd.f32 %v3818_v5, %v1135_v22  ;;  %v1854_v12 = vsel %vm439_vm7, %v1852_v39, %v1853_v18  ;;  %v1836_v5 = vsel %vm439_vm7, %v1833_v56, %v1835_v38 }
 0x145   : > { %1815 = vrot.lane.b32.xlu0 %v1812_v19, %s2617_s27  ;;  %v1922_v56 = vrot.slane %v1916_v50, 1  ;;  %v1923_v60 = vrot.slane %v1917_v20, 1  ;;  %v1957_v39 = vstv %s3918_s25 }
 0x146   : > { %1797 = vrot.lane.b32.xlu1 %v1794_v48, %s2617_s27  ;;  %v1136_v55 = vadd.f32 %v3824_v49, %v1116_v35  ;;  %v1177_v0 = vadd.f32 %v3837_v36, %v1157_v62  ;;  %v1895_v49 = vstv %s2431_s6  ;;  %s2344_s6 = sshll.u32 %s176_s13, 6 }
 0x147   : > { %v1256_v26 = vpop.permute.xlu0 %1255  ;;  %v1897_v3 = vmul.f32 %v1895_v49, %v2758_v34  ;;  %v1898_v37 = vmul.f32 %v1895_v49, %v2766_v42  ;;  %s178_s7 = scalar_lea.vmem [#allocation6], %s2344_s6 }
 0x148   : > { %v1238_v17 = vpop.permute.xlu1 %1237  ;;  %v1158_v43 = vadd.f32 %v3842_v45, %v1136_v55  ;;  %v1199_v25 = vadd.f32 %v3853_v31, %v1177_v0  ;;  %v1896_v45 = vmul.f32 %v1895_v49, %v2756_v33  ;;  %v1856_v31 = vsel %vm439_vm7, %v1853_v18, %v1855_v47 }
 0x149   : > { %1837 = vrot.lane.b32.xlu0 %v1834_v8, %s2617_s27  ;;  %v1903_v63 = vrot.slane %v1897_v3, 1  ;;  %v1905_v22 = vrot.slane %v1898_v37, 1  ;;  %v1918_v8 = vmul.f32 %v1915_v9, %v2817_v29  ;;  %v1959_v55 = vmul.f32 %v1957_v39, %v2806_v16 }
 0x14a   : > { %1817 = vrot.lane.b32.xlu1 %v1814_v13, %s2617_s27  ;;  %v1178_v36 = vadd.f32 %v3858_v61, %v1158_v43  ;;  %v1219_v1 = vadd.f32 %v1214_v57, %v1199_v25  ;;  %v1881_v57 = vmul.f32 %v1880_v4, %v2791_v2  ;;  %v1902_v21 = vrot.slane %v1896_v45, 1 }
 0x14b   : > { %v1278_v51 = vpop.permute.xlu0 %1277  ;;  %v1924_v13 = vsel %vm264_vm2, %v1922_v56, %v1923_v60  ;;  %v1979_v0 = vstv %s3927_s26  ;;  %v1906_v43 = vsel %vm264_vm2, %v1903_v63, %v1905_v22  ;;  %s2620_s26 = smov [#allocation6]  }
 0x14c   : > { %v1258_v11 = vpop.permute.xlu1 %1257  ;;  %v1200_v59 = vadd.f32 %v1196_v7, %v1178_v36  ;;  %v1241_v61 = vadd.f32 %v1236_v6, %v1219_v1  ;;  %v1937_v7 = vstv %s3904_s20  ;;  %v1904_v10 = vsel %vm264_vm2, %v1902_v21, %v1903_v63 }
 0x14d   : > { %1857 = vrot.lane.b32.xlu0 %v1854_v12, %s2617_s27  ;;  %v1938_v6 = vmul.f32 %v1937_v7, %v2756_v33  ;;  %v1939_v48 = vmul.f32 %v1937_v7, %v2758_v34  ;;  %v1981_v36 = vmul.f32 %v1979_v0, %v2758_v34  ;;  %v1965_v1 = vrot.slane %v1959_v55, 2 }
 0x14e   : > { %1839 = vrot.lane.b32.xlu1 %v1836_v5, %s2617_s27  ;;  %v1220_v27 = vadd.f32 %v1216_v44, %v1200_v59  ;;  %v1261_v46 = vadd.f32 %v1256_v26, %v1241_v61  ;;  %v1940_v5 = vmul.f32 %v1937_v7, %v2766_v42  ;;  %v1960_v59 = vmul.f32 %v1957_v39, %v2817_v29 }
 0x14f   : > { %v1298_v23 = vpop.permute.xlu0 %1297  ;;  %v1944_v38 = vrot.slane %v1938_v6, 2  ;;  %v1945_v52 = vrot.slane %v1939_v48, 2  ;;  %v2041_v48 = vstv %s3955_s29  ;;  %v2063_v55 = vstv %s3968_s30 }
 0x150   : > { %v1280_v24 = vpop.permute.xlu1 %1279  ;;  %v1242_v28 = vadd.f32 %v1238_v17, %v1220_v27  ;;  %v1283_v40 = vadd.f32 %v1278_v51, %v1261_v46  ;;  %v1958_v17 = vmul.f32 %v1957_v39, %v2791_v2  ;;  %v1925_v51 = vrot.slane %v1918_v8, 1 }
 0x151   : > { %1872 = vrot.lane.b32.xlu0 %v1868_v14, %s2618_s12  ;;  %v1946_v14 = vsel %vm299_vm3, %v1944_v38, %v1945_v52  ;;  %v1947_v3 = vrot.slane %v1940_v5, 2  ;;  %v1987_v27 = vrot.slane %v1981_v36, 3  ;;  %v2021_v46 = vstv %s3946_s28 }
 0x152   : > { %1859 = vrot.lane.b32.xlu1 %v1856_v31, %s2617_s27  ;;  %v1262_v15 = vadd.f32 %v1258_v11, %v1242_v28  ;;  %v1303_v30 = vadd.f32 %v1298_v23, %v1283_v40  ;;  %s3938_s27 = sld [smem:[#allocation3 + $0x4c]]  ;;  %v1980_v11 = vmul.f32 %v1979_v0, %v2756_v33  ;;  %v1964_v9 = vrot.slane %v1958_v17, 2 }
 0x153   : > { %v1313_v19 = vpop.permute.xlu0 %1312  ;;  %v1926_v45 = vsel %vm264_vm2, %v1923_v60, %v1925_v51  ;;  %v1948_v63 = vsel %vm299_vm3, %v1945_v52, %v1947_v3  ;;  %v1967_v7 = vrot.slane %v1960_v59, 2  ;;  %v1982_v28 = vmul.f32 %v1979_v0, %v2766_v42 }
 0x154   : > { %v1300_v54 = vpop.permute.xlu1 %1299  ;;  %v1284_v44 = vadd.f32 %v1280_v24, %v1262_v15  ;;  %v1318_v18 = vadd.f32 %v1313_v19, %v1303_v30  ;;  %v1986_v50 = vrot.slane %v1980_v11, 3  ;;  %v2022_v56 = vmul.f32 %v2021_v46, %v2756_v33 }
 0x155   : > { %1885 = vrot.lane.b32.xlu0 %v1881_v57, %s2618_s12  ;;  %v2023_v6 = vmul.f32 %v2021_v46, %v2758_v34  ;;  %v2042_v39 = vmul.f32 %v2041_v48, %v2791_v2  ;;  %v2024_v17 = vmul.f32 %v2021_v46, %v2766_v42  ;;  %v2105_v59 = vstv %s3983_s5 }
 0x156   : > { %1874 = vrot.lane.b32.xlu1 %v1869_v53, %s2618_s12  ;;  %v1304_v26 = vadd.f32 %v1300_v54, %v1284_v44  ;;  %v1966_v53 = vsel %vm299_vm3, %v1964_v9, %v1965_v1  ;;  %v1988_v54 = vsel %vm334_vm4, %v1986_v50, %v1987_v27  ;;  %v2083_v9 = vstv %s3978_s4 }
 0x157   : > { %v1326_v41 = vpop.permute.xlu0 %1325  ;;  %v2031_v36 = vrot.slane %v2024_v17, 4 }
 0x158   : > { %v1315_v35 = vpop.permute.xlu1 %1314  ;;  %v1331_v62 = vadd.f32 %v1326_v41, %v1318_v18  ;;  %v1999_v23 = vstv %s3938_s27  ;;  %v2043_v18 = vmul.f32 %v2041_v48, %v2806_v16  ;;  %s2548_s27 = sshll.u32 %s2620_s26, 4  ;;  %s2549_s27 = int_to_ptr.vmem [resolvable:$false] %s2548_s27 }
 0x159   : > { %1907 = vrot.lane.b32.xlu0 %v1904_v10, %s2618_s12  ;;  %v1319_v12 = vadd.f32 %v1315_v35, %v1304_v26  ;;  %v2000_v57 = vmul.f32 %v1999_v23, %v2791_v2  ;;  %v2001_v20 = vmul.f32 %v1999_v23, %v2806_v16  ;;  %v1989_v10 = vrot.slane %v1982_v28, 3  ;;  %s2550_s28 = scalar_lea.vmem %s2549_s27, 2048 }
 0x15a   : > { %1887 = vrot.lane.b32.xlu1 %v1882_v32, %s2618_s12  ;;  %v1968_v32 = vsel %vm299_vm3, %v1965_v1, %v1967_v7  ;;  %v2002_v44 = vmul.f32 %v1999_v23, %v2817_v29  ;;  %v2028_v26 = vrot.slane %v2022_v56, 4  ;;  %v2049_v51 = vrot.slane %v2043_v18, 4 }
 0x15b   : > { %v1348_v58 = vpop.permute.xlu0 %1347  ;;  %v2006_v15 = vrot.slane %v2000_v57, 3  ;;  %v2007_v60 = vrot.slane %v2001_v20, 3  ;;  %v1990_v52 = vsel %vm334_vm4, %v1987_v27, %v1989_v10  ;;  %v2066_v57 = vmul.f32 %v2063_v55, %v2766_v42 }
 0x15c   : > { %v1328_v47 = vpop.permute.xlu1 %1327  ;;  %v1353_v49 = vadd.f32 %v1348_v58, %v1331_v62  ;;  %v2009_v62 = vrot.slane %v2002_v44, 3 }
 0x15d   : > { %v1332_v25 = vadd.f32 %v1328_v47, %v1319_v12  ;;  %1927 = vrot.lane.b32.xlu0 %v1924_v13, %s2618_s12  ;;  %v2008_v35 = vsel %vm334_vm4, %v2006_v15, %v2007_v60  ;;  %v2029_v13 = vrot.slane %v2023_v6, 4  ;;  %v2064_v47 = vmul.f32 %v2063_v55, %v2756_v33 }
 0x15e   : > { %1909 = vrot.lane.b32.xlu1 %v1906_v43, %s2618_s12  ;;  %v2048_v43 = vrot.slane %v2042_v39, 4  ;;  %v2010_v11 = vsel %vm334_vm4, %v2007_v60, %v2009_v62  ;;  %v2073_v56 = vrot.slane %v2066_v57, 5  ;;  %v2086_v15 = vmul.f32 %v2083_v9, %v2817_v29 }
 0x15f   : > { %v1368_v4 = vpop.permute.xlu0 %1367  ;;  %v2030_v5 = vsel %vm369_vm5, %v2028_v26, %v2029_v13  ;;  %v2070_v23 = vrot.slane %v2064_v47, 5  ;;  %v2032_v27 = vsel %vm369_vm5, %v2029_v13, %v2031_v36  ;;  %v2125_v60 = vstv %s2442_s8 }
 0x160   : > { %v1350_v31 = vpop.permute.xlu1 %1349  ;;  %v1373_v61 = vadd.f32 %v1368_v4, %v1353_v49  ;;  %v2065_v49 = vmul.f32 %v2063_v55, %v2758_v34  ;;  %v2050_v3 = vsel %vm369_vm5, %v2048_v43, %v2049_v51  ;;  %v2127_v44 = vmul.f32 %v2125_v60, %v2806_v16 }
 0x161   : > { %v1354_v24 = vadd.f32 %v1350_v31, %v1332_v25  ;;  %1949 = vrot.lane.b32.xlu0 %v1946_v14, %s2618_s12  ;;  %v2044_v14 = vmul.f32 %v2041_v48, %v2817_v29  ;;  %v2108_v39 = vmul.f32 %v2105_v59, %v2766_v42  ;;  %v2128_v62 = vmul.f32 %v2125_v60, %v2817_v29 }
 0x162   : > { %1929 = vrot.lane.b32.xlu1 %v1926_v45, %s2618_s12  ;;  %v2071_v31 = vrot.slane %v2065_v49, 5 }
 0x163   : > { %v1390_v21 = vpop.permute.xlu0 %1389 }
 0x164   : > { %v1370_v19 = vpop.permute.xlu1 %1369  ;;  %v1395_v37 = vadd.f32 %v1390_v21, %v1373_v61  ;;  %v2084_v61 = vmul.f32 %v2083_v9, %v2791_v2  ;;  %v2072_v7 = vsel %vm404_vm6, %v2070_v23, %v2071_v31 }
 0x165   : > { %v1374_v40 = vadd.f32 %v1370_v19, %v1354_v24  ;;  %1969 = vrot.lane.b32.xlu0 %v1966_v53, %s2618_s12  ;;  %v2085_v24 = vmul.f32 %v2083_v9, %v2806_v16  ;;  %v2051_v53 = vrot.slane %v2044_v14, 4  ;;  %v2115_v16 = vrot.slane %v2108_v39, 6 }
 0x166   : > { %1951 = vrot.lane.b32.xlu1 %v1948_v63, %s2618_s12  ;;  %v2106_v63 = vmul.f32 %v2105_v59, %v2756_v33  ;;  %v2090_v28 = vrot.slane %v2084_v61, 5 }
 0x167   : > { %v1410_v30 = vpop.permute.xlu0 %1409  ;;  %v2091_v19 = vrot.slane %v2085_v24, 5 }
 0x168   : > { %v1392_v41 = vpop.permute.xlu1 %1391  ;;  %v1415_v22 = vadd.f32 %v1410_v30, %v1395_v37  ;;  %v2107_v37 = vmul.f32 %v2105_v59, %v2758_v34  ;;  %v2112_v33 = vrot.slane %v2106_v63, 6  ;;  %v2126_v34 = vmul.f32 %v2125_v60, %v2791_v2 }
 0x169   : > { %v1396_v8 = vadd.f32 %v1392_v41, %v1374_v40  ;;  %1991 = vrot.lane.b32.xlu0 %v1988_v54, %s2618_s12  ;;  %v2052_v54 = vsel %vm369_vm5, %v2049_v51, %v2051_v53 }
 0x16a   : > { %1971 = vrot.lane.b32.xlu1 %v1968_v32, %s2618_s12  ;;  %v2092_v32 = vsel %vm404_vm6, %v2090_v28, %v2091_v19  ;;  %v2113_v10 = vrot.slane %v2107_v37, 6  ;;  %v2132_v13 = vrot.slane %v2126_v34, 6 }
 0x16b   : > { %v1432_v38 = vpop.permute.xlu0 %1431 }
 0x16c   : > { %v1412_v0 = vpop.permute.xlu1 %1411  ;;  %v1437_v12 = vadd.f32 %v1432_v38, %v1415_v22  ;;  %v2074_v22 = vsel %vm404_vm6, %v2071_v31, %v2073_v56  ;;  %v2114_v26 = vsel %vm439_vm7, %v2112_v33, %v2113_v10  ;;  %v2133_v38 = vrot.slane %v2127_v44, 6 }
 0x16d   : > { %v1416_v58 = vadd.f32 %v1412_v0, %v1396_v8  ;;  %2011 = vrot.lane.b32.xlu0 %v2008_v35, %s2618_s12  ;;  %v2093_v8 = vrot.slane %v2086_v15, 5  ;;  %v2116_v0 = vsel %vm439_vm7, %v2113_v10, %v2115_v16 }
 0x16e   : > { %1993 = vrot.lane.b32.xlu1 %v1990_v52, %s2618_s12  ;;  %v2134_v42 = vsel %vm439_vm7, %v2132_v13, %v2133_v38 }
 0x16f   : > { %v1452_v25 = vpop.permute.xlu0 %1451  ;;  %v2094_v2 = vsel %vm404_vm6, %v2091_v19, %v2093_v8 }
 0x170   : > { %v1434_v1 = vpop.permute.xlu1 %1433  ;;  %v1457_v4 = vadd.f32 %v1452_v25, %v1437_v12  ;;  %v2135_v12 = vrot.slane %v2128_v62, 6 }
 0x171   : > { %v1438_v45 = vadd.f32 %v1434_v1, %v1416_v58  ;;  %2033 = vrot.lane.b32.xlu0 %v2030_v5, %s2618_s12 }
 0x172   : > { %2013 = vrot.lane.b32.xlu1 %v2010_v11, %s2618_s12  ;;  %v2136_v51 = vsel %vm439_vm7, %v2133_v38, %v2135_v12 }
 0x173   : > { %v1474_v50 = vpop.permute.xlu0 %1473 }
 0x174   : > { %v1454_v20 = vpop.permute.xlu1 %1453  ;;  %v1479_v46 = vadd.f32 %v1474_v50, %v1457_v4 }
 0x175   : > { %v1458_v21 = vadd.f32 %v1454_v20, %v1438_v45  ;;  %2053 = vrot.lane.b32.xlu0 %v2050_v3, %s2618_s12 }
 0x176   : > { %2035 = vrot.lane.b32.xlu1 %v2032_v27, %s2618_s12 }
 0x177   : > { %v1494_v40 = vpop.permute.xlu0 %1493 }
 0x178   : > { %v1476_v6 = vpop.permute.xlu1 %1475  ;;  %v1499_v48 = vadd.f32 %v1494_v40, %v1479_v46 }
 0x179   : > { %v1480_v30 = vadd.f32 %v1476_v6, %v1458_v21  ;;  %2075 = vrot.lane.b32.xlu0 %v2072_v7, %s2618_s12 }
 0x17a   : > { %2055 = vrot.lane.b32.xlu1 %v2052_v54, %s2618_s12 }
 0x17b   : > { %v1516_v41 = vpop.permute.xlu0 %1515 }
 0x17c   : > { %v1496_v18 = vpop.permute.xlu1 %1495  ;;  %v1521_v63 = vadd.f32 %v1516_v41, %v1499_v48 }
 0x17d   : > { %v1500_v35 = vadd.f32 %v1496_v18, %v1480_v30  ;;  %2095 = vrot.lane.b32.xlu0 %v2092_v32, %s2618_s12 }
 0x17e   : > { %2077 = vrot.lane.b32.xlu1 %v2074_v22, %s2618_s12 }
 0x17f   : > { %v1536_v52 = vpop.permute.xlu0 %1535 }
 0x180   : > { %v1518_v17 = vpop.permute.xlu1 %1517  ;;  %v1541_v28 = vadd.f32 %v1536_v52, %v1521_v63 }
 0x181   : > { %2117 = vrot.lane.b32.xlu0 %v2114_v26, %s2618_s12  ;;  %v1522_v40 = vadd.f32 %v1518_v17, %v1500_v35 }
 0x182   : > { %2097 = vrot.lane.b32.xlu1 %v2094_v2, %s2618_s12 }
 0x183   : > { %v1558_v55 = vpop.permute.xlu0 %1557 }
 0x184   : > { %v1538_v58 = vpop.permute.xlu1 %1537  ;;  %v1563_v37 = vadd.f32 %v1558_v55, %v1541_v28 }
 0x185   : > { %2137 = vrot.lane.b32.xlu0 %v2134_v42, %s2618_s12  ;;  %v1542_v60 = vadd.f32 %v1538_v58, %v1522_v40 }
 0x186   : > { %2119 = vrot.lane.b32.xlu1 %v2116_v0, %s2618_s12 }
 0x187   : > { %v1578_v43 = vpop.permute.xlu0 %1577 }
 0x188   : > { %v1560_v29 = vpop.permute.xlu1 %1559  ;;  %v1583_v56 = vadd.f32 %v1578_v43, %v1563_v37 }
 0x189   : > { %v1564_v30 = vadd.f32 %v1560_v29, %v1542_v60 }
 0x18a   : > { %2139 = vrot.lane.b32.xlu1 %v2136_v51, %s2618_s12 }
 0x18b   : > { %v1593_v5 = vpop.permute.xlu0 %1592 }
 0x18c   : > { %v1580_v47 = vpop.permute.xlu1 %1579  ;;  %v1598_v6 = vadd.f32 %v1593_v5, %v1583_v56 }
 0x18d   : > { %v1584_v34 = vadd.f32 %v1580_v47, %v1564_v30 }
 0x18f   : > { %v1606_v49 = vpop.permute.xlu0 %1605 }
 0x190   : > { %v1595_v25 = vpop.permute.xlu1 %1594  ;;  %v1611_v32 = vadd.f32 %v1606_v49, %v1598_v6 }
 0x191   : > { %v1599_v22 = vadd.f32 %v1595_v25, %v1584_v34 }
 0x193   : > { %v1628_v11 = vpop.permute.xlu0 %1627 }
 0x194   : > { %v1608_v36 = vpop.permute.xlu1 %1607  ;;  %v1633_v44 = vadd.f32 %v1628_v11, %v1611_v32 }
 0x195   : > { %v1612_v41 = vadd.f32 %v1608_v36, %v1599_v22 }
 0x197   : > { %v1648_v14 = vpop.permute.xlu0 %1647 }
 0x198   : > { %v1630_v9 = vpop.permute.xlu1 %1629  ;;  %v1653_v39 = vadd.f32 %v1648_v14, %v1633_v44 }
 0x199   : > { %v1634_v26 = vadd.f32 %v1630_v9, %v1612_v41 }
 0x19b   : > { %v1670_v1 = vpop.permute.xlu0 %1669 }
 0x19c   : > { %v1650_v4 = vpop.permute.xlu1 %1649  ;;  %v1675_v18 = vadd.f32 %v1670_v1, %v1653_v39 }
 0x19d   : > { %v1654_v52 = vadd.f32 %v1650_v4, %v1634_v26 }
 0x19f   : > { %v1690_v45 = vpop.permute.xlu0 %1689 }
 0x1a0   : > { %v1672_v3 = vpop.permute.xlu1 %1671  ;;  %v1695_v35 = vadd.f32 %v1690_v45, %v1675_v18 }
 0x1a1   : > { %v1676_v16 = vadd.f32 %v1672_v3, %v1654_v52 }
 0x1a3   : > { %v1712_v59 = vpop.permute.xlu0 %1711 }
 0x1a4   : > { %v1692_v23 = vpop.permute.xlu1 %1691  ;;  %v1717_v2 = vadd.f32 %v1712_v59, %v1695_v35 }
 0x1a5   : > { %v1696_v55 = vadd.f32 %v1692_v23, %v1676_v16 }
 0x1a7   : > { %v1732_v31 = vpop.permute.xlu0 %1731 }
 0x1a8   : > { %v1714_v61 = vpop.permute.xlu1 %1713  ;;  %v1737_v17 = vadd.f32 %v1732_v31, %v1717_v2 }
 0x1a9   : > { %v1718_v12 = vadd.f32 %v1714_v61, %v1696_v55 }
 0x1ab   : > { %v1754_v24 = vpop.permute.xlu0 %1753 }
 0x1ac   : > { %v1734_v50 = vpop.permute.xlu1 %1733  ;;  %v1759_v0 = vadd.f32 %v1754_v24, %v1737_v17 }
 0x1ad   : > { %v1738_v29 = vadd.f32 %v1734_v50, %v1718_v12 }
 0x1af   : > { %v1774_v27 = vpop.permute.xlu0 %1773 }
 0x1b0   : > { %v1756_v53 = vpop.permute.xlu1 %1755  ;;  %v1779_v43 = vadd.f32 %v1774_v27, %v1759_v0 }
 0x1b1   : > { %v1760_v47 = vadd.f32 %v1756_v53, %v1738_v29 }
 0x1b3   : > { %v1796_v57 = vpop.permute.xlu0 %1795 }
 0x1b4   : > { %v1776_v20 = vpop.permute.xlu1 %1775  ;;  %v1801_v5 = vadd.f32 %v1796_v57, %v1779_v43 }
 0x1b5   : > { %v1780_v36 = vadd.f32 %v1776_v20, %v1760_v47 }
 0x1b7   : > { %v1816_v46 = vpop.permute.xlu0 %1815 }
 0x1b8   : > { %v1798_v21 = vpop.permute.xlu1 %1797  ;;  %v1821_v25 = vadd.f32 %v1816_v46, %v1801_v5 }
 0x1b9   : > { %v1802_v9 = vadd.f32 %v1798_v21, %v1780_v36 }
 0x1bb   : > { %v1838_v7 = vpop.permute.xlu0 %1837 }
 0x1bc   : > { %v1818_v19 = vpop.permute.xlu1 %1817  ;;  %v1843_v14 = vadd.f32 %v1838_v7, %v1821_v25 }
 0x1bd   : > { %v1822_v3 = vadd.f32 %v1818_v19, %v1802_v9 }
 0x1bf   : > { %v1858_v54 = vpop.permute.xlu0 %1857 }
 0x1c0   : > { %v1840_v15 = vpop.permute.xlu1 %1839  ;;  %v1863_v4 = vadd.f32 %v1858_v54, %v1843_v14 }
 0x1c1   : > { %v1844_v23 = vadd.f32 %v1840_v15, %v1822_v3 }
 0x1c3   : > { %v1873_v33 = vpop.permute.xlu0 %1872 }
 0x1c4   : > { %v1860_v10 = vpop.permute.xlu1 %1859  ;;  %v1878_v59 = vadd.f32 %v1873_v33, %v1863_v4 }
 0x1c5   : > { %v1864_v27 = vadd.f32 %v1860_v10, %v1844_v23 }
 0x1c7   : > { %v1886_v8 = vpop.permute.xlu0 %1885 }
 0x1c8   : > { %v1875_v48 = vpop.permute.xlu1 %1874  ;;  %v1891_v61 = vadd.f32 %v1886_v8, %v1878_v59  ;;  %v2518_v59 = vld [vmem:[%s2721_s11 + $0x18] sm:$0xff] }
 0x1c9   : > { %v1879_v50 = vadd.f32 %v1875_v48, %v1864_v27  ;;  %v2520_v27 = vld [vmem:[%s2721_s11 + $0x28] sm:$0x3f] }
 0x1cb   : > { %v1908_v13 = vpop.permute.xlu0 %1907 }
 0x1cc   : > { %v1888_v38 = vpop.permute.xlu1 %1887  ;;  %v1913_v63 = vadd.f32 %v1908_v13, %v1891_v61  ;;  %v2519_v61 = vld [vmem:[%s2721_s11 + $0x10] sm:$0x3f] }
 0x1cd   : > { %v1892_v46 = vadd.f32 %v1888_v38, %v1879_v50  ;;  %v2146_v38 = vstv %s2145_s9  ;;  %v2521_v50 = vld [vmem:[%s2721_s11 + $0x30] sm:$0xff] }
 0x1cf   : > { %v1928_v62 = vpop.permute.xlu0 %1927 }
 0x1d0   : > { %v1910_v42 = vpop.permute.xlu1 %1909  ;;  %v1933_v53 = vadd.f32 %v1928_v62, %v1913_v63 }
 0x1d1   : > { %v1914_v20 = vadd.f32 %v1910_v42, %v1892_v46 }
 0x1d3   : > { %v1950_v58 = vpop.permute.xlu0 %1949 }
 0x1d4   : > { %v1930_v51 = vpop.permute.xlu1 %1929  ;;  %v1955_v37 = vadd.f32 %v1950_v58, %v1933_v53  ;;  %v2522_v53 = vld [vmem:[%s2721_s11 + $0x48] sm:$0xff] }
 0x1d5   : > { %v1934_v54 = vadd.f32 %v1930_v51, %v1914_v20 }
 0x1d7   : > { %v1970_v49 = vpop.permute.xlu0 %1969 }
 0x1d8   : > { %v1952_v11 = vpop.permute.xlu1 %1951  ;;  %v1975_v21 = vadd.f32 %v1970_v49, %v1955_v37  ;;  %v2523_v37 = vld [vmem:[%s2721_s11 + $0x40] sm:$0x3f] }
 0x1d9   : > { %v1956_v19 = vadd.f32 %v1952_v11, %v1934_v54 }
 0x1db   : > { %v1992_v1 = vpop.permute.xlu0 %1991 }
 0x1dc   : > { %v1972_v45 = vpop.permute.xlu1 %1971  ;;  %v1997_v56 = vadd.f32 %v1992_v1, %v1975_v21 }
 0x1dd   : > { %v1976_v30 = vadd.f32 %v1972_v45, %v1956_v19  ;;  %v2517_v45 = vld [vmem:[%s2721_s11] sm:$0xff] }
 0x1df   : > { %v2012_v31 = vpop.permute.xlu0 %2011 }
 0x1e0   : > { %v1994_v24 = vpop.permute.xlu1 %1993  ;;  %v2017_v15 = vadd.f32 %v2012_v31, %v1997_v56  ;;  %v2526_v56 = vld [vmem:[%s2721_s11 + $0x38] sm:$0xff] }
 0x1e1   : > { %v1998_v32 = vadd.f32 %v1994_v24, %v1976_v30 }
 0x1e3   : > { %v2034_v57 = vpop.permute.xlu0 %2033 }
 0x1e4   : > { %v2014_v28 = vpop.permute.xlu1 %2013  ;;  %v2039_v33 = vadd.f32 %v2034_v57, %v2017_v15 }
 0x1e5   : > { %v2018_v22 = vadd.f32 %v2014_v28, %v1998_v32 }
 0x1e7   : > { %v2054_v7 = vpop.permute.xlu0 %2053 }
 0x1e8   : > { %v2036_v40 = vpop.permute.xlu1 %2035  ;;  %v2059_v34 = vadd.f32 %v2054_v7, %v2039_v33  ;;  %v2524_v7 = vld [vmem:[%s2721_s11 + $0x8] sm:$0xff] }
 0x1e9   : > { %v2040_v39 = vadd.f32 %v2036_v40, %v2018_v22  ;;  %v2525_v40 = vld [vmem:[%s2721_s11 + $0x20] sm:$0xff] }
 0x1eb   : > { %v2076_v60 = vpop.permute.xlu0 %2075 }
 0x1ec   : > { %v2056_v6 = vpop.permute.xlu1 %2055  ;;  %v2081_v8 = vadd.f32 %v2076_v60, %v2059_v34  ;;  %v2527_v60 = vld [vmem:[%s2721_s11 + $0x58] sm:$0x3f] }
 0x1ed   : > { %v2060_v26 = vadd.f32 %v2056_v6, %v2040_v39  ;;  %v2528_v6 = vld [vmem:[%s2721_s11 + $0x50] sm:$0xff]  ;;  %s2448_s11 = sshll.u32 %s2667_s2, 10  ;;  %s4079_s2 = scalar_lea.sflag [#allocation4], %s176_s13 }
 0x1ee   : > { %s4071_s25 = scalar_lea.hbm %s4123_s3, %s2448_s11 }
 0x1ef   : > { %v2096_v10 = vpop.permute.xlu0 %2095 }
 0x1f0   : > { %v2078_v44 = vpop.permute.xlu1 %2077  ;;  %v2101_v41 = vadd.f32 %v2096_v10, %v2081_v8 }
 0x1f1   : > { %v2082_v35 = vadd.f32 %v2078_v44, %v2060_v26 }
 0x1f3   : > { %v2118_v48 = vpop.permute.xlu0 %2117 }
 0x1f4   : > { %v2098_v18 = vpop.permute.xlu1 %2097  ;;  %v2123_v13 = vadd.f32 %v2118_v48, %v2101_v41 }
 0x1f5   : > { %v2102_v62 = vadd.f32 %v2098_v18, %v2082_v35 }
 0x1f7   : > { %v2138_v52 = vpop.permute.xlu0 %2137 }
 0x1f8   : > { %v2120_v2 = vpop.permute.xlu1 %2119  ;;  %v2143_v16 = vadd.f32 %v2138_v52, %v2123_v13 }
 0x1f9   : > { %v2124_v42 = vadd.f32 %v2120_v2, %v2102_v62 }
 0x1fa   : > { %v2147_v17 = vadd.f32 %v2146_v38, %v2143_v16 }
 0x1fc   : > { %v2149_v55 = vsub.f32 0.0, %v2147_v17  ;;  %v2140_v0 = vpop.permute.xlu1 %2139 }
 0x1fd   : > { %v2144_v12 = vadd.f32 %v2140_v0, %v2124_v42 }
 0x1fe   : > { %v2151_v58 = vmul.f32 1.442695, %v2149_v55 }
 0x1ff   : > { %v2148_v43 = vadd.f32 %v2146_v38, %v2144_v12 }
 0x200   : > { %2509 = vpow2.f32 %v2151_v58 }
 0x201   : > { %v2150_v51 = vsub.f32 0.0, %v2148_v43 }
 0x203   : > { %v2153_v29 = vmul.f32 1.442695, %v2150_v51 }
 0x205   : > { %2511 = vpow2.f32 %v2153_v29 }
 0x20a   : > { %v2510_v5 = vpop.eup %2509 }
 0x20b   : > { %v2155_v47 = vadd.f32 1.0, %v2510_v5 }
 0x20d   : > { %2513 = vrcp.f32 %v2155_v47 }
 0x20f   : > { %v2512_v49 = vpop.eup %2511 }
 0x210   : > { %v2156_v25 = vadd.f32 1.0, %v2512_v49 }
 0x212   : > { %2515 = vrcp.f32 %v2156_v25 }
 0x217   : > { %v2514_v11 = vpop.eup %2513 }
 0x218   : > { %v2163_v36 = vrot.slane %v2514_v11, 5 }
 0x21a   : > { %2166 = vrot.lane.b32.xlu0 %v2163_v36, %s2619_s10 }
 0x21c   : > { %v2516_v14 = vpop.eup %2515 }
 0x21d   : > { %v2164_v9 = vrot.slane %v2516_v14, 5 }
 0x21f   : > { %2170 = vrot.lane.b32.xlu0 %v2164_v9, %s2619_s10  ;;  %v2165_v1 = vsel %vm404_vm6, %v2163_v36, %v2164_v9 }
 0x220   : > { %2168 = vrot.lane.b32.xlu1 %v2165_v1, %s2619_s10 }
 0x28c   : > { %v2167_v4 = vpop.permute.xlu0 %2166 }
 0x28d   : > { %v2175_v3 = vmul.f32 %v2517_v45, %v2167_v4  ;;  %v2178_v23 = vmul.f32 %v2518_v59, %v2167_v4  ;;  %v2181_v57 = vmul.f32 %v2521_v50, %v2167_v4  ;;  %v2184_v28 = vmul.f32 %v2522_v53, %v2167_v4 }
 0x28f   : > { %2205 = vrot.lane.b32.xlu0 %v2178_v23, %s2615_s21  ;;  %2199 = vrot.lane.b32.xlu1 %v2175_v3, %s2615_s21 }
 0x291   : > { %v2171_v31 = vpop.permute.xlu0 %2170 }
 0x292   : > { %v2177_v24 = vmul.f32 %v2519_v61, %v2171_v31  ;;  %v2180_v63 = vmul.f32 %v2520_v27, %v2171_v31  ;;  %v2169_v46 = vpop.permute.xlu1 %2168  ;;  %v2183_v20 = vmul.f32 %v2523_v37, %v2171_v31  ;;  %v2186_v15 = vmul.f32 %v2527_v60, %v2171_v31 }
 0x293   : > { %v2176_v21 = vmul.f32 %v2524_v7, %v2169_v46  ;;  %v2179_v54 = vmul.f32 %v2525_v40, %v2169_v46  ;;  %v2182_v19 = vmul.f32 %v2526_v56, %v2169_v46  ;;  %v2185_v30 = vmul.f32 %v2528_v6, %v2169_v46 }
 0x294   : > { %2209 = vrot.lane.b32.xlu0 %v2180_v63, %s2615_s21  ;;  %2203 = vrot.lane.b32.xlu1 %v2177_v24, %s2615_s21 }
 0x298   : > { %2217 = vrot.lane.b32.xlu0 %v2184_v28, %s2615_s21  ;;  %2211 = vrot.lane.b32.xlu1 %v2181_v57, %s2615_s21 }
 0x29c   : > { %2215 = vrot.lane.b32.xlu1 %v2183_v20, %s2615_s21  ;;  %2201 = vrot.lane.b32.xlu0 %v2176_v21, %s2615_s21 }
 0x2a0   : > { %2207 = vrot.lane.b32.xlu1 %v2179_v54, %s2615_s21  ;;  %2213 = vrot.lane.b32.xlu0 %v2182_v19, %s2615_s21 }
 0x2a4   : > { %2219 = vrot.lane.b32.xlu1 %v2185_v30, %s2615_s21  ;;  %2221 = vrot.lane.b32.xlu0 %v2186_v15, %s2615_s21  ;;  %s2264_s21 = sshll.u32 %s178_s7, 4  ;;  %s4073_s21 = int_to_ptr.vmem [resolvable:$true] %s2264_s21 }
 0x2a5   : > { %s2544_s12 = scalar_lea.vmem %s4073_s21, 1024  ;;  %p2551_p13 = scmp.lt.s32.totalorder %s4073_s21, %s2549_s27 }
 0x2a6   : > { %p2545_p9 = scmp.ne.s32.totalorder %s4073_s21, %s2544_s12  ;;  %p2552_p0 = scmp.lt.s32.totalorder %s2550_s28, %s2544_s12 }
 0x2a8   : > { %p2546_p10 = pnand %p2545_p9, %p2684_p5  ;;  %p2553_p1 = por %p2552_p0, %p2551_p13 }
 0x2aa   : > { %p2547_p12 = pneg %p2546_p10 }
 0x2ac   : > { %p2554_p2 = pnand %p2553_p1, %p2547_p12 }
 0x301   : > { %v2206_v33 = vpop.permute.xlu0 %2205  ;;  %v2200_v32 = vpop.permute.xlu1 %2199 }
 0x302   : > { %2241 = vst.msk [vmem:[%s178_s7 + $0xd] sm:$0xf8] %vm2235_vm8, %v2206_v33  ;;  %2236 = vst.msk [vmem:[%s178_s7 - $0x3] sm:$0xf8] %vm2235_vm8, %v2200_v32 }
 0x306   : > { %v2210_v10 = vpop.permute.xlu0 %2209  ;;  %v2204_v34 = vpop.permute.xlu1 %2203 }
 0x307   : > { %2243 = vst.msk [vmem:[%s178_s7 + $0x1d] sm:$0x7] %vm2239_vm9, %v2210_v10  ;;  %2240 = vst.msk [vmem:[%s178_s7 + $0xd] sm:$0x7] %vm2239_vm9, %v2204_v34 }
 0x30a   : > { %v2218_v44 = vpop.permute.xlu0 %2217  ;;  %v2212_v22 = vpop.permute.xlu1 %2211 }
 0x30b   : > { %2247 = vst.msk [vmem:[%s178_s7 + $0x2d] sm:$0xf8] %vm2235_vm8, %v2218_v44  ;;  %2244 = vst.msk [vmem:[%s178_s7 + $0x1d] sm:$0xf8] %vm2235_vm8, %v2212_v22 }
 0x30e   : > { %v2202_v8 = vpop.permute.xlu0 %2201  ;;  %v2216_v39 = vpop.permute.xlu1 %2215 }
 0x30f   : > { %2238 = vst.msk [vmem:[%s178_s7 + $0x5] sm:$0xff] %vm2237_vm10, %v2202_v8 }
 0x310   : > { %2246 = vst.msk [vmem:[%s178_s7 + $0x2d] sm:$0x7] %vm2239_vm9, %v2216_v39 }
 0x312   : > { %v2214_v48 = vpop.permute.xlu0 %2213  ;;  %v2208_v41 = vpop.permute.xlu1 %2207 }
 0x313   : > { %2245 = vst.msk [vmem:[%s178_s7 + $0x25] sm:$0xff] %vm2237_vm10, %v2214_v48  ;;  %2242 = vst.msk [vmem:[%s178_s7 + $0x15] sm:$0xff] %vm2237_vm10, %v2208_v41 }
 0x316   : > { %v2222_v18 = vpop.permute.xlu0 %2221  ;;  %v2220_v26 = vpop.permute.xlu1 %2219 }
 0x317   : > { %2249 = vst.msk [vmem:[%s178_s7 + $0x3d] sm:$0x7] %vm2239_vm9, %v2222_v18 }
 0x318   : > { %2248 = vst.msk [vmem:[%s178_s7 + $0x35] sm:$0xff] %vm2237_vm10, %v2220_v26 }
 0x319   : > { %2557 = shalt.err (!%p2554_p2)
}
 0x31a   : > { %s2558_s29 = scalar_lea.hbm %s4071_s25, 1024  ;;  %s2562_s5 = scalar_lea.hbm %s4123_s3, 2048 }
 0x31b   : > { %p2559_p3 = scmp.ne.s32.totalorder %s4071_s25, %s2558_s29  ;;  %p2563_p8 = scmp.lt.u32.totalorder %s4071_s25, %s4123_s3 }
 0x31c   : > { %p2564_p11 = scmp.lt.u32.totalorder %s2562_s5, %s2558_s29  ;;  %p2566_p10 = scmp.lt.u32.totalorder %s2558_s29, %s4071_s25 }
 0x31d   : > { %p2560_p4 = pnand %p2559_p3, %p2684_p5 }
 0x31e   : > { %p2565_p9 = por %p2564_p11, %p2563_p8 }
 0x31f   : > { %p2561_p7 = pneg %p2560_p4 }
 0x320   : > { %p2567_p12 = por %p2566_p10, %p2565_p9 }
 0x322   : > { %p2568_p13 = pnand %p2567_p12, %p2561_p7 }
 0x324   : > { %2571 = shalt.err (!%p2568_p13)
}
 0x325   : > { %s2621_s10 = smov 128   ;;  %s2622_s13 = smov 8  }
 0x326   : > { %2454 = dma.vmem_to_hbm [thread:$0]  (%p2684_p5), %s4073_s21, 1024, %s4071_s25, %s4079_s2, %s2621_s10, %s2621_s10, %s2622_s13  }
 0x327 PF: > { %p2466_p0 = scmp.ge.s32.totalorder %s2610_s17, 2  ;;  %s2279_s6 = sand.u32 1, %s2598_s14  }
 0x328   : > { %s2280_s7 = scalar_lea.sflag [#allocation4], %s2279_s6 }
 0x329   : > { %p2461_p1 = pnand %p2466_p0, %p2688_p6 }
 0x32b   : > { %2593 = dma.done.wait (!%p2461_p1), %s2280_s7, 1024  }
 0x32c   : > { %2595 = vsyncadd (!%p2461_p1), %s2280_s7, 4294966272  ;;  %p15_p2 = scmp.ge.s32.totalorder %s2671_s19, 4   ;;  %s4162_s14 = smov %s2602_s15 }
 0x32d   : > { %s4163_s15 = smov %s2606_s16  ;;  %s4164_s16 = smov %s2682_s22 }
 0x32e   : > { %s4165_s17 = smov %s2671_s19  ;;  %17 = sbr.rel (!%p15_p2) target bundleno = 6 (0x6), region = 72 }
 0x335   :  { %2285 = vsyncpa [#allocation4], 1 }
 0x336   :  { %2287 = vsyncpa [#allocation4 + $0x1], 1 }
 0x337   :  { %2288 = vsyncpa [#allocation5], 1 }
 0x338   :  { %2290 = vsyncpa [#allocation5 + $0x1], 1 }

</bundles_post_ra>
